<compile_context>
chip_gen: v5e
topology: v5e:2x2
jax: 0.10.0
libtpu: 0.0.40
codegen_flags: <defaults>
</compile_context>

<pallas_src>
import functools
import math

import jax
import jax.numpy as jnp
from jax.experimental import pallas as pl
from jax.experimental.pallas import tpu as pltpu

LN_EPS = 1e-12        # BertConfig.layer_norm_eps default
MASK_NEG = -10000.0   # HF extended-attention-mask fill value
MXU_DTYPE = jnp.bfloat16
NEG_INIT = -1e30      # finite "-inf" for the online-softmax running max


def _pick_vmem_limit():
    # ~60% of physical VMEM: v5e/v6e (128 MiB) -> ~76 MiB, v7x (64 MiB) -> ~38 MiB.
    try:
        info = pltpu.get_tpu_info()
        cap = getattr(info, "vmem_capacity_bytes", None)
        if cap:
            return int(cap * 0.6)
    except Exception:
        pass
    return 48 * 1024 * 1024


VMEM_LIMIT = _pick_vmem_limit()


def _pick_tile(dim, target, align):
    """Largest tile <= target that divides `dim` and is a multiple of `align`;
    falls back to the full dim (a full-extent block is always legal)."""
    if dim <= target:
        return dim
    t = (min(target, dim) // align) * align
    while t >= align:
        if dim % t == 0:
            return t
        t -= align
    return dim


def _gelu(x):
    # tanh-approx GELU (tanh goes to the EUP slot) instead of HF's exact-erf
    # "gelu"; max abs deviation ~1e-3 (fine for inference).
    # TODO(synk): on v5e consider x*sigmoid(1.702x) if the EUP becomes the
    # binding slot in the FFN-in epilogue.
    c = math.sqrt(2.0 / math.pi)
    return 0.5 * x * (1.0 + jnp.tanh(c * (x + 0.044715 * x * x * x)))


# ---------------------------------------------------------------------------
# Pallas kernels
# ---------------------------------------------------------------------------
def _matmul_bias_kernel(x_ref, w_ref, b_ref, o_ref, acc_ref, *, activation):
    # Tiled  y = x @ w + b  (optionally GELU).  Grid: (M/tm, N/tn, K/tk).
    k = pl.program_id(2)

    @pl.when(k == 0)
    def _():
        acc_ref[...] = jnp.zeros_like(acc_ref)

    acc_ref[...] += jnp.dot(x_ref[...].astype(MXU_DTYPE),
                            w_ref[...].astype(MXU_DTYPE),
                            preferred_element_type=jnp.float32)

    @pl.when(k == pl.num_programs(2) - 1)
    def _():
        y = acc_ref[...] + b_ref[...].astype(jnp.float32)
        if activation == "gelu":
            y = _gelu(y)
        o_ref[...] = y.astype(o_ref.dtype)


def _matmul_res_ln_kernel(x_ref, w_ref, b_ref, r_ref, g_ref, bb_ref,
                          o_ref, acc_ref):
    # Tiled  y = LayerNorm(x @ w + b + residual).  Grid: (M/tm, K/tk),
    # the full feature dim N stays in one block so LN fits in the epilogue.
    k = pl.program_id(1)

    @pl.when(k == 0)
    def _():
        acc_ref[...] = jnp.zeros_like(acc_ref)

    acc_ref[...] += jnp.dot(x_ref[...].astype(MXU_DTYPE),
                            w_ref[...].astype(MXU_DTYPE),
                            preferred_element_type=jnp.float32)

    @pl.when(k == pl.num_programs(1) - 1)
    def _():
        y = (acc_ref[...] + b_ref[...].astype(jnp.float32)
             + r_ref[...].astype(jnp.float32))
        mu = jnp.mean(y, axis=-1, keepdims=True)
        var = jnp.mean(jnp.square(y - mu), axis=-1, keepdims=True)
        yn = (y - mu) * jax.lax.rsqrt(var + LN_EPS)
        o_ref[...] = (yn * g_ref[...].astype(jnp.float32)
                      + bb_ref[...].astype(jnp.float32)).astype(o_ref.dtype)


def _flash_attention_kernel(q_ref, k_ref, v_ref, msk_ref, o_ref,
                            acc_sc, m_sc, l_sc, *, scale, num_heads):
    # Grid: (B, Sq//tq, Sk//tkv), kv axis innermost ("arbitrary").
    # q: [tq, H], k/v: [tkv, H], mask: [1, tkv].  Heads are statically
    # unrolled; per-head online-softmax state lives in scratch:
    #   acc_sc: [num_heads, tq, dh]  m_sc/l_sc: [num_heads, tq, 1]
    kvi = pl.program_id(2)
    H = q_ref.shape[-1]
    dh = H // num_heads

    @pl.when(kvi == 0)
    def _():
        acc_sc[...] = jnp.zeros_like(acc_sc)
        m_sc[...] = jnp.full_like(m_sc, NEG_INIT)
        l_sc[...] = jnp.zeros_like(l_sc)

    # Fold the softmax scale into q: tq*H multiplies instead of tq*Sk per head.
    q = (q_ref[...].astype(jnp.float32) * scale).astype(MXU_DTYPE)
    k = k_ref[...].astype(MXU_DTYPE)
    v = v_ref[...].astype(MXU_DTYPE)
    mask = msk_ref[...].astype(jnp.float32)          # [1, tkv] -> broadcast rows

    for h in range(num_heads):                        # static unroll
        lo = h * dh
        qh = q[:, lo:lo + dh]
        kh = k[:, lo:lo + dh]
        vh = v[:, lo:lo + dh]
        s = jax.lax.dot_general(qh, kh, (((1,), (1,)), ((), ())),
                                preferred_element_type=jnp.float32)
        s = s + mask
        m_prev = m_sc[h]                              # [tq, 1]
        m_new = jnp.maximum(m_prev, jnp.max(s, axis=-1, keepdims=True))
        alpha = jnp.exp(m_prev - m_new)
        p = jnp.exp(s - m_new)
        l_sc[h] = alpha * l_sc[h] + jnp.sum(p, axis=-1, keepdims=True)
        acc_sc[h] = alpha * acc_sc[h] + jnp.dot(p.astype(MXU_DTYPE), vh,
                                                preferred_element_type=jnp.float32)
        m_sc[h] = m_new

    @pl.when(kvi == pl.num_programs(2) - 1)
    def _():
        # Deferred normalization on the [tq, dh] accumulator (not [tq, Sk]).
        parts = []
        for h in range(num_heads):
            inv = pl.reciprocal(l_sc[h], approx=True)     # [tq, 1], EUP slot
            parts.append(acc_sc[h] * inv)
        # One lane-dense [tq, H] store per (b, q-tile).
        o_ref[...] = jnp.concatenate(parts, axis=-1).astype(o_ref.dtype)


# ---------------------------------------------------------------------------
# pallas_call wrappers
# ---------------------------------------------------------------------------
def linear(x, w, b, activation=None, out_dtype=None, tm=512, tn=512, tk=1024):
    """y = x @ w + b over the last axis of x. w: [K, N] (bf16), b: [N]."""
    lead = x.shape[:-1]
    K = x.shape[-1]
    N = w.shape[1]
    x2 = x.reshape(-1, K)
    M = x2.shape[0]
    out_dtype = out_dtype if out_dtype is not None else x.dtype
    tm = _pick_tile(M, tm, 8)
    tn = _pick_tile(N, tn, 128)
    tk = _pick_tile(K, tk, 128)
    grid = (M // tm, N // tn, K // tk)
    out = pl.pallas_call(
        functools.partial(_matmul_bias_kernel, activation=activation),
        out_shape=jax.ShapeDtypeStruct((M, N), out_dtype),
        grid=grid,
        in_specs=[
            pl.BlockSpec((tm, tk), lambda i, j, kk: (i, kk)),
            pl.BlockSpec((tk, tn), lambda i, j, kk: (kk, j)),
            pl.BlockSpec((1, tn), lambda i, j, kk: (0, j)),
        ],
        out_specs=pl.BlockSpec((tm, tn), lambda i, j, kk: (i, j)),
        scratch_shapes=[pltpu.VMEM((tm, tn), jnp.float32)],
        compiler_params=pltpu.CompilerParams(
            dimension_semantics=("parallel", "parallel", "arbitrary"),
            vmem_limit_bytes=VMEM_LIMIT),
    )(x2, w, b.reshape(1, N))
    return out.reshape(lead + (N,))


def linear_residual_layernorm(x, w, b, residual, gamma, beta,
                              out_dtype=None, tm=512, tk=1024):
    """LayerNorm(x @ w + b + residual) with the LN fused into the matmul
    epilogue (full feature dim kept in one block)."""
    lead = x.shape[:-1]
    K = x.shape[-1]
    N = w.shape[1]
    x2 = x.reshape(-1, K)
    r2 = residual.reshape(-1, N)
    if r2.dtype != MXU_DTYPE:
        r2 = r2.astype(MXU_DTYPE)   # residual streamed in bf16 (idle VMEM /2)
    M = x2.shape[0]
    out_dtype = out_dtype if out_dtype is not None else x.dtype
    tm = _pick_tile(M, tm, 8)
    tk = _pick_tile(K, tk, 128)
    grid = (M // tm, K // tk)
    out = pl.pallas_call(
        _matmul_res_ln_kernel,
        out_shape=jax.ShapeDtypeStruct((M, N), out_dtype),
        grid=grid,
        in_specs=[
            pl.BlockSpec((tm, tk), lambda i, kk: (i, kk)),
            pl.BlockSpec((tk, N), lambda i, kk: (kk, 0)),
            pl.BlockSpec((1, N), lambda i, kk: (0, 0)),
            pl.BlockSpec((tm, N), lambda i, kk: (i, 0)),
            pl.BlockSpec((1, N), lambda i, kk: (0, 0)),
            pl.BlockSpec((1, N), lambda i, kk: (0, 0)),
        ],
        out_specs=pl.BlockSpec((tm, N), lambda i, kk: (i, 0)),
        scratch_shapes=[pltpu.VMEM((tm, N), jnp.float32)],
        compiler_params=pltpu.CompilerParams(
            dimension_semantics=("parallel", "arbitrary"),
            vmem_limit_bytes=VMEM_LIMIT),
    )(x2, w, b.reshape(1, N), r2, gamma.reshape(1, N), beta.reshape(1, N))
    return out.reshape(lead + (N,))


def attention_core(q_arr, k_arr, v_arr, q_off, k_off, v_off, add_mask,
                   scale, num_heads, hidden, tq_target=256, tkv_target=1024):
    """softmax(q k^T * scale + mask) v, flash-style (kv-blocked online softmax).

    q/k/v are read out of (possibly fused) activation arrays via block-index
    offsets along the last axis (blocks of width `hidden`); the mask is
    [B, 1, Sk] and broadcast inside the kernel."""
    B, Sq = q_arr.shape[0], q_arr.shape[1]
    Sk = k_arr.shape[1]
    H = hidden
    dh = H // num_heads
    tq = _pick_tile(Sq, tq_target, 8)
    # v7x megacore: with B == 1, keep >= 2 q-tiles so both TensorCores get work.
    if B == 1 and Sq // tq < 2 and Sq >= 16:
        tq = _pick_tile(Sq, max(8, Sq // 2), 8)
    tkv = _pick_tile(Sk, tkv_target, 128)
    grid = (B, Sq // tq, Sk // tkv)
    return pl.pallas_call(
        functools.partial(_flash_attention_kernel, scale=scale,
                          num_heads=num_heads),
        out_shape=jax.ShapeDtypeStruct((B, Sq, H), q_arr.dtype),
        grid=grid,
        in_specs=[
            pl.BlockSpec((None, tq, H), lambda b, qi, ki, o=q_off: (b, qi, o)),
            pl.BlockSpec((None, tkv, H), lambda b, qi, ki, o=k_off: (b, ki, o)),
            pl.BlockSpec((None, tkv, H), lambda b, qi, ki, o=v_off: (b, ki, o)),
            pl.BlockSpec((None, 1, tkv), lambda b, qi, ki: (b, 0, ki)),
        ],
        out_specs=pl.BlockSpec((None, tq, H), lambda b, qi, ki: (b, qi, 0)),
        scratch_shapes=[
            pltpu.VMEM((num_heads, tq, dh), jnp.float32),   # acc
            pltpu.VMEM((num_heads, tq, 1), jnp.float32),    # running max
            pltpu.VMEM((num_heads, tq, 1), jnp.float32),    # running sum
        ],
        compiler_params=pltpu.CompilerParams(
            dimension_semantics=("parallel", "parallel", "arbitrary"),
            vmem_limit_bytes=VMEM_LIMIT),
    )(q_arr, k_arr, v_arr, add_mask)


# ---------------------------------------------------------------------------
# BertCrossLayer in terms of the kernels above
# ---------------------------------------------------------------------------
def bert_attention_block(x, kv, add_mask, p, num_heads, is_self,
                         out_dtype=None):
    """BertAttention: multi-head attention (Q from x, K/V from kv) +
    output dense + LayerNorm(dense + x), with fused QKV / KV projections."""
    B, Sq, H = x.shape
    dh = H // num_heads
    scale = 1.0 / math.sqrt(dh)
    lane_ok = (H % 128 == 0)   # block-offset trick needs 128-lane-aligned H

    if is_self:
        qkv = linear(x, p["qkv_w"], p["qkv_b"], out_dtype=MXU_DTYPE)  # [B,Sq,3H]
        if lane_ok:
            ctx = attention_core(qkv, qkv, qkv, 0, 1, 2, add_mask,
                                 scale, num_heads, H)
        else:
            q, k, v = qkv[..., :H], qkv[..., H:2 * H], qkv[..., 2 * H:]
            ctx = attention_core(q, k, v, 0, 0, 0, add_mask,
                                 scale, num_heads, H)
    else:
        q = linear(x, p["q_w"], p["q_b"], out_dtype=MXU_DTYPE)        # [B,Sq,H]
        kvp = linear(kv, p["kv_w"], p["kv_b"], out_dtype=MXU_DTYPE)   # [B,Sk,2H]
        if lane_ok:
            ctx = attention_core(q, kvp, kvp, 0, 0, 1, add_mask,
                                 scale, num_heads, H)
        else:
            k, v = kvp[..., :H], kvp[..., H:]
            ctx = attention_core(q, k, v, 0, 0, 0, add_mask,
                                 scale, num_heads, H)

    # Fused: output dense + residual add + LayerNorm (single kernel).
    return linear_residual_layernorm(ctx, p["o_w"], p["o_b"], x,
                                     p["ln_g"], p["ln_b"], out_dtype=out_dtype)


def bert_cross_layer(hidden_states, encoder_hidden_states,
                     attention_mask, encoder_attention_mask,
                     params, num_heads):
    out_dtype = hidden_states.dtype
    # All inter-kernel activations run in bf16 (f32 accumulators / statistics
    # inside the kernels); the final layer output is cast back to the input dtype.
    x = hidden_states.astype(MXU_DTYPE)
    enc = encoder_hidden_states.astype(MXU_DTYPE)

    # HF extended attention mask: (1 - mask) * -10000, kept as [B, 1, Sk] and
    # broadcast over query rows inside the attention kernel.
    self_mask = ((1.0 - attention_mask) * MASK_NEG)[:, None, :].astype(jnp.float32)
    cross_mask = ((1.0 - encoder_attention_mask) * MASK_NEG)[:, None, :].astype(jnp.float32)

    # self.attention(hidden_states, attention_mask)
    attn_out = bert_attention_block(x, x, self_mask, params["self_attn"],
                                    num_heads, is_self=True, out_dtype=MXU_DTYPE)
    # self.crossattention(attention_output, ..., encoder_hidden_states,
    #                     encoder_attention_mask) -> mask applied on encoder keys
    cross_out = bert_attention_block(attn_out, enc, cross_mask,
                                     params["cross_attn"], num_heads,
                                     is_self=False, out_dtype=MXU_DTYPE)
    # feed_forward_chunk: intermediate (dense + gelu) then
    # output (dense + residual + LayerNorm fused).
    inter = linear(cross_out, params["ffn"]["i_w"], params["ffn"]["i_b"],
                   activation="gelu", out_dtype=MXU_DTYPE)
    layer_output = linear_residual_layernorm(
        inter, params["ffn"]["o_w"], params["ffn"]["o_b"], cross_out,
        params["ffn"]["ln_g"], params["ffn"]["ln_b"], out_dtype=out_dtype)
    return layer_output  # outputs tuple is (layer_output,) with output_attentions=False


# ---------------------------------------------------------------------------
# Deterministic parameter construction (weights stored bf16 for the MXU,
# biases / LN params in f32)
# ---------------------------------------------------------------------------
def _init_linear(key, fan_in, fan_out):
    kw, kb = jax.random.split(key)
    w = jax.random.normal(kw, (fan_in, fan_out), jnp.float32) * 0.02
    b = jax.random.normal(kb, (fan_out,), jnp.float32) * 0.02
    return w, b


def _init_self_attention_params(key, hidden):
    ks = jax.random.split(key, 4)
    qw, qb = _init_linear(ks[0], hidden, hidden)
    kw, kb = _init_linear(ks[1], hidden, hidden)
    vw, vb = _init_linear(ks[2], hidden, hidden)
    ow, ob = _init_linear(ks[3], hidden, hidden)
    return dict(
        qkv_w=jnp.concatenate([qw, kw, vw], axis=1).astype(MXU_DTYPE),
        qkv_b=jnp.concatenate([qb, kb, vb], axis=0),
        o_w=ow.astype(MXU_DTYPE), o_b=ob,
        ln_g=jnp.ones((hidden,), jnp.float32),
        ln_b=jnp.zeros((hidden,), jnp.float32))


def _init_cross_attention_params(key, hidden):
    ks = jax.random.split(key, 4)
    qw, qb = _init_linear(ks[0], hidden, hidden)
    kw, kb = _init_linear(ks[1], hidden, hidden)
    vw, vb = _init_linear(ks[2], hidden, hidden)
    ow, ob = _init_linear(ks[3], hidden, hidden)
    return dict(
        q_w=qw.astype(MXU_DTYPE), q_b=qb,
        kv_w=jnp.concatenate([kw, vw], axis=1).astype(MXU_DTYPE),
        kv_b=jnp.concatenate([kb, vb], axis=0),
        o_w=ow.astype(MXU_DTYPE), o_b=ob,
        ln_g=jnp.ones((hidden,), jnp.float32),
        ln_b=jnp.zeros((hidden,), jnp.float32))


def init_params(key, hidden, intermediate):
    k1, k2, k3, k4 = jax.random.split(key, 4)
    iw, ib = _init_linear(k3, hidden, intermediate)
    ow, ob = _init_linear(k4, intermediate, hidden)
    return dict(
        self_attn=_init_self_attention_params(k1, hidden),
        cross_attn=_init_cross_attention_params(k2, hidden),
        ffn=dict(i_w=iw.astype(MXU_DTYPE), i_b=ib,
                 o_w=ow.astype(MXU_DTYPE), o_b=ob,
                 ln_g=jnp.ones((hidden,), jnp.float32),
                 ln_b=jnp.zeros((hidden,), jnp.float32)))


if __name__ == "__main__":
    # Small config (lane-aligned hidden): hidden=128, heads=4 (head_dim=32),
    # intermediate=512, text seq=8, image/encoder seq=16, batch=2.
    B, S_TXT, S_IMG = 2, 8, 16
    HIDDEN, N_HEADS, INTERMEDIATE = 128, 4, 512

    root = jax.random.PRNGKey(0)
    k_param, k_h, k_e = jax.random.split(root, 3)

    params = init_params(k_param, HIDDEN, INTERMEDIATE)
    hidden_states = jax.random.normal(k_h, (B, S_TXT, HIDDEN), jnp.float32)
    encoder_hidden_states = jax.random.normal(k_e, (B, S_IMG, HIDDEN), jnp.float32)
    # Binary (1 = attend) masks, a few tokens of batch 1 masked out for variety.
    attention_mask = jnp.ones((B, S_TXT), jnp.float32).at[1, -1].set(0.0)
    encoder_attention_mask = jnp.ones((B, S_IMG), jnp.float32).at[1, -2:].set(0.0)

    fwd = jax.jit(functools.partial(bert_cross_layer, num_heads=N_HEADS))
    out = fwd(hidden_states, encoder_hidden_states,
              attention_mask, encoder_attention_mask, params)
    jax.block_until_ready(out)
    assert out.shape == (B, S_TXT, HIDDEN)
    assert out.dtype == jnp.float32
    assert bool(jnp.all(jnp.isfinite(out)))
    print("KERNEL_OK")
</pallas_src>

<mosaic_0001>
module attributes {stable_mosaic.version = 11 : i64} {
  func.func @_matmul_bias_kernel(%arg0: i32, %arg1: i32, %arg2: i32, %arg3: memref<16x128xbf16, #tpu.memory_space<vmem>>, %arg4: memref<128x384xbf16, #tpu.memory_space<vmem>>, %arg5: memref<1x384xf32, #tpu.memory_space<vmem>>, %arg6: memref<16x384xbf16, #tpu.memory_space<vmem>>, %arg7: memref<16x384xf32, #tpu.memory_space<vmem>>) attributes {dimension_semantics = [#tpu.dimension_semantics<parallel>, #tpu.dimension_semantics<parallel>, #tpu.dimension_semantics<arbitrary>], iteration_bounds = array<i64: 1, 1, 1>, scalar_prefetch = 0 : i64, scratch_operands = 1 : i64, tpu.core_type = #tpu.core_type<tc>, window_params = [{transform_indices = @transform_0, window_bounds = array<i64: 16, 128>}, {transform_indices = @transform_1, window_bounds = array<i64: 128, 384>}, {transform_indices = @transform_2, window_bounds = array<i64: 1, 384>}, {transform_indices = @transform_3, window_bounds = array<i64: 16, 384>}]} {
    %c0_i32 = arith.constant 0 : i32
    %0 = arith.cmpi eq, %arg2, %c0_i32 : i32
    %1 = arith.extui %0 : i1 to i32
    %c0_i32_0 = arith.constant 0 : i32
    %2 = arith.cmpi ne, %1, %c0_i32_0 : i32
    scf.if %2 {
      %cst_10 = arith.constant 0.000000e+00 : f32
      %12 = vector.broadcast %cst_10 : f32 to vector<16x384xf32>
      %c0_11 = arith.constant 0 : index
      %c0_12 = arith.constant 0 : index
      %13 = vector.load %arg7[%c0_11, %c0_12] : memref<16x384xf32, #tpu.memory_space<vmem>>, vector<16x384xf32>
      tpu.vector_store %arg7[%c0_11, %c0_12], %12 {strides = array<i32>} : memref<16x384xf32, #tpu.memory_space<vmem>>, vector<16x384xf32>,
    } else {
    }
    %c0 = arith.constant 0 : index
    %c0_1 = arith.constant 0 : index
    %3 = vector.load %arg7[%c0, %c0_1] : memref<16x384xf32, #tpu.memory_space<vmem>>, vector<16x384xf32>
    %c0_2 = arith.constant 0 : index
    %c0_3 = arith.constant 0 : index
    %4 = vector.load %arg3[%c0_2, %c0_3] : memref<16x128xbf16, #tpu.memory_space<vmem>>, vector<16x128xbf16>
    %c0_4 = arith.constant 0 : index
    %c0_5 = arith.constant 0 : index
    %5 = vector.load %arg4[%c0_4, %c0_5] : memref<128x384xbf16, #tpu.memory_space<vmem>>, vector<128x384xbf16>
    %cst = arith.constant dense<0.000000e+00> : vector<16x384xf32>
    %6 = tpu.matmul %4, %5, %cst {dimension_numbers = #tpu.dot_dimension_numbers<[1], [0], [0], [1], [0, 0, 1, 1], [], []>} : vector<16x128xbf16>, vector<128x384xbf16>, vector<16x384xf32> -> vector<16x384xf32>
    %7 = arith.addf %3, %6 : vector<16x384xf32>
    %c0_6 = arith.constant 0 : index
    %c0_7 = arith.constant 0 : index
    %8 = vector.load %arg7[%c0_6, %c0_7] : memref<16x384xf32, #tpu.memory_space<vmem>>, vector<16x384xf32>
    tpu.vector_store %arg7[%c0_6, %c0_7], %7 {strides = array<i32>} : memref<16x384xf32, #tpu.memory_space<vmem>>, vector<16x384xf32>,
    %c0_i32_8 = arith.constant 0 : i32
    %9 = arith.cmpi eq, %arg2, %c0_i32_8 : i32
    %10 = arith.extui %9 : i1 to i32
    %c0_i32_9 = arith.constant 0 : i32
    %11 = arith.cmpi ne, %10, %c0_i32_9 : i32
    scf.if %11 {
      %c0_10 = arith.constant 0 : index
      %c0_11 = arith.constant 0 : index
      %12 = vector.load %arg7[%c0_10, %c0_11] : memref<16x384xf32, #tpu.memory_space<vmem>>, vector<16x384xf32>
      %c0_12 = arith.constant 0 : index
      %c0_13 = arith.constant 0 : index
      %13 = vector.load %arg5[%c0_12, %c0_13] : memref<1x384xf32, #tpu.memory_space<vmem>>, vector<1x384xf32>
      %14 = vector.broadcast %13 : vector<1x384xf32> to vector<16x384xf32>
      %15 = arith.addf %12, %14 : vector<16x384xf32>
      %16 = arith.truncf %15 : vector<16x384xf32> to vector<16x384xbf16>
      %c0_14 = arith.constant 0 : index
      %c0_15 = arith.constant 0 : index
      %17 = vector.load %arg6[%c0_14, %c0_15] : memref<16x384xbf16, #tpu.memory_space<vmem>>, vector<16x384xbf16>
      tpu.vector_store %arg6[%c0_14, %c0_15], %16 {strides = array<i32>} : memref<16x384xbf16, #tpu.memory_space<vmem>>, vector<16x384xbf16>,
    } else {
    }
    return
  }
  func.func @transform_0(%arg0: i32, %arg1: i32, %arg2: i32) -> (i32, i32) {
    %c0_i32 = arith.constant 0 : i32
    return %arg0, %arg2 : i32, i32
  }
  func.func @transform_1(%arg0: i32, %arg1: i32, %arg2: i32) -> (i32, i32) {
    %c0_i32 = arith.constant 0 : i32
    return %arg2, %arg1 : i32, i32
  }
  func.func @transform_2(%arg0: i32, %arg1: i32, %arg2: i32) -> (i32, i32) {
    %c0_i32 = arith.constant 0 : i32
    %c0_i32_0 = arith.constant 0 : i32
    return %c0_i32, %arg1 : i32, i32
  }
  func.func @transform_3(%arg0: i32, %arg1: i32, %arg2: i32) -> (i32, i32) {
    %c0_i32 = arith.constant 0 : i32
    return %arg0, %arg1 : i32, i32
  }
}

module attributes {stable_mosaic.version = 11 : i64} {
  func.func @_matmul_res_ln_kernel(%arg0: i32, %arg1: i32, %arg2: memref<16x128xbf16, #tpu.memory_space<vmem>>, %arg3: memref<128x128xbf16, #tpu.memory_space<vmem>>, %arg4: memref<1x128xf32, #tpu.memory_space<vmem>>, %arg5: memref<16x128xbf16, #tpu.memory_space<vmem>>, %arg6: memref<1x128xf32, #tpu.memory_space<vmem>>, %arg7: memref<1x128xf32, #tpu.memory_space<vmem>>, %arg8: memref<16x128xbf16, #tpu.memory_space<vmem>>, %arg9: memref<16x128xf32, #tpu.memory_space<vmem>>) attributes {dimension_semantics = [#tpu.dimension_semantics<parallel>, #tpu.dimension_semantics<arbitrary>], iteration_bounds = array<i64: 1, 1>, scalar_prefetch = 0 : i64, scratch_operands = 1 : i64, tpu.core_type = #tpu.core_type<tc>, window_params = [{transform_indices = @transform_0, window_bounds = array<i64: 16, 128>}, {transform_indices = @transform_1, window_bounds = array<i64: 128, 128>}, {pipeline_mode = #tpu.pipeline_mode<synchronous>, transform_indices = @transform_2, window_bounds = array<i64: 1, 128>}, {transform_indices = @transform_3, window_bounds = array<i64: 16, 128>}, {pipeline_mode = #tpu.pipeline_mode<synchronous>, transform_indices = @transform_4, window_bounds = array<i64: 1, 128>}, {pipeline_mode = #tpu.pipeline_mode<synchronous>, transform_indices = @transform_5, window_bounds = array<i64: 1, 128>}, {transform_indices = @transform_6, window_bounds = array<i64: 16, 128>}]} {
    %c0_i32 = arith.constant 0 : i32
    %0 = arith.cmpi eq, %arg1, %c0_i32 : i32
    %1 = arith.extui %0 : i1 to i32
    %c0_i32_0 = arith.constant 0 : i32
    %2 = arith.cmpi ne, %1, %c0_i32_0 : i32
    scf.if %2 {
      %cst_10 = arith.constant 0.000000e+00 : f32
      %12 = vector.broadcast %cst_10 : f32 to vector<16x128xf32>
      %c0_11 = arith.constant 0 : index
      %c0_12 = arith.constant 0 : index
      %13 = vector.load %arg9[%c0_11, %c0_12] : memref<16x128xf32, #tpu.memory_space<vmem>>, vector<16x128xf32>
      tpu.vector_store %arg9[%c0_11, %c0_12], %12 {strides = array<i32>} : memref<16x128xf32, #tpu.memory_space<vmem>>, vector<16x128xf32>,
    } else {
    }
    %c0 = arith.constant 0 : index
    %c0_1 = arith.constant 0 : index
    %3 = vector.load %arg9[%c0, %c0_1] : memref<16x128xf32, #tpu.memory_space<vmem>>, vector<16x128xf32>
    %c0_2 = arith.constant 0 : index
    %c0_3 = arith.constant 0 : index
    %4 = vector.load %arg2[%c0_2, %c0_3] : memref<16x128xbf16, #tpu.memory_space<vmem>>, vector<16x128xbf16>
    %c0_4 = arith.constant 0 : index
    %c0_5 = arith.constant 0 : index
    %5 = vector.load %arg3[%c0_4, %c0_5] : memref<128x128xbf16, #tpu.memory_space<vmem>>, vector<128x128xbf16>
    %cst = arith.constant dense<0.000000e+00> : vector<16x128xf32>
    %6 = tpu.matmul %4, %5, %cst {dimension_numbers = #tpu.dot_dimension_numbers<[1], [0], [0], [1], [0, 0, 1, 1], [], []>} : vector<16x128xbf16>, vector<128x128xbf16>, vector<16x128xf32> -> vector<16x128xf32>
    %7 = arith.addf %3, %6 : vector<16x128xf32>
    %c0_6 = arith.constant 0 : index
    %c0_7 = arith.constant 0 : index
    %8 = vector.load %arg9[%c0_6, %c0_7] : memref<16x128xf32, #tpu.memory_space<vmem>>, vector<16x128xf32>
    tpu.vector_store %arg9[%c0_6, %c0_7], %7 {strides = array<i32>} : memref<16x128xf32, #tpu.memory_space<vmem>>, vector<16x128xf32>,
    %c0_i32_8 = arith.constant 0 : i32
    %9 = arith.cmpi eq, %arg1, %c0_i32_8 : i32
    %10 = arith.extui %9 : i1 to i32
    %c0_i32_9 = arith.constant 0 : i32
    %11 = arith.cmpi ne, %10, %c0_i32_9 : i32
    scf.if %11 {
      %c0_10 = arith.constant 0 : index
      %c0_11 = arith.constant 0 : index
      %12 = vector.load %arg9[%c0_10, %c0_11] : memref<16x128xf32, #tpu.memory_space<vmem>>, vector<16x128xf32>
      %c0_12 = arith.constant 0 : index
      %c0_13 = arith.constant 0 : index
      %13 = vector.load %arg4[%c0_12, %c0_13] : memref<1x128xf32, #tpu.memory_space<vmem>>, vector<1x128xf32>
      %14 = vector.broadcast %13 : vector<1x128xf32> to vector<16x128xf32>
      %15 = arith.addf %12, %14 : vector<16x128xf32>
      %c0_14 = arith.constant 0 : index
      %c0_15 = arith.constant 0 : index
      %16 = vector.load %arg5[%c0_14, %c0_15] : memref<16x128xbf16, #tpu.memory_space<vmem>>, vector<16x128xbf16>
      %17 = arith.extf %16 : vector<16x128xbf16> to vector<16x128xf32>
      %18 = arith.addf %15, %17 : vector<16x128xf32>
      %cst_16 = arith.constant dense<0.000000e+00> : vector<16xf32>
      %19 = vector.multi_reduction <add>, %18, %cst_16 [1] : vector<16x128xf32> to vector<16xf32>
      %20 = vector.shape_cast %19 : vector<16xf32> to vector<16x1xf32>
      %cst_17 = arith.constant 1.280000e+02 : f32
      %21 = vector.broadcast %cst_17 : f32 to vector<16x1xf32>
      %22 = arith.divf %20, %21 : vector<16x1xf32>
      %23 = vector.broadcast %22 : vector<16x1xf32> to vector<16x128xf32>
      %24 = arith.subf %18, %23 : vector<16x128xf32>
      %25 = arith.mulf %24, %24 : vector<16x128xf32>
      %cst_18 = arith.constant dense<0.000000e+00> : vector<16xf32>
      %26 = vector.multi_reduction <add>, %25, %cst_18 [1] : vector<16x128xf32> to vector<16xf32>
      %27 = vector.shape_cast %26 : vector<16xf32> to vector<16x1xf32>
      %cst_19 = arith.constant 1.280000e+02 : f32
      %28 = vector.broadcast %cst_19 : f32 to vector<16x1xf32>
      %29 = arith.divf %27, %28 : vector<16x1xf32>
      %30 = vector.broadcast %22 : vector<16x1xf32> to vector<16x128xf32>
      %31 = arith.subf %18, %30 : vector<16x128xf32>
      %cst_20 = arith.constant 9.99999996E-13 : f32
      %32 = vector.broadcast %cst_20 : f32 to vector<16x1xf32>
      %33 = arith.addf %29, %32 : vector<16x1xf32>
      %34 = math.rsqrt %33 : vector<16x1xf32>
      %35 = vector.broadcast %34 : vector<16x1xf32> to vector<16x128xf32>
      %36 = arith.mulf %31, %35 : vector<16x128xf32>
      %c0_21 = arith.constant 0 : index
      %c0_22 = arith.constant 0 : index
      %37 = vector.load %arg6[%c0_21, %c0_22] : memref<1x128xf32, #tpu.memory_space<vmem>>, vector<1x128xf32>
      %38 = vector.broadcast %37 : vector<1x128xf32> to vector<16x128xf32>
      %39 = arith.mulf %36, %38 : vector<16x128xf32>
      %c0_23 = arith.constant 0 : index
      %c0_24 = arith.constant 0 : index
      %40 = vector.load %arg7[%c0_23, %c0_24] : memref<1x128xf32, #tpu.memory_space<vmem>>, vector<1x128xf32>
      %41 = vector.broadcast %40 : vector<1x128xf32> to vector<16x128xf32>
      %42 = arith.addf %39, %41 : vector<16x128xf32>
      %43 = arith.truncf %42 : vector<16x128xf32> to vector<16x128xbf16>
      %c0_25 = arith.constant 0 : index
      %c0_26 = arith.constant 0 : index
      %44 = vector.load %arg8[%c0_25, %c0_26] : memref<16x128xbf16, #tpu.memory_space<vmem>>, vector<16x128xbf16>
      tpu.vector_store %arg8[%c0_25, %c0_26], %43 {strides = array<i32>} : memref<16x128xbf16, #tpu.memory_space<vmem>>, vector<16x128xbf16>,
    } else {
    }
    return
  }
  func.func @transform_0(%arg0: i32, %arg1: i32) -> (i32, i32) {
    %c0_i32 = arith.constant 0 : i32
    return %arg0, %arg1 : i32, i32
  }
  func.func @transform_1(%arg0: i32, %arg1: i32) -> (i32, i32) {
    %c0_i32 = arith.constant 0 : i32
    %c0_i32_0 = arith.constant 0 : i32
    return %arg1, %c0_i32 : i32, i32
  }
  func.func @transform_2(%arg0: i32, %arg1: i32) -> (i32, i32) {
    %c0_i32 = arith.constant 0 : i32
    %c0_i32_0 = arith.constant 0 : i32
    %c0_i32_1 = arith.constant 0 : i32
    return %c0_i32, %c0_i32_0 : i32, i32
  }
  func.func @transform_3(%arg0: i32, %arg1: i32) -> (i32, i32) {
    %c0_i32 = arith.constant 0 : i32
    %c0_i32_0 = arith.constant 0 : i32
    return %arg0, %c0_i32 : i32, i32
  }
  func.func @transform_4(%arg0: i32, %arg1: i32) -> (i32, i32) {
    %c0_i32 = arith.constant 0 : i32
    %c0_i32_0 = arith.constant 0 : i32
    %c0_i32_1 = arith.constant 0 : i32
    return %c0_i32, %c0_i32_0 : i32, i32
  }
  func.func @transform_5(%arg0: i32, %arg1: i32) -> (i32, i32) {
    %c0_i32 = arith.constant 0 : i32
    %c0_i32_0 = arith.constant 0 : i32
    %c0_i32_1 = arith.constant 0 : i32
    return %c0_i32, %c0_i32_0 : i32, i32
  }
  func.func @transform_6(%arg0: i32, %arg1: i32) -> (i32, i32) {
    %c0_i32 = arith.constant 0 : i32
    %c0_i32_0 = arith.constant 0 : i32
    return %arg0, %c0_i32 : i32, i32
  }
}

module attributes {stable_mosaic.version = 11 : i64} {
  func.func @_matmul_bias_kernel(%arg0: i32, %arg1: i32, %arg2: i32, %arg3: memref<16x128xbf16, #tpu.memory_space<vmem>>, %arg4: memref<128x128xbf16, #tpu.memory_space<vmem>>, %arg5: memref<1x128xf32, #tpu.memory_space<vmem>>, %arg6: memref<16x128xbf16, #tpu.memory_space<vmem>>, %arg7: memref<16x128xf32, #tpu.memory_space<vmem>>) attributes {dimension_semantics = [#tpu.dimension_semantics<parallel>, #tpu.dimension_semantics<parallel>, #tpu.dimension_semantics<arbitrary>], iteration_bounds = array<i64: 1, 1, 1>, scalar_prefetch = 0 : i64, scratch_operands = 1 : i64, tpu.core_type = #tpu.core_type<tc>, window_params = [{transform_indices = @transform_0, window_bounds = array<i64: 16, 128>}, {transform_indices = @transform_1, window_bounds = array<i64: 128, 128>}, {transform_indices = @transform_2, window_bounds = array<i64: 1, 128>}, {transform_indices = @transform_3, window_bounds = array<i64: 16, 128>}]} {
    %c0_i32 = arith.constant 0 : i32
    %0 = arith.cmpi eq, %arg2, %c0_i32 : i32
    %1 = arith.extui %0 : i1 to i32
    %c0_i32_0 = arith.constant 0 : i32
    %2 = arith.cmpi ne, %1, %c0_i32_0 : i32
    scf.if %2 {
      %cst_10 = arith.constant 0.000000e+00 : f32
      %12 = vector.broadcast %cst_10 : f32 to vector<16x128xf32>
      %c0_11 = arith.constant 0 : index
      %c0_12 = arith.constant 0 : index
      %13 = vector.load %arg7[%c0_11, %c0_12] : memref<16x128xf32, #tpu.memory_space<vmem>>, vector<16x128xf32>
      tpu.vector_store %arg7[%c0_11, %c0_12], %12 {strides = array<i32>} : memref<16x128xf32, #tpu.memory_space<vmem>>, vector<16x128xf32>,
    } else {
    }
    %c0 = arith.constant 0 : index
    %c0_1 = arith.constant 0 : index
    %3 = vector.load %arg7[%c0, %c0_1] : memref<16x128xf32, #tpu.memory_space<vmem>>, vector<16x128xf32>
    %c0_2 = arith.constant 0 : index
    %c0_3 = arith.constant 0 : index
    %4 = vector.load %arg3[%c0_2, %c0_3] : memref<16x128xbf16, #tpu.memory_space<vmem>>, vector<16x128xbf16>
    %c0_4 = arith.constant 0 : index
    %c0_5 = arith.constant 0 : index
    %5 = vector.load %arg4[%c0_4, %c0_5] : memref<128x128xbf16, #tpu.memory_space<vmem>>, vector<128x128xbf16>
    %cst = arith.constant dense<0.000000e+00> : vector<16x128xf32>
    %6 = tpu.matmul %4, %5, %cst {dimension_numbers = #tpu.dot_dimension_numbers<[1], [0], [0], [1], [0, 0, 1, 1], [], []>} : vector<16x128xbf16>, vector<128x128xbf16>, vector<16x128xf32> -> vector<16x128xf32>
    %7 = arith.addf %3, %6 : vector<16x128xf32>
    %c0_6 = arith.constant 0 : index
    %c0_7 = arith.constant 0 : index
    %8 = vector.load %arg7[%c0_6, %c0_7] : memref<16x128xf32, #tpu.memory_space<vmem>>, vector<16x128xf32>
    tpu.vector_store %arg7[%c0_6, %c0_7], %7 {strides = array<i32>} : memref<16x128xf32, #tpu.memory_space<vmem>>, vector<16x128xf32>,
    %c0_i32_8 = arith.constant 0 : i32
    %9 = arith.cmpi eq, %arg2, %c0_i32_8 : i32
    %10 = arith.extui %9 : i1 to i32
    %c0_i32_9 = arith.constant 0 : i32
    %11 = arith.cmpi ne, %10, %c0_i32_9 : i32
    scf.if %11 {
      %c0_10 = arith.constant 0 : index
      %c0_11 = arith.constant 0 : index
      %12 = vector.load %arg7[%c0_10, %c0_11] : memref<16x128xf32, #tpu.memory_space<vmem>>, vector<16x128xf32>
      %c0_12 = arith.constant 0 : index
      %c0_13 = arith.constant 0 : index
      %13 = vector.load %arg5[%c0_12, %c0_13] : memref<1x128xf32, #tpu.memory_space<vmem>>, vector<1x128xf32>
      %14 = vector.broadcast %13 : vector<1x128xf32> to vector<16x128xf32>
      %15 = arith.addf %12, %14 : vector<16x128xf32>
      %16 = arith.truncf %15 : vector<16x128xf32> to vector<16x128xbf16>
      %c0_14 = arith.constant 0 : index
      %c0_15 = arith.constant 0 : index
      %17 = vector.load %arg6[%c0_14, %c0_15] : memref<16x128xbf16, #tpu.memory_space<vmem>>, vector<16x128xbf16>
      tpu.vector_store %arg6[%c0_14, %c0_15], %16 {strides = array<i32>} : memref<16x128xbf16, #tpu.memory_space<vmem>>, vector<16x128xbf16>,
    } else {
    }
    return
  }
  func.func @transform_0(%arg0: i32, %arg1: i32, %arg2: i32) -> (i32, i32) {
    %c0_i32 = arith.constant 0 : i32
    return %arg0, %arg2 : i32, i32
  }
  func.func @transform_1(%arg0: i32, %arg1: i32, %arg2: i32) -> (i32, i32) {
    %c0_i32 = arith.constant 0 : i32
    return %arg2, %arg1 : i32, i32
  }
  func.func @transform_2(%arg0: i32, %arg1: i32, %arg2: i32) -> (i32, i32) {
    %c0_i32 = arith.constant 0 : i32
    %c0_i32_0 = arith.constant 0 : i32
    return %c0_i32, %arg1 : i32, i32
  }
  func.func @transform_3(%arg0: i32, %arg1: i32, %arg2: i32) -> (i32, i32) {
    %c0_i32 = arith.constant 0 : i32
    return %arg0, %arg1 : i32, i32
  }
}

module attributes {stable_mosaic.version = 11 : i64} {
  func.func @_flash_attention_kernel(%arg0: i32, %arg1: i32, %arg2: i32, %arg3: memref<1x8x128xbf16, #tpu.memory_space<vmem>>, %arg4: memref<1x8x128xbf16, #tpu.memory_space<vmem>>, %arg5: memref<1x8x128xbf16, #tpu.memory_space<vmem>>, %arg6: memref<1x1x8xf32, #tpu.memory_space<vmem>>, %arg7: memref<1x8x128xbf16, #tpu.memory_space<vmem>>, %arg8: memref<4x8x32xf32, #tpu.memory_space<vmem>>, %arg9: memref<4x8x1xf32, #tpu.memory_space<vmem>>, %arg10: memref<4x8x1xf32, #tpu.memory_space<vmem>>) attributes {dimension_semantics = [#tpu.dimension_semantics<parallel>, #tpu.dimension_semantics<parallel>, #tpu.dimension_semantics<arbitrary>], iteration_bounds = array<i64: 2, 1, 1>, scalar_prefetch = 0 : i64, scratch_operands = 3 : i64, tpu.core_type = #tpu.core_type<tc>, window_params = [{transform_indices = @transform_0, window_bounds = array<i64: 1, 8, 128>}, {transform_indices = @transform_1, window_bounds = array<i64: 1, 8, 128>}, {transform_indices = @transform_2, window_bounds = array<i64: 1, 8, 128>}, {transform_indices = @transform_3, window_bounds = array<i64: 1, 1, 8>}, {transform_indices = @transform_4, window_bounds = array<i64: 1, 8, 128>}]} {
    %c0_i32 = arith.constant 0 : i32
    %0 = arith.cmpi eq, %arg2, %c0_i32 : i32
    %1 = arith.extui %0 : i1 to i32
    %c0_i32_0 = arith.constant 0 : i32
    %2 = arith.cmpi ne, %1, %c0_i32_0 : i32
    scf.if %2 {
      %cst_99 = arith.constant 0.000000e+00 : f32
      %170 = vector.broadcast %cst_99 : f32 to vector<4x8x32xf32>
      %c0_100 = arith.constant 0 : index
      %c0_101 = arith.constant 0 : index
      %c0_102 = arith.constant 0 : index
      %171 = vector.load %arg8[%c0_100, %c0_101, %c0_102] : memref<4x8x32xf32, #tpu.memory_space<vmem>>, vector<4x8x32xf32>
      tpu.vector_store %arg8[%c0_100, %c0_101, %c0_102], %170 {strides = array<i32>} : memref<4x8x32xf32, #tpu.memory_space<vmem>>, vector<4x8x32xf32>,
      %cst_103 = arith.constant -1.000000e+30 : f32
      %172 = vector.broadcast %cst_103 : f32 to vector<4x8x1xf32>
      %c0_104 = arith.constant 0 : index
      %c0_105 = arith.constant 0 : index
      %c0_106 = arith.constant 0 : index
      %173 = vector.load %arg9[%c0_104, %c0_105, %c0_106] : memref<4x8x1xf32, #tpu.memory_space<vmem>>, vector<4x8x1xf32>
      tpu.vector_store %arg9[%c0_104, %c0_105, %c0_106], %172 {strides = array<i32>} : memref<4x8x1xf32, #tpu.memory_space<vmem>>, vector<4x8x1xf32>,
      %cst_107 = arith.constant 0.000000e+00 : f32
      %174 = vector.broadcast %cst_107 : f32 to vector<4x8x1xf32>
      %c0_108 = arith.constant 0 : index
      %c0_109 = arith.constant 0 : index
      %c0_110 = arith.constant 0 : index
      %175 = vector.load %arg10[%c0_108, %c0_109, %c0_110] : memref<4x8x1xf32, #tpu.memory_space<vmem>>, vector<4x8x1xf32>
      tpu.vector_store %arg10[%c0_108, %c0_109, %c0_110], %174 {strides = array<i32>} : memref<4x8x1xf32, #tpu.memory_space<vmem>>, vector<4x8x1xf32>,
    } else {
    }
    %c0 = arith.constant 0 : index
    %c0_1 = arith.constant 0 : index
    %c0_2 = arith.constant 0 : index
    %3 = vector.load %arg3[%c0, %c0_1, %c0_2] : memref<1x8x128xbf16, #tpu.memory_space<vmem>>, vector<1x8x128xbf16>
    %4 = vector.shape_cast %3 : vector<1x8x128xbf16> to vector<8x128xbf16>
    %5 = arith.extf %4 : vector<8x128xbf16> to vector<8x128xf32>
    %cst = arith.constant 0.176776692 : f32
    %6 = vector.broadcast %cst : f32 to vector<8x128xf32>
    %7 = arith.mulf %5, %6 : vector<8x128xf32>
    %8 = arith.truncf %7 : vector<8x128xf32> to vector<8x128xbf16>
    %c0_3 = arith.constant 0 : index
    %c0_4 = arith.constant 0 : index
    %c0_5 = arith.constant 0 : index
    %9 = vector.load %arg4[%c0_3, %c0_4, %c0_5] : memref<1x8x128xbf16, #tpu.memory_space<vmem>>, vector<1x8x128xbf16>
    %10 = vector.shape_cast %9 : vector<1x8x128xbf16> to vector<8x128xbf16>
    %c0_6 = arith.constant 0 : index
    %c0_7 = arith.constant 0 : index
    %c0_8 = arith.constant 0 : index
    %11 = vector.load %arg5[%c0_6, %c0_7, %c0_8] : memref<1x8x128xbf16, #tpu.memory_space<vmem>>, vector<1x8x128xbf16>
    %12 = vector.shape_cast %11 : vector<1x8x128xbf16> to vector<8x128xbf16>
    %c0_9 = arith.constant 0 : index
    %c0_10 = arith.constant 0 : index
    %c0_11 = arith.constant 0 : index
    %13 = vector.load %arg6[%c0_9, %c0_10, %c0_11] : memref<1x1x8xf32, #tpu.memory_space<vmem>>, vector<1x1x8xf32>
    %14 = vector.shape_cast %13 : vector<1x1x8xf32> to vector<1x8xf32>
    %15 = vector.extract_strided_slice %8 {offsets = [0, 0], sizes = [8, 32], strides = [1, 1]} : vector<8x128xbf16> to vector<8x32xbf16>
    %16 = vector.extract_strided_slice %10 {offsets = [0, 0], sizes = [8, 32], strides = [1, 1]} : vector<8x128xbf16> to vector<8x32xbf16>
    %17 = vector.extract_strided_slice %12 {offsets = [0, 0], sizes = [8, 32], strides = [1, 1]} : vector<8x128xbf16> to vector<8x32xbf16>
    %cst_12 = arith.constant dense<0.000000e+00> : vector<8x8xf32>
    %18 = tpu.matmul %15, %16, %cst_12 {dimension_numbers = #tpu.dot_dimension_numbers<[1], [1], [0], [0], [0, 0, 1, 0], [], []>} : vector<8x32xbf16>, vector<8x32xbf16>, vector<8x8xf32> -> vector<8x8xf32>
    %19 = vector.broadcast %14 : vector<1x8xf32> to vector<8x8xf32>
    %20 = arith.addf %18, %19 : vector<8x8xf32>
    %c0_13 = arith.constant 0 : index
    %c0_14 = arith.constant 0 : index
    %c0_15 = arith.constant 0 : index
    %21 = vector.load %arg9[%c0_13, %c0_14, %c0_15] : memref<4x8x1xf32, #tpu.memory_space<vmem>>, vector<1x8x1xf32>
    %22 = vector.shape_cast %21 : vector<1x8x1xf32> to vector<8x1xf32>
    %cst_16 = arith.constant dense<0xFF800000> : vector<8xf32>
    %23 = vector.multi_reduction <maximumf>, %20, %cst_16 [1] : vector<8x8xf32> to vector<8xf32>
    %24 = vector.shape_cast %23 : vector<8xf32> to vector<8x1xf32>
    %25 = arith.maximumf %22, %24 : vector<8x1xf32>
    %26 = arith.subf %22, %25 : vector<8x1xf32>
    %27 = math.exp %26 : vector<8x1xf32>
    %28 = vector.broadcast %25 : vector<8x1xf32> to vector<8x8xf32>
    %29 = arith.subf %20, %28 : vector<8x8xf32>
    %30 = math.exp %29 : vector<8x8xf32>
    %c0_17 = arith.constant 0 : index
    %c0_18 = arith.constant 0 : index
    %c0_19 = arith.constant 0 : index
    %31 = vector.load %arg10[%c0_17, %c0_18, %c0_19] : memref<4x8x1xf32, #tpu.memory_space<vmem>>, vector<1x8x1xf32>
    %32 = vector.shape_cast %31 : vector<1x8x1xf32> to vector<8x1xf32>
    %33 = arith.mulf %27, %32 : vector<8x1xf32>
    %cst_20 = arith.constant dense<0.000000e+00> : vector<8xf32>
    %34 = vector.multi_reduction <add>, %30, %cst_20 [1] : vector<8x8xf32> to vector<8xf32>
    %35 = vector.shape_cast %34 : vector<8xf32> to vector<8x1xf32>
    %36 = arith.addf %33, %35 : vector<8x1xf32>
    %c0_21 = arith.constant 0 : index
    %c0_22 = arith.constant 0 : index
    %c0_23 = arith.constant 0 : index
    %37 = vector.load %arg10[%c0_21, %c0_22, %c0_23] : memref<4x8x1xf32, #tpu.memory_space<vmem>>, vector<1x8x1xf32>
    %38 = vector.shape_cast %37 : vector<1x8x1xf32> to vector<8x1xf32>
    %39 = vector.shape_cast %36 : vector<8x1xf32> to vector<1x8x1xf32>
    tpu.vector_store %arg10[%c0_21, %c0_22, %c0_23], %39 {strides = array<i32>} : memref<4x8x1xf32, #tpu.memory_space<vmem>>, vector<1x8x1xf32>,
    %c0_24 = arith.constant 0 : index
    %c0_25 = arith.constant 0 : index
    %c0_26 = arith.constant 0 : index
    %40 = vector.load %arg8[%c0_24, %c0_25, %c0_26] : memref<4x8x32xf32, #tpu.memory_space<vmem>>, vector<1x8x32xf32>
    %41 = vector.shape_cast %40 : vector<1x8x32xf32> to vector<8x32xf32>
    %42 = vector.broadcast %27 : vector<8x1xf32> to vector<8x32xf32>
    %43 = arith.mulf %42, %41 : vector<8x32xf32>
    %44 = arith.truncf %30 : vector<8x8xf32> to vector<8x8xbf16>
    %cst_27 = arith.constant dense<0.000000e+00> : vector<8x32xf32>
    %45 = tpu.matmul %44, %17, %cst_27 {dimension_numbers = #tpu.dot_dimension_numbers<[1], [0], [0], [1], [0, 0, 1, 1], [], []>} : vector<8x8xbf16>, vector<8x32xbf16>, vector<8x32xf32> -> vector<8x32xf32>
    %46 = arith.addf %43, %45 : vector<8x32xf32>
    %c0_28 = arith.constant 0 : index
    %c0_29 = arith.constant 0 : index
    %c0_30 = arith.constant 0 : index
    %47 = vector.load %arg8[%c0_28, %c0_29, %c0_30] : memref<4x8x32xf32, #tpu.memory_space<vmem>>, vector<1x8x32xf32>
    %48 = vector.shape_cast %47 : vector<1x8x32xf32> to vector<8x32xf32>
    %49 = vector.shape_cast %46 : vector<8x32xf32> to vector<1x8x32xf32>
    tpu.vector_store %arg8[%c0_28, %c0_29, %c0_30], %49 {strides = array<i32>} : memref<4x8x32xf32, #tpu.memory_space<vmem>>, vector<1x8x32xf32>,
    %c0_31 = arith.constant 0 : index
    %c0_32 = arith.constant 0 : index
    %c0_33 = arith.constant 0 : index
    %50 = vector.load %arg9[%c0_31, %c0_32, %c0_33] : memref<4x8x1xf32, #tpu.memory_space<vmem>>, vector<1x8x1xf32>
    %51 = vector.shape_cast %50 : vector<1x8x1xf32> to vector<8x1xf32>
    %52 = vector.shape_cast %25 : vector<8x1xf32> to vector<1x8x1xf32>
    tpu.vector_store %arg9[%c0_31, %c0_32, %c0_33], %52 {strides = array<i32>} : memref<4x8x1xf32, #tpu.memory_space<vmem>>, vector<1x8x1xf32>,
    %53 = vector.extract_strided_slice %8 {offsets = [0, 32], sizes = [8, 32], strides = [1, 1]} : vector<8x128xbf16> to vector<8x32xbf16>
    %54 = vector.extract_strided_slice %10 {offsets = [0, 32], sizes = [8, 32], strides = [1, 1]} : vector<8x128xbf16> to vector<8x32xbf16>
    %55 = vector.extract_strided_slice %12 {offsets = [0, 32], sizes = [8, 32], strides = [1, 1]} : vector<8x128xbf16> to vector<8x32xbf16>
    %cst_34 = arith.constant dense<0.000000e+00> : vector<8x8xf32>
    %56 = tpu.matmul %53, %54, %cst_34 {dimension_numbers = #tpu.dot_dimension_numbers<[1], [1], [0], [0], [0, 0, 1, 0], [], []>} : vector<8x32xbf16>, vector<8x32xbf16>, vector<8x8xf32> -> vector<8x8xf32>
    %57 = vector.broadcast %14 : vector<1x8xf32> to vector<8x8xf32>
    %58 = arith.addf %56, %57 : vector<8x8xf32>
    %c1 = arith.constant 1 : index
    %c0_35 = arith.constant 0 : index
    %c0_36 = arith.constant 0 : index
    %59 = vector.load %arg9[%c1, %c0_35, %c0_36] : memref<4x8x1xf32, #tpu.memory_space<vmem>>, vector<1x8x1xf32>
    %60 = vector.shape_cast %59 : vector<1x8x1xf32> to vector<8x1xf32>
    %cst_37 = arith.constant dense<0xFF800000> : vector<8xf32>
    %61 = vector.multi_reduction <maximumf>, %58, %cst_37 [1] : vector<8x8xf32> to vector<8xf32>
    %62 = vector.shape_cast %61 : vector<8xf32> to vector<8x1xf32>
    %63 = arith.maximumf %60, %62 : vector<8x1xf32>
    %64 = arith.subf %60, %63 : vector<8x1xf32>
    %65 = math.exp %64 : vector<8x1xf32>
    %66 = vector.broadcast %63 : vector<8x1xf32> to vector<8x8xf32>
    %67 = arith.subf %58, %66 : vector<8x8xf32>
    %68 = math.exp %67 : vector<8x8xf32>
    %c1_38 = arith.constant 1 : index
    %c0_39 = arith.constant 0 : index
    %c0_40 = arith.constant 0 : index
    %69 = vector.load %arg10[%c1_38, %c0_39, %c0_40] : memref<4x8x1xf32, #tpu.memory_space<vmem>>, vector<1x8x1xf32>
    %70 = vector.shape_cast %69 : vector<1x8x1xf32> to vector<8x1xf32>
    %71 = arith.mulf %65, %70 : vector<8x1xf32>
    %cst_41 = arith.constant dense<0.000000e+00> : vector<8xf32>
    %72 = vector.multi_reduction <add>, %68, %cst_41 [1] : vector<8x8xf32> to vector<8xf32>
    %73 = vector.shape_cast %72 : vector<8xf32> to vector<8x1xf32>
    %74 = arith.addf %71, %73 : vector<8x1xf32>
    %c1_42 = arith.constant 1 : index
    %c0_43 = arith.constant 0 : index
    %c0_44 = arith.constant 0 : index
    %75 = vector.load %arg10[%c1_42, %c0_43, %c0_44] : memref<4x8x1xf32, #tpu.memory_space<vmem>>, vector<1x8x1xf32>
    %76 = vector.shape_cast %75 : vector<1x8x1xf32> to vector<8x1xf32>
    %77 = vector.shape_cast %74 : vector<8x1xf32> to vector<1x8x1xf32>
    tpu.vector_store %arg10[%c1_42, %c0_43, %c0_44], %77 {strides = array<i32>} : memref<4x8x1xf32, #tpu.memory_space<vmem>>, vector<1x8x1xf32>,
    %c1_45 = arith.constant 1 : index
    %c0_46 = arith.constant 0 : index
    %c0_47 = arith.constant 0 : index
    %78 = vector.load %arg8[%c1_45, %c0_46, %c0_47] : memref<4x8x32xf32, #tpu.memory_space<vmem>>, vector<1x8x32xf32>
    %79 = vector.shape_cast %78 : vector<1x8x32xf32> to vector<8x32xf32>
    %80 = vector.broadcast %65 : vector<8x1xf32> to vector<8x32xf32>
    %81 = arith.mulf %80, %79 : vector<8x32xf32>
    %82 = arith.truncf %68 : vector<8x8xf32> to vector<8x8xbf16>
    %cst_48 = arith.constant dense<0.000000e+00> : vector<8x32xf32>
    %83 = tpu.matmul %82, %55, %cst_48 {dimension_numbers = #tpu.dot_dimension_numbers<[1], [0], [0], [1], [0, 0, 1, 1], [], []>} : vector<8x8xbf16>, vector<8x32xbf16>, vector<8x32xf32> -> vector<8x32xf32>
    %84 = arith.addf %81, %83 : vector<8x32xf32>
    %c1_49 = arith.constant 1 : index
    %c0_50 = arith.constant 0 : index
    %c0_51 = arith.constant 0 : index
    %85 = vector.load %arg8[%c1_49, %c0_50, %c0_51] : memref<4x8x32xf32, #tpu.memory_space<vmem>>, vector<1x8x32xf32>
    %86 = vector.shape_cast %85 : vector<1x8x32xf32> to vector<8x32xf32>
    %87 = vector.shape_cast %84 : vector<8x32xf32> to vector<1x8x32xf32>
    tpu.vector_store %arg8[%c1_49, %c0_50, %c0_51], %87 {strides = array<i32>} : memref<4x8x32xf32, #tpu.memory_space<vmem>>, vector<1x8x32xf32>,
    %c1_52 = arith.constant 1 : index
    %c0_53 = arith.constant 0 : index
    %c0_54 = arith.constant 0 : index
    %88 = vector.load %arg9[%c1_52, %c0_53, %c0_54] : memref<4x8x1xf32, #tpu.memory_space<vmem>>, vector<1x8x1xf32>
    %89 = vector.shape_cast %88 : vector<1x8x1xf32> to vector<8x1xf32>
    %90 = vector.shape_cast %63 : vector<8x1xf32> to vector<1x8x1xf32>
    tpu.vector_store %arg9[%c1_52, %c0_53, %c0_54], %90 {strides = array<i32>} : memref<4x8x1xf32, #tpu.memory_space<vmem>>, vector<1x8x1xf32>,
    %91 = vector.extract_strided_slice %8 {offsets = [0, 64], sizes = [8, 32], strides = [1, 1]} : vector<8x128xbf16> to vector<8x32xbf16>
    %92 = vector.extract_strided_slice %10 {offsets = [0, 64], sizes = [8, 32], strides = [1, 1]} : vector<8x128xbf16> to vector<8x32xbf16>
    %93 = vector.extract_strided_slice %12 {offsets = [0, 64], sizes = [8, 32], strides = [1, 1]} : vector<8x128xbf16> to vector<8x32xbf16>
    %cst_55 = arith.constant dense<0.000000e+00> : vector<8x8xf32>
    %94 = tpu.matmul %91, %92, %cst_55 {dimension_numbers = #tpu.dot_dimension_numbers<[1], [1], [0], [0], [0, 0, 1, 0], [], []>} : vector<8x32xbf16>, vector<8x32xbf16>, vector<8x8xf32> -> vector<8x8xf32>
    %95 = vector.broadcast %14 : vector<1x8xf32> to vector<8x8xf32>
    %96 = arith.addf %94, %95 : vector<8x8xf32>
    %c2 = arith.constant 2 : index
    %c0_56 = arith.constant 0 : index
    %c0_57 = arith.constant 0 : index
    %97 = vector.load %arg9[%c2, %c0_56, %c0_57] : memref<4x8x1xf32, #tpu.memory_space<vmem>>, vector<1x8x1xf32>
    %98 = vector.shape_cast %97 : vector<1x8x1xf32> to vector<8x1xf32>
    %cst_58 = arith.constant dense<0xFF800000> : vector<8xf32>
    %99 = vector.multi_reduction <maximumf>, %96, %cst_58 [1] : vector<8x8xf32> to vector<8xf32>
    %100 = vector.shape_cast %99 : vector<8xf32> to vector<8x1xf32>
    %101 = arith.maximumf %98, %100 : vector<8x1xf32>
    %102 = arith.subf %98, %101 : vector<8x1xf32>
    %103 = math.exp %102 : vector<8x1xf32>
    %104 = vector.broadcast %101 : vector<8x1xf32> to vector<8x8xf32>
    %105 = arith.subf %96, %104 : vector<8x8xf32>
    %106 = math.exp %105 : vector<8x8xf32>
    %c2_59 = arith.constant 2 : index
    %c0_60 = arith.constant 0 : index
    %c0_61 = arith.constant 0 : index
    %107 = vector.load %arg10[%c2_59, %c0_60, %c0_61] : memref<4x8x1xf32, #tpu.memory_space<vmem>>, vector<1x8x1xf32>
    %108 = vector.shape_cast %107 : vector<1x8x1xf32> to vector<8x1xf32>
    %109 = arith.mulf %103, %108 : vector<8x1xf32>
    %cst_62 = arith.constant dense<0.000000e+00> : vector<8xf32>
    %110 = vector.multi_reduction <add>, %106, %cst_62 [1] : vector<8x8xf32> to vector<8xf32>
    %111 = vector.shape_cast %110 : vector<8xf32> to vector<8x1xf32>
    %112 = arith.addf %109, %111 : vector<8x1xf32>
    %c2_63 = arith.constant 2 : index
    %c0_64 = arith.constant 0 : index
    %c0_65 = arith.constant 0 : index
    %113 = vector.load %arg10[%c2_63, %c0_64, %c0_65] : memref<4x8x1xf32, #tpu.memory_space<vmem>>, vector<1x8x1xf32>
    %114 = vector.shape_cast %113 : vector<1x8x1xf32> to vector<8x1xf32>
    %115 = vector.shape_cast %112 : vector<8x1xf32> to vector<1x8x1xf32>
    tpu.vector_store %arg10[%c2_63, %c0_64, %c0_65], %115 {strides = array<i32>} : memref<4x8x1xf32, #tpu.memory_space<vmem>>, vector<1x8x1xf32>,
    %c2_66 = arith.constant 2 : index
    %c0_67 = arith.constant 0 : index
    %c0_68 = arith.constant 0 : index
    %116 = vector.load %arg8[%c2_66, %c0_67, %c0_68] : memref<4x8x32xf32, #tpu.memory_space<vmem>>, vector<1x8x32xf32>
    %117 = vector.shape_cast %116 : vector<1x8x32xf32> to vector<8x32xf32>
    %118 = vector.broadcast %103 : vector<8x1xf32> to vector<8x32xf32>
    %119 = arith.mulf %118, %117 : vector<8x32xf32>
    %120 = arith.truncf %106 : vector<8x8xf32> to vector<8x8xbf16>
    %cst_69 = arith.constant dense<0.000000e+00> : vector<8x32xf32>
    %121 = tpu.matmul %120, %93, %cst_69 {dimension_numbers = #tpu.dot_dimension_numbers<[1], [0], [0], [1], [0, 0, 1, 1], [], []>} : vector<8x8xbf16>, vector<8x32xbf16>, vector<8x32xf32> -> vector<8x32xf32>
    %122 = arith.addf %119, %121 : vector<8x32xf32>
    %c2_70 = arith.constant 2 : index
    %c0_71 = arith.constant 0 : index
    %c0_72 = arith.constant 0 : index
    %123 = vector.load %arg8[%c2_70, %c0_71, %c0_72] : memref<4x8x32xf32, #tpu.memory_space<vmem>>, vector<1x8x32xf32>
    %124 = vector.shape_cast %123 : vector<1x8x32xf32> to vector<8x32xf32>
    %125 = vector.shape_cast %122 : vector<8x32xf32> to vector<1x8x32xf32>
    tpu.vector_store %arg8[%c2_70, %c0_71, %c0_72], %125 {strides = array<i32>} : memref<4x8x32xf32, #tpu.memory_space<vmem>>, vector<1x8x32xf32>,
    %c2_73 = arith.constant 2 : index
    %c0_74 = arith.constant 0 : index
    %c0_75 = arith.constant 0 : index
    %126 = vector.load %arg9[%c2_73, %c0_74, %c0_75] : memref<4x8x1xf32, #tpu.memory_space<vmem>>, vector<1x8x1xf32>
    %127 = vector.shape_cast %126 : vector<1x8x1xf32> to vector<8x1xf32>
    %128 = vector.shape_cast %101 : vector<8x1xf32> to vector<1x8x1xf32>
    tpu.vector_store %arg9[%c2_73, %c0_74, %c0_75], %128 {strides = array<i32>} : memref<4x8x1xf32, #tpu.memory_space<vmem>>, vector<1x8x1xf32>,
    %129 = vector.extract_strided_slice %8 {offsets = [0, 96], sizes = [8, 32], strides = [1, 1]} : vector<8x128xbf16> to vector<8x32xbf16>
    %130 = vector.extract_strided_slice %10 {offsets = [0, 96], sizes = [8, 32], strides = [1, 1]} : vector<8x128xbf16> to vector<8x32xbf16>
    %131 = vector.extract_strided_slice %12 {offsets = [0, 96], sizes = [8, 32], strides = [1, 1]} : vector<8x128xbf16> to vector<8x32xbf16>
    %cst_76 = arith.constant dense<0.000000e+00> : vector<8x8xf32>
    %132 = tpu.matmul %129, %130, %cst_76 {dimension_numbers = #tpu.dot_dimension_numbers<[1], [1], [0], [0], [0, 0, 1, 0], [], []>} : vector<8x32xbf16>, vector<8x32xbf16>, vector<8x8xf32> -> vector<8x8xf32>
    %133 = vector.broadcast %14 : vector<1x8xf32> to vector<8x8xf32>
    %134 = arith.addf %132, %133 : vector<8x8xf32>
    %c3 = arith.constant 3 : index
    %c0_77 = arith.constant 0 : index
    %c0_78 = arith.constant 0 : index
    %135 = vector.load %arg9[%c3, %c0_77, %c0_78] : memref<4x8x1xf32, #tpu.memory_space<vmem>>, vector<1x8x1xf32>
    %136 = vector.shape_cast %135 : vector<1x8x1xf32> to vector<8x1xf32>
    %cst_79 = arith.constant dense<0xFF800000> : vector<8xf32>
    %137 = vector.multi_reduction <maximumf>, %134, %cst_79 [1] : vector<8x8xf32> to vector<8xf32>
    %138 = vector.shape_cast %137 : vector<8xf32> to vector<8x1xf32>
    %139 = arith.maximumf %136, %138 : vector<8x1xf32>
    %140 = arith.subf %136, %139 : vector<8x1xf32>
    %141 = math.exp %140 : vector<8x1xf32>
    %142 = vector.broadcast %139 : vector<8x1xf32> to vector<8x8xf32>
    %143 = arith.subf %134, %142 : vector<8x8xf32>
    %144 = math.exp %143 : vector<8x8xf32>
    %c3_80 = arith.constant 3 : index
    %c0_81 = arith.constant 0 : index
    %c0_82 = arith.constant 0 : index
    %145 = vector.load %arg10[%c3_80, %c0_81, %c0_82] : memref<4x8x1xf32, #tpu.memory_space<vmem>>, vector<1x8x1xf32>
    %146 = vector.shape_cast %145 : vector<1x8x1xf32> to vector<8x1xf32>
    %147 = arith.mulf %141, %146 : vector<8x1xf32>
    %cst_83 = arith.constant dense<0.000000e+00> : vector<8xf32>
    %148 = vector.multi_reduction <add>, %144, %cst_83 [1] : vector<8x8xf32> to vector<8xf32>
    %149 = vector.shape_cast %148 : vector<8xf32> to vector<8x1xf32>
    %150 = arith.addf %147, %149 : vector<8x1xf32>
    %c3_84 = arith.constant 3 : index
    %c0_85 = arith.constant 0 : index
    %c0_86 = arith.constant 0 : index
    %151 = vector.load %arg10[%c3_84, %c0_85, %c0_86] : memref<4x8x1xf32, #tpu.memory_space<vmem>>, vector<1x8x1xf32>
    %152 = vector.shape_cast %151 : vector<1x8x1xf32> to vector<8x1xf32>
    %153 = vector.shape_cast %150 : vector<8x1xf32> to vector<1x8x1xf32>
    tpu.vector_store %arg10[%c3_84, %c0_85, %c0_86], %153 {strides = array<i32>} : memref<4x8x1xf32, #tpu.memory_space<vmem>>, vector<1x8x1xf32>,
    %c3_87 = arith.constant 3 : index
    %c0_88 = arith.constant 0 : index
    %c0_89 = arith.constant 0 : index
    %154 = vector.load %arg8[%c3_87, %c0_88, %c0_89] : memref<4x8x32xf32, #tpu.memory_space<vmem>>, vector<1x8x32xf32>
    %155 = vector.shape_cast %154 : vector<1x8x32xf32> to vector<8x32xf32>
    %156 = vector.broadcast %141 : vector<8x1xf32> to vector<8x32xf32>
    %157 = arith.mulf %156, %155 : vector<8x32xf32>
    %158 = arith.truncf %144 : vector<8x8xf32> to vector<8x8xbf16>
    %cst_90 = arith.constant dense<0.000000e+00> : vector<8x32xf32>
    %159 = tpu.matmul %158, %131, %cst_90 {dimension_numbers = #tpu.dot_dimension_numbers<[1], [0], [0], [1], [0, 0, 1, 1], [], []>} : vector<8x8xbf16>, vector<8x32xbf16>, vector<8x32xf32> -> vector<8x32xf32>
    %160 = arith.addf %157, %159 : vector<8x32xf32>
    %c3_91 = arith.constant 3 : index
    %c0_92 = arith.constant 0 : index
    %c0_93 = arith.constant 0 : index
    %161 = vector.load %arg8[%c3_91, %c0_92, %c0_93] : memref<4x8x32xf32, #tpu.memory_space<vmem>>, vector<1x8x32xf32>
    %162 = vector.shape_cast %161 : vector<1x8x32xf32> to vector<8x32xf32>
    %163 = vector.shape_cast %160 : vector<8x32xf32> to vector<1x8x32xf32>
    tpu.vector_store %arg8[%c3_91, %c0_92, %c0_93], %163 {strides = array<i32>} : memref<4x8x32xf32, #tpu.memory_space<vmem>>, vector<1x8x32xf32>,
    %c3_94 = arith.constant 3 : index
    %c0_95 = arith.constant 0 : index
    %c0_96 = arith.constant 0 : index
    %164 = vector.load %arg9[%c3_94, %c0_95, %c0_96] : memref<4x8x1xf32, #tpu.memory_space<vmem>>, vector<1x8x1xf32>
    %165 = vector.shape_cast %164 : vector<1x8x1xf32> to vector<8x1xf32>
    %166 = vector.shape_cast %139 : vector<8x1xf32> to vector<1x8x1xf32>
    tpu.vector_store %arg9[%c3_94, %c0_95, %c0_96], %166 {strides = array<i32>} : memref<4x8x1xf32, #tpu.memory_space<vmem>>, vector<1x8x1xf32>,
    %c0_i32_97 = arith.constant 0 : i32
    %167 = arith.cmpi eq, %arg2, %c0_i32_97 : i32
    %168 = arith.extui %167 : i1 to i32
    %c0_i32_98 = arith.constant 0 : i32
    %169 = arith.cmpi ne, %168, %c0_i32_98 : i32
    scf.if %169 {
      %c0_99 = arith.constant 0 : index
      %c0_100 = arith.constant 0 : index
      %c0_101 = arith.constant 0 : index
      %170 = vector.load %arg10[%c0_99, %c0_100, %c0_101] : memref<4x8x1xf32, #tpu.memory_space<vmem>>, vector<1x8x1xf32>
      %171 = vector.shape_cast %170 : vector<1x8x1xf32> to vector<8x1xf32>
      %172 = tpu.reciprocal %171 {approx = true} : vector<8x1xf32> -> vector<8x1xf32>
      %c0_102 = arith.constant 0 : index
      %c0_103 = arith.constant 0 : index
      %c0_104 = arith.constant 0 : index
      %173 = vector.load %arg8[%c0_102, %c0_103, %c0_104] : memref<4x8x32xf32, #tpu.memory_space<vmem>>, vector<1x8x32xf32>
      %174 = vector.shape_cast %173 : vector<1x8x32xf32> to vector<8x32xf32>
      %175 = vector.broadcast %172 : vector<8x1xf32> to vector<8x32xf32>
      %176 = arith.mulf %174, %175 : vector<8x32xf32>
      %c1_105 = arith.constant 1 : index
      %c0_106 = arith.constant 0 : index
      %c0_107 = arith.constant 0 : index
      %177 = vector.load %arg10[%c1_105, %c0_106, %c0_107] : memref<4x8x1xf32, #tpu.memory_space<vmem>>, vector<1x8x1xf32>
      %178 = vector.shape_cast %177 : vector<1x8x1xf32> to vector<8x1xf32>
      %179 = tpu.reciprocal %178 {approx = true} : vector<8x1xf32> -> vector<8x1xf32>
      %c1_108 = arith.constant 1 : index
      %c0_109 = arith.constant 0 : index
      %c0_110 = arith.constant 0 : index
      %180 = vector.load %arg8[%c1_108, %c0_109, %c0_110] : memref<4x8x32xf32, #tpu.memory_space<vmem>>, vector<1x8x32xf32>
      %181 = vector.shape_cast %180 : vector<1x8x32xf32> to vector<8x32xf32>
      %182 = vector.broadcast %179 : vector<8x1xf32> to vector<8x32xf32>
      %183 = arith.mulf %181, %182 : vector<8x32xf32>
      %c2_111 = arith.constant 2 : index
      %c0_112 = arith.constant 0 : index
      %c0_113 = arith.constant 0 : index
      %184 = vector.load %arg10[%c2_111, %c0_112, %c0_113] : memref<4x8x1xf32, #tpu.memory_space<vmem>>, vector<1x8x1xf32>
      %185 = vector.shape_cast %184 : vector<1x8x1xf32> to vector<8x1xf32>
      %186 = tpu.reciprocal %185 {approx = true} : vector<8x1xf32> -> vector<8x1xf32>
      %c2_114 = arith.constant 2 : index
      %c0_115 = arith.constant 0 : index
      %c0_116 = arith.constant 0 : index
      %187 = vector.load %arg8[%c2_114, %c0_115, %c0_116] : memref<4x8x32xf32, #tpu.memory_space<vmem>>, vector<1x8x32xf32>
      %188 = vector.shape_cast %187 : vector<1x8x32xf32> to vector<8x32xf32>
      %189 = vector.broadcast %186 : vector<8x1xf32> to vector<8x32xf32>
      %190 = arith.mulf %188, %189 : vector<8x32xf32>
      %c3_117 = arith.constant 3 : index
      %c0_118 = arith.constant 0 : index
      %c0_119 = arith.constant 0 : index
      %191 = vector.load %arg10[%c3_117, %c0_118, %c0_119] : memref<4x8x1xf32, #tpu.memory_space<vmem>>, vector<1x8x1xf32>
      %192 = vector.shape_cast %191 : vector<1x8x1xf32> to vector<8x1xf32>
      %193 = tpu.reciprocal %192 {approx = true} : vector<8x1xf32> -> vector<8x1xf32>
      %c3_120 = arith.constant 3 : index
      %c0_121 = arith.constant 0 : index
      %c0_122 = arith.constant 0 : index
      %194 = vector.load %arg8[%c3_120, %c0_121, %c0_122] : memref<4x8x32xf32, #tpu.memory_space<vmem>>, vector<1x8x32xf32>
      %195 = vector.shape_cast %194 : vector<1x8x32xf32> to vector<8x32xf32>
      %196 = vector.broadcast %193 : vector<8x1xf32> to vector<8x32xf32>
      %197 = arith.mulf %195, %196 : vector<8x32xf32>
      %198 = tpu.concatenate %176, %183, %190, %197 in 1 : vector<8x32xf32>, vector<8x32xf32>, vector<8x32xf32>, vector<8x32xf32> -> vector<8x128xf32>
      %199 = arith.truncf %198 : vector<8x128xf32> to vector<8x128xbf16>
      %c0_123 = arith.constant 0 : index
      %c0_124 = arith.constant 0 : index
      %c0_125 = arith.constant 0 : index
      %200 = vector.load %arg7[%c0_123, %c0_124, %c0_125] : memref<1x8x128xbf16, #tpu.memory_space<vmem>>, vector<1x8x128xbf16>
      %201 = vector.shape_cast %200 : vector<1x8x128xbf16> to vector<8x128xbf16>
      %202 = vector.shape_cast %199 : vector<8x128xbf16> to vector<1x8x128xbf16>
      tpu.vector_store %arg7[%c0_123, %c0_124, %c0_125], %202 {strides = array<i32>} : memref<1x8x128xbf16, #tpu.memory_space<vmem>>, vector<1x8x128xbf16>,
    } else {
    }
    return
  }
  func.func @transform_0(%arg0: i32, %arg1: i32, %arg2: i32) -> (i32, i32, i32) {
    %c0_i32 = arith.constant 0 : i32
    %c0_i32_0 = arith.constant 0 : i32
    return %arg0, %arg1, %c0_i32 : i32, i32, i32
  }
  func.func @transform_1(%arg0: i32, %arg1: i32, %arg2: i32) -> (i32, i32, i32) {
    %c1_i32 = arith.constant 1 : i32
    %c0_i32 = arith.constant 0 : i32
    return %arg0, %arg2, %c1_i32 : i32, i32, i32
  }
  func.func @transform_2(%arg0: i32, %arg1: i32, %arg2: i32) -> (i32, i32, i32) {
    %c2_i32 = arith.constant 2 : i32
    %c0_i32 = arith.constant 0 : i32
    return %arg0, %arg2, %c2_i32 : i32, i32, i32
  }
  func.func @transform_3(%arg0: i32, %arg1: i32, %arg2: i32) -> (i32, i32, i32) {
    %c0_i32 = arith.constant 0 : i32
    %c0_i32_0 = arith.constant 0 : i32
    return %arg0, %c0_i32, %arg2 : i32, i32, i32
  }
  func.func @transform_4(%arg0: i32, %arg1: i32, %arg2: i32) -> (i32, i32, i32) {
    %c0_i32 = arith.constant 0 : i32
    %c0_i32_0 = arith.constant 0 : i32
    return %arg0, %arg1, %c0_i32 : i32, i32, i32
  }
}

module attributes {stable_mosaic.version = 11 : i64} {
  func.func @_matmul_res_ln_kernel(%arg0: i32, %arg1: i32, %arg2: memref<16x128xbf16, #tpu.memory_space<vmem>>, %arg3: memref<128x128xbf16, #tpu.memory_space<vmem>>, %arg4: memref<1x128xf32, #tpu.memory_space<vmem>>, %arg5: memref<16x128xbf16, #tpu.memory_space<vmem>>, %arg6: memref<1x128xf32, #tpu.memory_space<vmem>>, %arg7: memref<1x128xf32, #tpu.memory_space<vmem>>, %arg8: memref<16x128xbf16, #tpu.memory_space<vmem>>, %arg9: memref<16x128xf32, #tpu.memory_space<vmem>>) attributes {dimension_semantics = [#tpu.dimension_semantics<parallel>, #tpu.dimension_semantics<arbitrary>], iteration_bounds = array<i64: 1, 1>, scalar_prefetch = 0 : i64, scratch_operands = 1 : i64, tpu.core_type = #tpu.core_type<tc>, window_params = [{transform_indices = @transform_0, window_bounds = array<i64: 16, 128>}, {transform_indices = @transform_1, window_bounds = array<i64: 128, 128>}, {pipeline_mode = #tpu.pipeline_mode<synchronous>, transform_indices = @transform_2, window_bounds = array<i64: 1, 128>}, {transform_indices = @transform_3, window_bounds = array<i64: 16, 128>}, {pipeline_mode = #tpu.pipeline_mode<synchronous>, transform_indices = @transform_4, window_bounds = array<i64: 1, 128>}, {pipeline_mode = #tpu.pipeline_mode<synchronous>, transform_indices = @transform_5, window_bounds = array<i64: 1, 128>}, {transform_indices = @transform_6, window_bounds = array<i64: 16, 128>}]} {
    %c0_i32 = arith.constant 0 : i32
    %0 = arith.cmpi eq, %arg1, %c0_i32 : i32
    %1 = arith.extui %0 : i1 to i32
    %c0_i32_0 = arith.constant 0 : i32
    %2 = arith.cmpi ne, %1, %c0_i32_0 : i32
    scf.if %2 {
      %cst_10 = arith.constant 0.000000e+00 : f32
      %12 = vector.broadcast %cst_10 : f32 to vector<16x128xf32>
      %c0_11 = arith.constant 0 : index
      %c0_12 = arith.constant 0 : index
      %13 = vector.load %arg9[%c0_11, %c0_12] : memref<16x128xf32, #tpu.memory_space<vmem>>, vector<16x128xf32>
      tpu.vector_store %arg9[%c0_11, %c0_12], %12 {strides = array<i32>} : memref<16x128xf32, #tpu.memory_space<vmem>>, vector<16x128xf32>,
    } else {
    }
    %c0 = arith.constant 0 : index
    %c0_1 = arith.constant 0 : index
    %3 = vector.load %arg9[%c0, %c0_1] : memref<16x128xf32, #tpu.memory_space<vmem>>, vector<16x128xf32>
    %c0_2 = arith.constant 0 : index
    %c0_3 = arith.constant 0 : index
    %4 = vector.load %arg2[%c0_2, %c0_3] : memref<16x128xbf16, #tpu.memory_space<vmem>>, vector<16x128xbf16>
    %c0_4 = arith.constant 0 : index
    %c0_5 = arith.constant 0 : index
    %5 = vector.load %arg3[%c0_4, %c0_5] : memref<128x128xbf16, #tpu.memory_space<vmem>>, vector<128x128xbf16>
    %cst = arith.constant dense<0.000000e+00> : vector<16x128xf32>
    %6 = tpu.matmul %4, %5, %cst {dimension_numbers = #tpu.dot_dimension_numbers<[1], [0], [0], [1], [0, 0, 1, 1], [], []>} : vector<16x128xbf16>, vector<128x128xbf16>, vector<16x128xf32> -> vector<16x128xf32>
    %7 = arith.addf %3, %6 : vector<16x128xf32>
    %c0_6 = arith.constant 0 : index
    %c0_7 = arith.constant 0 : index
    %8 = vector.load %arg9[%c0_6, %c0_7] : memref<16x128xf32, #tpu.memory_space<vmem>>, vector<16x128xf32>
    tpu.vector_store %arg9[%c0_6, %c0_7], %7 {strides = array<i32>} : memref<16x128xf32, #tpu.memory_space<vmem>>, vector<16x128xf32>,
    %c0_i32_8 = arith.constant 0 : i32
    %9 = arith.cmpi eq, %arg1, %c0_i32_8 : i32
    %10 = arith.extui %9 : i1 to i32
    %c0_i32_9 = arith.constant 0 : i32
    %11 = arith.cmpi ne, %10, %c0_i32_9 : i32
    scf.if %11 {
      %c0_10 = arith.constant 0 : index
      %c0_11 = arith.constant 0 : index
      %12 = vector.load %arg9[%c0_10, %c0_11] : memref<16x128xf32, #tpu.memory_space<vmem>>, vector<16x128xf32>
      %c0_12 = arith.constant 0 : index
      %c0_13 = arith.constant 0 : index
      %13 = vector.load %arg4[%c0_12, %c0_13] : memref<1x128xf32, #tpu.memory_space<vmem>>, vector<1x128xf32>
      %14 = vector.broadcast %13 : vector<1x128xf32> to vector<16x128xf32>
      %15 = arith.addf %12, %14 : vector<16x128xf32>
      %c0_14 = arith.constant 0 : index
      %c0_15 = arith.constant 0 : index
      %16 = vector.load %arg5[%c0_14, %c0_15] : memref<16x128xbf16, #tpu.memory_space<vmem>>, vector<16x128xbf16>
      %17 = arith.extf %16 : vector<16x128xbf16> to vector<16x128xf32>
      %18 = arith.addf %15, %17 : vector<16x128xf32>
      %cst_16 = arith.constant dense<0.000000e+00> : vector<16xf32>
      %19 = vector.multi_reduction <add>, %18, %cst_16 [1] : vector<16x128xf32> to vector<16xf32>
      %20 = vector.shape_cast %19 : vector<16xf32> to vector<16x1xf32>
      %cst_17 = arith.constant 1.280000e+02 : f32
      %21 = vector.broadcast %cst_17 : f32 to vector<16x1xf32>
      %22 = arith.divf %20, %21 : vector<16x1xf32>
      %23 = vector.broadcast %22 : vector<16x1xf32> to vector<16x128xf32>
      %24 = arith.subf %18, %23 : vector<16x128xf32>
      %25 = arith.mulf %24, %24 : vector<16x128xf32>
      %cst_18 = arith.constant dense<0.000000e+00> : vector<16xf32>
      %26 = vector.multi_reduction <add>, %25, %cst_18 [1] : vector<16x128xf32> to vector<16xf32>
      %27 = vector.shape_cast %26 : vector<16xf32> to vector<16x1xf32>
      %cst_19 = arith.constant 1.280000e+02 : f32
      %28 = vector.broadcast %cst_19 : f32 to vector<16x1xf32>
      %29 = arith.divf %27, %28 : vector<16x1xf32>
      %30 = vector.broadcast %22 : vector<16x1xf32> to vector<16x128xf32>
      %31 = arith.subf %18, %30 : vector<16x128xf32>
      %cst_20 = arith.constant 9.99999996E-13 : f32
      %32 = vector.broadcast %cst_20 : f32 to vector<16x1xf32>
      %33 = arith.addf %29, %32 : vector<16x1xf32>
      %34 = math.rsqrt %33 : vector<16x1xf32>
      %35 = vector.broadcast %34 : vector<16x1xf32> to vector<16x128xf32>
      %36 = arith.mulf %31, %35 : vector<16x128xf32>
      %c0_21 = arith.constant 0 : index
      %c0_22 = arith.constant 0 : index
      %37 = vector.load %arg6[%c0_21, %c0_22] : memref<1x128xf32, #tpu.memory_space<vmem>>, vector<1x128xf32>
      %38 = vector.broadcast %37 : vector<1x128xf32> to vector<16x128xf32>
      %39 = arith.mulf %36, %38 : vector<16x128xf32>
      %c0_23 = arith.constant 0 : index
      %c0_24 = arith.constant 0 : index
      %40 = vector.load %arg7[%c0_23, %c0_24] : memref<1x128xf32, #tpu.memory_space<vmem>>, vector<1x128xf32>
      %41 = vector.broadcast %40 : vector<1x128xf32> to vector<16x128xf32>
      %42 = arith.addf %39, %41 : vector<16x128xf32>
      %43 = arith.truncf %42 : vector<16x128xf32> to vector<16x128xbf16>
      %c0_25 = arith.constant 0 : index
      %c0_26 = arith.constant 0 : index
      %44 = vector.load %arg8[%c0_25, %c0_26] : memref<16x128xbf16, #tpu.memory_space<vmem>>, vector<16x128xbf16>
      tpu.vector_store %arg8[%c0_25, %c0_26], %43 {strides = array<i32>} : memref<16x128xbf16, #tpu.memory_space<vmem>>, vector<16x128xbf16>,
    } else {
    }
    return
  }
  func.func @transform_0(%arg0: i32, %arg1: i32) -> (i32, i32) {
    %c0_i32 = arith.constant 0 : i32
    return %arg0, %arg1 : i32, i32
  }
  func.func @transform_1(%arg0: i32, %arg1: i32) -> (i32, i32) {
    %c0_i32 = arith.constant 0 : i32
    %c0_i32_0 = arith.constant 0 : i32
    return %arg1, %c0_i32 : i32, i32
  }
  func.func @transform_2(%arg0: i32, %arg1: i32) -> (i32, i32) {
    %c0_i32 = arith.constant 0 : i32
    %c0_i32_0 = arith.constant 0 : i32
    %c0_i32_1 = arith.constant 0 : i32
    return %c0_i32, %c0_i32_0 : i32, i32
  }
  func.func @transform_3(%arg0: i32, %arg1: i32) -> (i32, i32) {
    %c0_i32 = arith.constant 0 : i32
    %c0_i32_0 = arith.constant 0 : i32
    return %arg0, %c0_i32 : i32, i32
  }
  func.func @transform_4(%arg0: i32, %arg1: i32) -> (i32, i32) {
    %c0_i32 = arith.constant 0 : i32
    %c0_i32_0 = arith.constant 0 : i32
    %c0_i32_1 = arith.constant 0 : i32
    return %c0_i32, %c0_i32_0 : i32, i32
  }
  func.func @transform_5(%arg0: i32, %arg1: i32) -> (i32, i32) {
    %c0_i32 = arith.constant 0 : i32
    %c0_i32_0 = arith.constant 0 : i32
    %c0_i32_1 = arith.constant 0 : i32
    return %c0_i32, %c0_i32_0 : i32, i32
  }
  func.func @transform_6(%arg0: i32, %arg1: i32) -> (i32, i32) {
    %c0_i32 = arith.constant 0 : i32
    %c0_i32_0 = arith.constant 0 : i32
    return %arg0, %c0_i32 : i32, i32
  }
}

module attributes {stable_mosaic.version = 11 : i64} {
  func.func @_matmul_bias_kernel(%arg0: i32, %arg1: i32, %arg2: i32, %arg3: memref<32x128xbf16, #tpu.memory_space<vmem>>, %arg4: memref<128x256xbf16, #tpu.memory_space<vmem>>, %arg5: memref<1x256xf32, #tpu.memory_space<vmem>>, %arg6: memref<32x256xbf16, #tpu.memory_space<vmem>>, %arg7: memref<32x256xf32, #tpu.memory_space<vmem>>) attributes {dimension_semantics = [#tpu.dimension_semantics<parallel>, #tpu.dimension_semantics<parallel>, #tpu.dimension_semantics<arbitrary>], iteration_bounds = array<i64: 1, 1, 1>, scalar_prefetch = 0 : i64, scratch_operands = 1 : i64, tpu.core_type = #tpu.core_type<tc>, window_params = [{transform_indices = @transform_0, window_bounds = array<i64: 32, 128>}, {transform_indices = @transform_1, window_bounds = array<i64: 128, 256>}, {transform_indices = @transform_2, window_bounds = array<i64: 1, 256>}, {transform_indices = @transform_3, window_bounds = array<i64: 32, 256>}]} {
    %c0_i32 = arith.constant 0 : i32
    %0 = arith.cmpi eq, %arg2, %c0_i32 : i32
    %1 = arith.extui %0 : i1 to i32
    %c0_i32_0 = arith.constant 0 : i32
    %2 = arith.cmpi ne, %1, %c0_i32_0 : i32
    scf.if %2 {
      %cst_10 = arith.constant 0.000000e+00 : f32
      %12 = vector.broadcast %cst_10 : f32 to vector<32x256xf32>
      %c0_11 = arith.constant 0 : index
      %c0_12 = arith.constant 0 : index
      %13 = vector.load %arg7[%c0_11, %c0_12] : memref<32x256xf32, #tpu.memory_space<vmem>>, vector<32x256xf32>
      tpu.vector_store %arg7[%c0_11, %c0_12], %12 {strides = array<i32>} : memref<32x256xf32, #tpu.memory_space<vmem>>, vector<32x256xf32>,
    } else {
    }
    %c0 = arith.constant 0 : index
    %c0_1 = arith.constant 0 : index
    %3 = vector.load %arg7[%c0, %c0_1] : memref<32x256xf32, #tpu.memory_space<vmem>>, vector<32x256xf32>
    %c0_2 = arith.constant 0 : index
    %c0_3 = arith.constant 0 : index
    %4 = vector.load %arg3[%c0_2, %c0_3] : memref<32x128xbf16, #tpu.memory_space<vmem>>, vector<32x128xbf16>
    %c0_4 = arith.constant 0 : index
    %c0_5 = arith.constant 0 : index
    %5 = vector.load %arg4[%c0_4, %c0_5] : memref<128x256xbf16, #tpu.memory_space<vmem>>, vector<128x256xbf16>
    %cst = arith.constant dense<0.000000e+00> : vector<32x256xf32>
    %6 = tpu.matmul %4, %5, %cst {dimension_numbers = #tpu.dot_dimension_numbers<[1], [0], [0], [1], [0, 0, 1, 1], [], []>} : vector<32x128xbf16>, vector<128x256xbf16>, vector<32x256xf32> -> vector<32x256xf32>
    %7 = arith.addf %3, %6 : vector<32x256xf32>
    %c0_6 = arith.constant 0 : index
    %c0_7 = arith.constant 0 : index
    %8 = vector.load %arg7[%c0_6, %c0_7] : memref<32x256xf32, #tpu.memory_space<vmem>>, vector<32x256xf32>
    tpu.vector_store %arg7[%c0_6, %c0_7], %7 {strides = array<i32>} : memref<32x256xf32, #tpu.memory_space<vmem>>, vector<32x256xf32>,
    %c0_i32_8 = arith.constant 0 : i32
    %9 = arith.cmpi eq, %arg2, %c0_i32_8 : i32
    %10 = arith.extui %9 : i1 to i32
    %c0_i32_9 = arith.constant 0 : i32
    %11 = arith.cmpi ne, %10, %c0_i32_9 : i32
    scf.if %11 {
      %c0_10 = arith.constant 0 : index
      %c0_11 = arith.constant 0 : index
      %12 = vector.load %arg7[%c0_10, %c0_11] : memref<32x256xf32, #tpu.memory_space<vmem>>, vector<32x256xf32>
      %c0_12 = arith.constant 0 : index
      %c0_13 = arith.constant 0 : index
      %13 = vector.load %arg5[%c0_12, %c0_13] : memref<1x256xf32, #tpu.memory_space<vmem>>, vector<1x256xf32>
      %14 = vector.broadcast %13 : vector<1x256xf32> to vector<32x256xf32>
      %15 = arith.addf %12, %14 : vector<32x256xf32>
      %16 = arith.truncf %15 : vector<32x256xf32> to vector<32x256xbf16>
      %c0_14 = arith.constant 0 : index
      %c0_15 = arith.constant 0 : index
      %17 = vector.load %arg6[%c0_14, %c0_15] : memref<32x256xbf16, #tpu.memory_space<vmem>>, vector<32x256xbf16>
      tpu.vector_store %arg6[%c0_14, %c0_15], %16 {strides = array<i32>} : memref<32x256xbf16, #tpu.memory_space<vmem>>, vector<32x256xbf16>,
    } else {
    }
    return
  }
  func.func @transform_0(%arg0: i32, %arg1: i32, %arg2: i32) -> (i32, i32) {
    %c0_i32 = arith.constant 0 : i32
    return %arg0, %arg2 : i32, i32
  }
  func.func @transform_1(%arg0: i32, %arg1: i32, %arg2: i32) -> (i32, i32) {
    %c0_i32 = arith.constant 0 : i32
    return %arg2, %arg1 : i32, i32
  }
  func.func @transform_2(%arg0: i32, %arg1: i32, %arg2: i32) -> (i32, i32) {
    %c0_i32 = arith.constant 0 : i32
    %c0_i32_0 = arith.constant 0 : i32
    return %c0_i32, %arg1 : i32, i32
  }
  func.func @transform_3(%arg0: i32, %arg1: i32, %arg2: i32) -> (i32, i32) {
    %c0_i32 = arith.constant 0 : i32
    return %arg0, %arg1 : i32, i32
  }
}

module attributes {stable_mosaic.version = 11 : i64} {
  func.func @_flash_attention_kernel(%arg0: i32, %arg1: i32, %arg2: i32, %arg3: memref<1x8x128xbf16, #tpu.memory_space<vmem>>, %arg4: memref<1x16x128xbf16, #tpu.memory_space<vmem>>, %arg5: memref<1x16x128xbf16, #tpu.memory_space<vmem>>, %arg6: memref<1x1x16xf32, #tpu.memory_space<vmem>>, %arg7: memref<1x8x128xbf16, #tpu.memory_space<vmem>>, %arg8: memref<4x8x32xf32, #tpu.memory_space<vmem>>, %arg9: memref<4x8x1xf32, #tpu.memory_space<vmem>>, %arg10: memref<4x8x1xf32, #tpu.memory_space<vmem>>) attributes {dimension_semantics = [#tpu.dimension_semantics<parallel>, #tpu.dimension_semantics<parallel>, #tpu.dimension_semantics<arbitrary>], iteration_bounds = array<i64: 2, 1, 1>, scalar_prefetch = 0 : i64, scratch_operands = 3 : i64, tpu.core_type = #tpu.core_type<tc>, window_params = [{transform_indices = @transform_0, window_bounds = array<i64: 1, 8, 128>}, {transform_indices = @transform_1, window_bounds = array<i64: 1, 16, 128>}, {transform_indices = @transform_2, window_bounds = array<i64: 1, 16, 128>}, {transform_indices = @transform_3, window_bounds = array<i64: 1, 1, 16>}, {transform_indices = @transform_4, window_bounds = array<i64: 1, 8, 128>}]} {
    %c0_i32 = arith.constant 0 : i32
    %0 = arith.cmpi eq, %arg2, %c0_i32 : i32
    %1 = arith.extui %0 : i1 to i32
    %c0_i32_0 = arith.constant 0 : i32
    %2 = arith.cmpi ne, %1, %c0_i32_0 : i32
    scf.if %2 {
      %cst_99 = arith.constant 0.000000e+00 : f32
      %170 = vector.broadcast %cst_99 : f32 to vector<4x8x32xf32>
      %c0_100 = arith.constant 0 : index
      %c0_101 = arith.constant 0 : index
      %c0_102 = arith.constant 0 : index
      %171 = vector.load %arg8[%c0_100, %c0_101, %c0_102] : memref<4x8x32xf32, #tpu.memory_space<vmem>>, vector<4x8x32xf32>
      tpu.vector_store %arg8[%c0_100, %c0_101, %c0_102], %170 {strides = array<i32>} : memref<4x8x32xf32, #tpu.memory_space<vmem>>, vector<4x8x32xf32>,
      %cst_103 = arith.constant -1.000000e+30 : f32
      %172 = vector.broadcast %cst_103 : f32 to vector<4x8x1xf32>
      %c0_104 = arith.constant 0 : index
      %c0_105 = arith.constant 0 : index
      %c0_106 = arith.constant 0 : index
      %173 = vector.load %arg9[%c0_104, %c0_105, %c0_106] : memref<4x8x1xf32, #tpu.memory_space<vmem>>, vector<4x8x1xf32>
      tpu.vector_store %arg9[%c0_104, %c0_105, %c0_106], %172 {strides = array<i32>} : memref<4x8x1xf32, #tpu.memory_space<vmem>>, vector<4x8x1xf32>,
      %cst_107 = arith.constant 0.000000e+00 : f32
      %174 = vector.broadcast %cst_107 : f32 to vector<4x8x1xf32>
      %c0_108 = arith.constant 0 : index
      %c0_109 = arith.constant 0 : index
      %c0_110 = arith.constant 0 : index
      %175 = vector.load %arg10[%c0_108, %c0_109, %c0_110] : memref<4x8x1xf32, #tpu.memory_space<vmem>>, vector<4x8x1xf32>
      tpu.vector_store %arg10[%c0_108, %c0_109, %c0_110], %174 {strides = array<i32>} : memref<4x8x1xf32, #tpu.memory_space<vmem>>, vector<4x8x1xf32>,
    } else {
    }
    %c0 = arith.constant 0 : index
    %c0_1 = arith.constant 0 : index
    %c0_2 = arith.constant 0 : index
    %3 = vector.load %arg3[%c0, %c0_1, %c0_2] : memref<1x8x128xbf16, #tpu.memory_space<vmem>>, vector<1x8x128xbf16>
    %4 = vector.shape_cast %3 : vector<1x8x128xbf16> to vector<8x128xbf16>
    %5 = arith.extf %4 : vector<8x128xbf16> to vector<8x128xf32>
    %cst = arith.constant 0.176776692 : f32
    %6 = vector.broadcast %cst : f32 to vector<8x128xf32>
    %7 = arith.mulf %5, %6 : vector<8x128xf32>
    %8 = arith.truncf %7 : vector<8x128xf32> to vector<8x128xbf16>
    %c0_3 = arith.constant 0 : index
    %c0_4 = arith.constant 0 : index
    %c0_5 = arith.constant 0 : index
    %9 = vector.load %arg4[%c0_3, %c0_4, %c0_5] : memref<1x16x128xbf16, #tpu.memory_space<vmem>>, vector<1x16x128xbf16>
    %10 = vector.shape_cast %9 : vector<1x16x128xbf16> to vector<16x128xbf16>
    %c0_6 = arith.constant 0 : index
    %c0_7 = arith.constant 0 : index
    %c0_8 = arith.constant 0 : index
    %11 = vector.load %arg5[%c0_6, %c0_7, %c0_8] : memref<1x16x128xbf16, #tpu.memory_space<vmem>>, vector<1x16x128xbf16>
    %12 = vector.shape_cast %11 : vector<1x16x128xbf16> to vector<16x128xbf16>
    %c0_9 = arith.constant 0 : index
    %c0_10 = arith.constant 0 : index
    %c0_11 = arith.constant 0 : index
    %13 = vector.load %arg6[%c0_9, %c0_10, %c0_11] : memref<1x1x16xf32, #tpu.memory_space<vmem>>, vector<1x1x16xf32>
    %14 = vector.shape_cast %13 : vector<1x1x16xf32> to vector<1x16xf32>
    %15 = vector.extract_strided_slice %8 {offsets = [0, 0], sizes = [8, 32], strides = [1, 1]} : vector<8x128xbf16> to vector<8x32xbf16>
    %16 = vector.extract_strided_slice %10 {offsets = [0, 0], sizes = [16, 32], strides = [1, 1]} : vector<16x128xbf16> to vector<16x32xbf16>
    %17 = vector.extract_strided_slice %12 {offsets = [0, 0], sizes = [16, 32], strides = [1, 1]} : vector<16x128xbf16> to vector<16x32xbf16>
    %cst_12 = arith.constant dense<0.000000e+00> : vector<8x16xf32>
    %18 = tpu.matmul %15, %16, %cst_12 {dimension_numbers = #tpu.dot_dimension_numbers<[1], [1], [0], [0], [0, 0, 1, 0], [], []>} : vector<8x32xbf16>, vector<16x32xbf16>, vector<8x16xf32> -> vector<8x16xf32>
    %19 = vector.broadcast %14 : vector<1x16xf32> to vector<8x16xf32>
    %20 = arith.addf %18, %19 : vector<8x16xf32>
    %c0_13 = arith.constant 0 : index
    %c0_14 = arith.constant 0 : index
    %c0_15 = arith.constant 0 : index
    %21 = vector.load %arg9[%c0_13, %c0_14, %c0_15] : memref<4x8x1xf32, #tpu.memory_space<vmem>>, vector<1x8x1xf32>
    %22 = vector.shape_cast %21 : vector<1x8x1xf32> to vector<8x1xf32>
    %cst_16 = arith.constant dense<0xFF800000> : vector<8xf32>
    %23 = vector.multi_reduction <maximumf>, %20, %cst_16 [1] : vector<8x16xf32> to vector<8xf32>
    %24 = vector.shape_cast %23 : vector<8xf32> to vector<8x1xf32>
    %25 = arith.maximumf %22, %24 : vector<8x1xf32>
    %26 = arith.subf %22, %25 : vector<8x1xf32>
    %27 = math.exp %26 : vector<8x1xf32>
    %28 = vector.broadcast %25 : vector<8x1xf32> to vector<8x16xf32>
    %29 = arith.subf %20, %28 : vector<8x16xf32>
    %30 = math.exp %29 : vector<8x16xf32>
    %c0_17 = arith.constant 0 : index
    %c0_18 = arith.constant 0 : index
    %c0_19 = arith.constant 0 : index
    %31 = vector.load %arg10[%c0_17, %c0_18, %c0_19] : memref<4x8x1xf32, #tpu.memory_space<vmem>>, vector<1x8x1xf32>
    %32 = vector.shape_cast %31 : vector<1x8x1xf32> to vector<8x1xf32>
    %33 = arith.mulf %27, %32 : vector<8x1xf32>
    %cst_20 = arith.constant dense<0.000000e+00> : vector<8xf32>
    %34 = vector.multi_reduction <add>, %30, %cst_20 [1] : vector<8x16xf32> to vector<8xf32>
    %35 = vector.shape_cast %34 : vector<8xf32> to vector<8x1xf32>
    %36 = arith.addf %33, %35 : vector<8x1xf32>
    %c0_21 = arith.constant 0 : index
    %c0_22 = arith.constant 0 : index
    %c0_23 = arith.constant 0 : index
    %37 = vector.load %arg10[%c0_21, %c0_22, %c0_23] : memref<4x8x1xf32, #tpu.memory_space<vmem>>, vector<1x8x1xf32>
    %38 = vector.shape_cast %37 : vector<1x8x1xf32> to vector<8x1xf32>
    %39 = vector.shape_cast %36 : vector<8x1xf32> to vector<1x8x1xf32>
    tpu.vector_store %arg10[%c0_21, %c0_22, %c0_23], %39 {strides = array<i32>} : memref<4x8x1xf32, #tpu.memory_space<vmem>>, vector<1x8x1xf32>,
    %c0_24 = arith.constant 0 : index
    %c0_25 = arith.constant 0 : index
    %c0_26 = arith.constant 0 : index
    %40 = vector.load %arg8[%c0_24, %c0_25, %c0_26] : memref<4x8x32xf32, #tpu.memory_space<vmem>>, vector<1x8x32xf32>
    %41 = vector.shape_cast %40 : vector<1x8x32xf32> to vector<8x32xf32>
    %42 = vector.broadcast %27 : vector<8x1xf32> to vector<8x32xf32>
    %43 = arith.mulf %42, %41 : vector<8x32xf32>
    %44 = arith.truncf %30 : vector<8x16xf32> to vector<8x16xbf16>
    %cst_27 = arith.constant dense<0.000000e+00> : vector<8x32xf32>
    %45 = tpu.matmul %44, %17, %cst_27 {dimension_numbers = #tpu.dot_dimension_numbers<[1], [0], [0], [1], [0, 0, 1, 1], [], []>} : vector<8x16xbf16>, vector<16x32xbf16>, vector<8x32xf32> -> vector<8x32xf32>
    %46 = arith.addf %43, %45 : vector<8x32xf32>
    %c0_28 = arith.constant 0 : index
    %c0_29 = arith.constant 0 : index
    %c0_30 = arith.constant 0 : index
    %47 = vector.load %arg8[%c0_28, %c0_29, %c0_30] : memref<4x8x32xf32, #tpu.memory_space<vmem>>, vector<1x8x32xf32>
    %48 = vector.shape_cast %47 : vector<1x8x32xf32> to vector<8x32xf32>
    %49 = vector.shape_cast %46 : vector<8x32xf32> to vector<1x8x32xf32>
    tpu.vector_store %arg8[%c0_28, %c0_29, %c0_30], %49 {strides = array<i32>} : memref<4x8x32xf32, #tpu.memory_space<vmem>>, vector<1x8x32xf32>,
    %c0_31 = arith.constant 0 : index
    %c0_32 = arith.constant 0 : index
    %c0_33 = arith.constant 0 : index
    %50 = vector.load %arg9[%c0_31, %c0_32, %c0_33] : memref<4x8x1xf32, #tpu.memory_space<vmem>>, vector<1x8x1xf32>
    %51 = vector.shape_cast %50 : vector<1x8x1xf32> to vector<8x1xf32>
    %52 = vector.shape_cast %25 : vector<8x1xf32> to vector<1x8x1xf32>
    tpu.vector_store %arg9[%c0_31, %c0_32, %c0_33], %52 {strides = array<i32>} : memref<4x8x1xf32, #tpu.memory_space<vmem>>, vector<1x8x1xf32>,
    %53 = vector.extract_strided_slice %8 {offsets = [0, 32], sizes = [8, 32], strides = [1, 1]} : vector<8x128xbf16> to vector<8x32xbf16>
    %54 = vector.extract_strided_slice %10 {offsets = [0, 32], sizes = [16, 32], strides = [1, 1]} : vector<16x128xbf16> to vector<16x32xbf16>
    %55 = vector.extract_strided_slice %12 {offsets = [0, 32], sizes = [16, 32], strides = [1, 1]} : vector<16x128xbf16> to vector<16x32xbf16>
    %cst_34 = arith.constant dense<0.000000e+00> : vector<8x16xf32>
    %56 = tpu.matmul %53, %54, %cst_34 {dimension_numbers = #tpu.dot_dimension_numbers<[1], [1], [0], [0], [0, 0, 1, 0], [], []>} : vector<8x32xbf16>, vector<16x32xbf16>, vector<8x16xf32> -> vector<8x16xf32>
    %57 = vector.broadcast %14 : vector<1x16xf32> to vector<8x16xf32>
    %58 = arith.addf %56, %57 : vector<8x16xf32>
    %c1 = arith.constant 1 : index
    %c0_35 = arith.constant 0 : index
    %c0_36 = arith.constant 0 : index
    %59 = vector.load %arg9[%c1, %c0_35, %c0_36] : memref<4x8x1xf32, #tpu.memory_space<vmem>>, vector<1x8x1xf32>
    %60 = vector.shape_cast %59 : vector<1x8x1xf32> to vector<8x1xf32>
    %cst_37 = arith.constant dense<0xFF800000> : vector<8xf32>
    %61 = vector.multi_reduction <maximumf>, %58, %cst_37 [1] : vector<8x16xf32> to vector<8xf32>
    %62 = vector.shape_cast %61 : vector<8xf32> to vector<8x1xf32>
    %63 = arith.maximumf %60, %62 : vector<8x1xf32>
    %64 = arith.subf %60, %63 : vector<8x1xf32>
    %65 = math.exp %64 : vector<8x1xf32>
    %66 = vector.broadcast %63 : vector<8x1xf32> to vector<8x16xf32>
    %67 = arith.subf %58, %66 : vector<8x16xf32>
    %68 = math.exp %67 : vector<8x16xf32>
    %c1_38 = arith.constant 1 : index
    %c0_39 = arith.constant 0 : index
    %c0_40 = arith.constant 0 : index
    %69 = vector.load %arg10[%c1_38, %c0_39, %c0_40] : memref<4x8x1xf32, #tpu.memory_space<vmem>>, vector<1x8x1xf32>
    %70 = vector.shape_cast %69 : vector<1x8x1xf32> to vector<8x1xf32>
    %71 = arith.mulf %65, %70 : vector<8x1xf32>
    %cst_41 = arith.constant dense<0.000000e+00> : vector<8xf32>
    %72 = vector.multi_reduction <add>, %68, %cst_41 [1] : vector<8x16xf32> to vector<8xf32>
    %73 = vector.shape_cast %72 : vector<8xf32> to vector<8x1xf32>
    %74 = arith.addf %71, %73 : vector<8x1xf32>
    %c1_42 = arith.constant 1 : index
    %c0_43 = arith.constant 0 : index
    %c0_44 = arith.constant 0 : index
    %75 = vector.load %arg10[%c1_42, %c0_43, %c0_44] : memref<4x8x1xf32, #tpu.memory_space<vmem>>, vector<1x8x1xf32>
    %76 = vector.shape_cast %75 : vector<1x8x1xf32> to vector<8x1xf32>
    %77 = vector.shape_cast %74 : vector<8x1xf32> to vector<1x8x1xf32>
    tpu.vector_store %arg10[%c1_42, %c0_43, %c0_44], %77 {strides = array<i32>} : memref<4x8x1xf32, #tpu.memory_space<vmem>>, vector<1x8x1xf32>,
    %c1_45 = arith.constant 1 : index
    %c0_46 = arith.constant 0 : index
    %c0_47 = arith.constant 0 : index
    %78 = vector.load %arg8[%c1_45, %c0_46, %c0_47] : memref<4x8x32xf32, #tpu.memory_space<vmem>>, vector<1x8x32xf32>
    %79 = vector.shape_cast %78 : vector<1x8x32xf32> to vector<8x32xf32>
    %80 = vector.broadcast %65 : vector<8x1xf32> to vector<8x32xf32>
    %81 = arith.mulf %80, %79 : vector<8x32xf32>
    %82 = arith.truncf %68 : vector<8x16xf32> to vector<8x16xbf16>
    %cst_48 = arith.constant dense<0.000000e+00> : vector<8x32xf32>
    %83 = tpu.matmul %82, %55, %cst_48 {dimension_numbers = #tpu.dot_dimension_numbers<[1], [0], [0], [1], [0, 0, 1, 1], [], []>} : vector<8x16xbf16>, vector<16x32xbf16>, vector<8x32xf32> -> vector<8x32xf32>
    %84 = arith.addf %81, %83 : vector<8x32xf32>
    %c1_49 = arith.constant 1 : index
    %c0_50 = arith.constant 0 : index
    %c0_51 = arith.constant 0 : index
    %85 = vector.load %arg8[%c1_49, %c0_50, %c0_51] : memref<4x8x32xf32, #tpu.memory_space<vmem>>, vector<1x8x32xf32>
    %86 = vector.shape_cast %85 : vector<1x8x32xf32> to vector<8x32xf32>
    %87 = vector.shape_cast %84 : vector<8x32xf32> to vector<1x8x32xf32>
    tpu.vector_store %arg8[%c1_49, %c0_50, %c0_51], %87 {strides = array<i32>} : memref<4x8x32xf32, #tpu.memory_space<vmem>>, vector<1x8x32xf32>,
    %c1_52 = arith.constant 1 : index
    %c0_53 = arith.constant 0 : index
    %c0_54 = arith.constant 0 : index
    %88 = vector.load %arg9[%c1_52, %c0_53, %c0_54] : memref<4x8x1xf32, #tpu.memory_space<vmem>>, vector<1x8x1xf32>
    %89 = vector.shape_cast %88 : vector<1x8x1xf32> to vector<8x1xf32>
    %90 = vector.shape_cast %63 : vector<8x1xf32> to vector<1x8x1xf32>
    tpu.vector_store %arg9[%c1_52, %c0_53, %c0_54], %90 {strides = array<i32>} : memref<4x8x1xf32, #tpu.memory_space<vmem>>, vector<1x8x1xf32>,
    %91 = vector.extract_strided_slice %8 {offsets = [0, 64], sizes = [8, 32], strides = [1, 1]} : vector<8x128xbf16> to vector<8x32xbf16>
    %92 = vector.extract_strided_slice %10 {offsets = [0, 64], sizes = [16, 32], strides = [1, 1]} : vector<16x128xbf16> to vector<16x32xbf16>
    %93 = vector.extract_strided_slice %12 {offsets = [0, 64], sizes = [16, 32], strides = [1, 1]} : vector<16x128xbf16> to vector<16x32xbf16>
    %cst_55 = arith.constant dense<0.000000e+00> : vector<8x16xf32>
    %94 = tpu.matmul %91, %92, %cst_55 {dimension_numbers = #tpu.dot_dimension_numbers<[1], [1], [0], [0], [0, 0, 1, 0], [], []>} : vector<8x32xbf16>, vector<16x32xbf16>, vector<8x16xf32> -> vector<8x16xf32>
    %95 = vector.broadcast %14 : vector<1x16xf32> to vector<8x16xf32>
    %96 = arith.addf %94, %95 : vector<8x16xf32>
    %c2 = arith.constant 2 : index
    %c0_56 = arith.constant 0 : index
    %c0_57 = arith.constant 0 : index
    %97 = vector.load %arg9[%c2, %c0_56, %c0_57] : memref<4x8x1xf32, #tpu.memory_space<vmem>>, vector<1x8x1xf32>
    %98 = vector.shape_cast %97 : vector<1x8x1xf32> to vector<8x1xf32>
    %cst_58 = arith.constant dense<0xFF800000> : vector<8xf32>
    %99 = vector.multi_reduction <maximumf>, %96, %cst_58 [1] : vector<8x16xf32> to vector<8xf32>
    %100 = vector.shape_cast %99 : vector<8xf32> to vector<8x1xf32>
    %101 = arith.maximumf %98, %100 : vector<8x1xf32>
    %102 = arith.subf %98, %101 : vector<8x1xf32>
    %103 = math.exp %102 : vector<8x1xf32>
    %104 = vector.broadcast %101 : vector<8x1xf32> to vector<8x16xf32>
    %105 = arith.subf %96, %104 : vector<8x16xf32>
    %106 = math.exp %105 : vector<8x16xf32>
    %c2_59 = arith.constant 2 : index
    %c0_60 = arith.constant 0 : index
    %c0_61 = arith.constant 0 : index
    %107 = vector.load %arg10[%c2_59, %c0_60, %c0_61] : memref<4x8x1xf32, #tpu.memory_space<vmem>>, vector<1x8x1xf32>
    %108 = vector.shape_cast %107 : vector<1x8x1xf32> to vector<8x1xf32>
    %109 = arith.mulf %103, %108 : vector<8x1xf32>
    %cst_62 = arith.constant dense<0.000000e+00> : vector<8xf32>
    %110 = vector.multi_reduction <add>, %106, %cst_62 [1] : vector<8x16xf32> to vector<8xf32>
    %111 = vector.shape_cast %110 : vector<8xf32> to vector<8x1xf32>
    %112 = arith.addf %109, %111 : vector<8x1xf32>
    %c2_63 = arith.constant 2 : index
    %c0_64 = arith.constant 0 : index
    %c0_65 = arith.constant 0 : index
    %113 = vector.load %arg10[%c2_63, %c0_64, %c0_65] : memref<4x8x1xf32, #tpu.memory_space<vmem>>, vector<1x8x1xf32>
    %114 = vector.shape_cast %113 : vector<1x8x1xf32> to vector<8x1xf32>
    %115 = vector.shape_cast %112 : vector<8x1xf32> to vector<1x8x1xf32>
    tpu.vector_store %arg10[%c2_63, %c0_64, %c0_65], %115 {strides = array<i32>} : memref<4x8x1xf32, #tpu.memory_space<vmem>>, vector<1x8x1xf32>,
    %c2_66 = arith.constant 2 : index
    %c0_67 = arith.constant 0 : index
    %c0_68 = arith.constant 0 : index
    %116 = vector.load %arg8[%c2_66, %c0_67, %c0_68] : memref<4x8x32xf32, #tpu.memory_space<vmem>>, vector<1x8x32xf32>
    %117 = vector.shape_cast %116 : vector<1x8x32xf32> to vector<8x32xf32>
    %118 = vector.broadcast %103 : vector<8x1xf32> to vector<8x32xf32>
    %119 = arith.mulf %118, %117 : vector<8x32xf32>
    %120 = arith.truncf %106 : vector<8x16xf32> to vector<8x16xbf16>
    %cst_69 = arith.constant dense<0.000000e+00> : vector<8x32xf32>
    %121 = tpu.matmul %120, %93, %cst_69 {dimension_numbers = #tpu.dot_dimension_numbers<[1], [0], [0], [1], [0, 0, 1, 1], [], []>} : vector<8x16xbf16>, vector<16x32xbf16>, vector<8x32xf32> -> vector<8x32xf32>
    %122 = arith.addf %119, %121 : vector<8x32xf32>
    %c2_70 = arith.constant 2 : index
    %c0_71 = arith.constant 0 : index
    %c0_72 = arith.constant 0 : index
    %123 = vector.load %arg8[%c2_70, %c0_71, %c0_72] : memref<4x8x32xf32, #tpu.memory_space<vmem>>, vector<1x8x32xf32>
    %124 = vector.shape_cast %123 : vector<1x8x32xf32> to vector<8x32xf32>
    %125 = vector.shape_cast %122 : vector<8x32xf32> to vector<1x8x32xf32>
    tpu.vector_store %arg8[%c2_70, %c0_71, %c0_72], %125 {strides = array<i32>} : memref<4x8x32xf32, #tpu.memory_space<vmem>>, vector<1x8x32xf32>,
    %c2_73 = arith.constant 2 : index
    %c0_74 = arith.constant 0 : index
    %c0_75 = arith.constant 0 : index
    %126 = vector.load %arg9[%c2_73, %c0_74, %c0_75] : memref<4x8x1xf32, #tpu.memory_space<vmem>>, vector<1x8x1xf32>
    %127 = vector.shape_cast %126 : vector<1x8x1xf32> to vector<8x1xf32>
    %128 = vector.shape_cast %101 : vector<8x1xf32> to vector<1x8x1xf32>
    tpu.vector_store %arg9[%c2_73, %c0_74, %c0_75], %128 {strides = array<i32>} : memref<4x8x1xf32, #tpu.memory_space<vmem>>, vector<1x8x1xf32>,
    %129 = vector.extract_strided_slice %8 {offsets = [0, 96], sizes = [8, 32], strides = [1, 1]} : vector<8x128xbf16> to vector<8x32xbf16>
    %130 = vector.extract_strided_slice %10 {offsets = [0, 96], sizes = [16, 32], strides = [1, 1]} : vector<16x128xbf16> to vector<16x32xbf16>
    %131 = vector.extract_strided_slice %12 {offsets = [0, 96], sizes = [16, 32], strides = [1, 1]} : vector<16x128xbf16> to vector<16x32xbf16>
    %cst_76 = arith.constant dense<0.000000e+00> : vector<8x16xf32>
    %132 = tpu.matmul %129, %130, %cst_76 {dimension_numbers = #tpu.dot_dimension_numbers<[1], [1], [0], [0], [0, 0, 1, 0], [], []>} : vector<8x32xbf16>, vector<16x32xbf16>, vector<8x16xf32> -> vector<8x16xf32>
    %133 = vector.broadcast %14 : vector<1x16xf32> to vector<8x16xf32>
    %134 = arith.addf %132, %133 : vector<8x16xf32>
    %c3 = arith.constant 3 : index
    %c0_77 = arith.constant 0 : index
    %c0_78 = arith.constant 0 : index
    %135 = vector.load %arg9[%c3, %c0_77, %c0_78] : memref<4x8x1xf32, #tpu.memory_space<vmem>>, vector<1x8x1xf32>
    %136 = vector.shape_cast %135 : vector<1x8x1xf32> to vector<8x1xf32>
    %cst_79 = arith.constant dense<0xFF800000> : vector<8xf32>
    %137 = vector.multi_reduction <maximumf>, %134, %cst_79 [1] : vector<8x16xf32> to vector<8xf32>
    %138 = vector.shape_cast %137 : vector<8xf32> to vector<8x1xf32>
    %139 = arith.maximumf %136, %138 : vector<8x1xf32>
    %140 = arith.subf %136, %139 : vector<8x1xf32>
    %141 = math.exp %140 : vector<8x1xf32>
    %142 = vector.broadcast %139 : vector<8x1xf32> to vector<8x16xf32>
    %143 = arith.subf %134, %142 : vector<8x16xf32>
    %144 = math.exp %143 : vector<8x16xf32>
    %c3_80 = arith.constant 3 : index
    %c0_81 = arith.constant 0 : index
    %c0_82 = arith.constant 0 : index
    %145 = vector.load %arg10[%c3_80, %c0_81, %c0_82] : memref<4x8x1xf32, #tpu.memory_space<vmem>>, vector<1x8x1xf32>
    %146 = vector.shape_cast %145 : vector<1x8x1xf32> to vector<8x1xf32>
    %147 = arith.mulf %141, %146 : vector<8x1xf32>
    %cst_83 = arith.constant dense<0.000000e+00> : vector<8xf32>
    %148 = vector.multi_reduction <add>, %144, %cst_83 [1] : vector<8x16xf32> to vector<8xf32>
    %149 = vector.shape_cast %148 : vector<8xf32> to vector<8x1xf32>
    %150 = arith.addf %147, %149 : vector<8x1xf32>
    %c3_84 = arith.constant 3 : index
    %c0_85 = arith.constant 0 : index
    %c0_86 = arith.constant 0 : index
    %151 = vector.load %arg10[%c3_84, %c0_85, %c0_86] : memref<4x8x1xf32, #tpu.memory_space<vmem>>, vector<1x8x1xf32>
    %152 = vector.shape_cast %151 : vector<1x8x1xf32> to vector<8x1xf32>
    %153 = vector.shape_cast %150 : vector<8x1xf32> to vector<1x8x1xf32>
    tpu.vector_store %arg10[%c3_84, %c0_85, %c0_86], %153 {strides = array<i32>} : memref<4x8x1xf32, #tpu.memory_space<vmem>>, vector<1x8x1xf32>,
    %c3_87 = arith.constant 3 : index
    %c0_88 = arith.constant 0 : index
    %c0_89 = arith.constant 0 : index
    %154 = vector.load %arg8[%c3_87, %c0_88, %c0_89] : memref<4x8x32xf32, #tpu.memory_space<vmem>>, vector<1x8x32xf32>
    %155 = vector.shape_cast %154 : vector<1x8x32xf32> to vector<8x32xf32>
    %156 = vector.broadcast %141 : vector<8x1xf32> to vector<8x32xf32>
    %157 = arith.mulf %156, %155 : vector<8x32xf32>
    %158 = arith.truncf %144 : vector<8x16xf32> to vector<8x16xbf16>
    %cst_90 = arith.constant dense<0.000000e+00> : vector<8x32xf32>
    %159 = tpu.matmul %158, %131, %cst_90 {dimension_numbers = #tpu.dot_dimension_numbers<[1], [0], [0], [1], [0, 0, 1, 1], [], []>} : vector<8x16xbf16>, vector<16x32xbf16>, vector<8x32xf32> -> vector<8x32xf32>
    %160 = arith.addf %157, %159 : vector<8x32xf32>
    %c3_91 = arith.constant 3 : index
    %c0_92 = arith.constant 0 : index
    %c0_93 = arith.constant 0 : index
    %161 = vector.load %arg8[%c3_91, %c0_92, %c0_93] : memref<4x8x32xf32, #tpu.memory_space<vmem>>, vector<1x8x32xf32>
    %162 = vector.shape_cast %161 : vector<1x8x32xf32> to vector<8x32xf32>
    %163 = vector.shape_cast %160 : vector<8x32xf32> to vector<1x8x32xf32>
    tpu.vector_store %arg8[%c3_91, %c0_92, %c0_93], %163 {strides = array<i32>} : memref<4x8x32xf32, #tpu.memory_space<vmem>>, vector<1x8x32xf32>,
    %c3_94 = arith.constant 3 : index
    %c0_95 = arith.constant 0 : index
    %c0_96 = arith.constant 0 : index
    %164 = vector.load %arg9[%c3_94, %c0_95, %c0_96] : memref<4x8x1xf32, #tpu.memory_space<vmem>>, vector<1x8x1xf32>
    %165 = vector.shape_cast %164 : vector<1x8x1xf32> to vector<8x1xf32>
    %166 = vector.shape_cast %139 : vector<8x1xf32> to vector<1x8x1xf32>
    tpu.vector_store %arg9[%c3_94, %c0_95, %c0_96], %166 {strides = array<i32>} : memref<4x8x1xf32, #tpu.memory_space<vmem>>, vector<1x8x1xf32>,
    %c0_i32_97 = arith.constant 0 : i32
    %167 = arith.cmpi eq, %arg2, %c0_i32_97 : i32
    %168 = arith.extui %167 : i1 to i32
    %c0_i32_98 = arith.constant 0 : i32
    %169 = arith.cmpi ne, %168, %c0_i32_98 : i32
    scf.if %169 {
      %c0_99 = arith.constant 0 : index
      %c0_100 = arith.constant 0 : index
      %c0_101 = arith.constant 0 : index
      %170 = vector.load %arg10[%c0_99, %c0_100, %c0_101] : memref<4x8x1xf32, #tpu.memory_space<vmem>>, vector<1x8x1xf32>
      %171 = vector.shape_cast %170 : vector<1x8x1xf32> to vector<8x1xf32>
      %172 = tpu.reciprocal %171 {approx = true} : vector<8x1xf32> -> vector<8x1xf32>
      %c0_102 = arith.constant 0 : index
      %c0_103 = arith.constant 0 : index
      %c0_104 = arith.constant 0 : index
      %173 = vector.load %arg8[%c0_102, %c0_103, %c0_104] : memref<4x8x32xf32, #tpu.memory_space<vmem>>, vector<1x8x32xf32>
      %174 = vector.shape_cast %173 : vector<1x8x32xf32> to vector<8x32xf32>
      %175 = vector.broadcast %172 : vector<8x1xf32> to vector<8x32xf32>
      %176 = arith.mulf %174, %175 : vector<8x32xf32>
      %c1_105 = arith.constant 1 : index
      %c0_106 = arith.constant 0 : index
      %c0_107 = arith.constant 0 : index
      %177 = vector.load %arg10[%c1_105, %c0_106, %c0_107] : memref<4x8x1xf32, #tpu.memory_space<vmem>>, vector<1x8x1xf32>
      %178 = vector.shape_cast %177 : vector<1x8x1xf32> to vector<8x1xf32>
      %179 = tpu.reciprocal %178 {approx = true} : vector<8x1xf32> -> vector<8x1xf32>
      %c1_108 = arith.constant 1 : index
      %c0_109 = arith.constant 0 : index
      %c0_110 = arith.constant 0 : index
      %180 = vector.load %arg8[%c1_108, %c0_109, %c0_110] : memref<4x8x32xf32, #tpu.memory_space<vmem>>, vector<1x8x32xf32>
      %181 = vector.shape_cast %180 : vector<1x8x32xf32> to vector<8x32xf32>
      %182 = vector.broadcast %179 : vector<8x1xf32> to vector<8x32xf32>
      %183 = arith.mulf %181, %182 : vector<8x32xf32>
      %c2_111 = arith.constant 2 : index
      %c0_112 = arith.constant 0 : index
      %c0_113 = arith.constant 0 : index
      %184 = vector.load %arg10[%c2_111, %c0_112, %c0_113] : memref<4x8x1xf32, #tpu.memory_space<vmem>>, vector<1x8x1xf32>
      %185 = vector.shape_cast %184 : vector<1x8x1xf32> to vector<8x1xf32>
      %186 = tpu.reciprocal %185 {approx = true} : vector<8x1xf32> -> vector<8x1xf32>
      %c2_114 = arith.constant 2 : index
      %c0_115 = arith.constant 0 : index
      %c0_116 = arith.constant 0 : index
      %187 = vector.load %arg8[%c2_114, %c0_115, %c0_116] : memref<4x8x32xf32, #tpu.memory_space<vmem>>, vector<1x8x32xf32>
      %188 = vector.shape_cast %187 : vector<1x8x32xf32> to vector<8x32xf32>
      %189 = vector.broadcast %186 : vector<8x1xf32> to vector<8x32xf32>
      %190 = arith.mulf %188, %189 : vector<8x32xf32>
      %c3_117 = arith.constant 3 : index
      %c0_118 = arith.constant 0 : index
      %c0_119 = arith.constant 0 : index
      %191 = vector.load %arg10[%c3_117, %c0_118, %c0_119] : memref<4x8x1xf32, #tpu.memory_space<vmem>>, vector<1x8x1xf32>
      %192 = vector.shape_cast %191 : vector<1x8x1xf32> to vector<8x1xf32>
      %193 = tpu.reciprocal %192 {approx = true} : vector<8x1xf32> -> vector<8x1xf32>
      %c3_120 = arith.constant 3 : index
      %c0_121 = arith.constant 0 : index
      %c0_122 = arith.constant 0 : index
      %194 = vector.load %arg8[%c3_120, %c0_121, %c0_122] : memref<4x8x32xf32, #tpu.memory_space<vmem>>, vector<1x8x32xf32>
      %195 = vector.shape_cast %194 : vector<1x8x32xf32> to vector<8x32xf32>
      %196 = vector.broadcast %193 : vector<8x1xf32> to vector<8x32xf32>
      %197 = arith.mulf %195, %196 : vector<8x32xf32>
      %198 = tpu.concatenate %176, %183, %190, %197 in 1 : vector<8x32xf32>, vector<8x32xf32>, vector<8x32xf32>, vector<8x32xf32> -> vector<8x128xf32>
      %199 = arith.truncf %198 : vector<8x128xf32> to vector<8x128xbf16>
      %c0_123 = arith.constant 0 : index
      %c0_124 = arith.constant 0 : index
      %c0_125 = arith.constant 0 : index
      %200 = vector.load %arg7[%c0_123, %c0_124, %c0_125] : memref<1x8x128xbf16, #tpu.memory_space<vmem>>, vector<1x8x128xbf16>
      %201 = vector.shape_cast %200 : vector<1x8x128xbf16> to vector<8x128xbf16>
      %202 = vector.shape_cast %199 : vector<8x128xbf16> to vector<1x8x128xbf16>
      tpu.vector_store %arg7[%c0_123, %c0_124, %c0_125], %202 {strides = array<i32>} : memref<1x8x128xbf16, #tpu.memory_space<vmem>>, vector<1x8x128xbf16>,
    } else {
    }
    return
  }
  func.func @transform_0(%arg0: i32, %arg1: i32, %arg2: i32) -> (i32, i32, i32) {
    %c0_i32 = arith.constant 0 : i32
    %c0_i32_0 = arith.constant 0 : i32
    return %arg0, %arg1, %c0_i32 : i32, i32, i32
  }
  func.func @transform_1(%arg0: i32, %arg1: i32, %arg2: i32) -> (i32, i32, i32) {
    %c0_i32 = arith.constant 0 : i32
    %c0_i32_0 = arith.constant 0 : i32
    return %arg0, %arg2, %c0_i32 : i32, i32, i32
  }
  func.func @transform_2(%arg0: i32, %arg1: i32, %arg2: i32) -> (i32, i32, i32) {
    %c1_i32 = arith.constant 1 : i32
    %c0_i32 = arith.constant 0 : i32
    return %arg0, %arg2, %c1_i32 : i32, i32, i32
  }
  func.func @transform_3(%arg0: i32, %arg1: i32, %arg2: i32) -> (i32, i32, i32) {
    %c0_i32 = arith.constant 0 : i32
    %c0_i32_0 = arith.constant 0 : i32
    return %arg0, %c0_i32, %arg2 : i32, i32, i32
  }
  func.func @transform_4(%arg0: i32, %arg1: i32, %arg2: i32) -> (i32, i32, i32) {
    %c0_i32 = arith.constant 0 : i32
    %c0_i32_0 = arith.constant 0 : i32
    return %arg0, %arg1, %c0_i32 : i32, i32, i32
  }
}

module attributes {stable_mosaic.version = 11 : i64} {
  func.func @_matmul_bias_kernel(%arg0: i32, %arg1: i32, %arg2: i32, %arg3: memref<16x128xbf16, #tpu.memory_space<vmem>>, %arg4: memref<128x512xbf16, #tpu.memory_space<vmem>>, %arg5: memref<1x512xf32, #tpu.memory_space<vmem>>, %arg6: memref<16x512xbf16, #tpu.memory_space<vmem>>, %arg7: memref<16x512xf32, #tpu.memory_space<vmem>>) attributes {dimension_semantics = [#tpu.dimension_semantics<parallel>, #tpu.dimension_semantics<parallel>, #tpu.dimension_semantics<arbitrary>], iteration_bounds = array<i64: 1, 1, 1>, scalar_prefetch = 0 : i64, scratch_operands = 1 : i64, tpu.core_type = #tpu.core_type<tc>, window_params = [{transform_indices = @transform_0, window_bounds = array<i64: 16, 128>}, {transform_indices = @transform_1, window_bounds = array<i64: 128, 512>}, {transform_indices = @transform_2, window_bounds = array<i64: 1, 512>}, {transform_indices = @transform_3, window_bounds = array<i64: 16, 512>}]} {
    %c0_i32 = arith.constant 0 : i32
    %0 = arith.cmpi eq, %arg2, %c0_i32 : i32
    %1 = arith.extui %0 : i1 to i32
    %c0_i32_0 = arith.constant 0 : i32
    %2 = arith.cmpi ne, %1, %c0_i32_0 : i32
    scf.if %2 {
      %cst_10 = arith.constant 0.000000e+00 : f32
      %12 = vector.broadcast %cst_10 : f32 to vector<16x512xf32>
      %c0_11 = arith.constant 0 : index
      %c0_12 = arith.constant 0 : index
      %13 = vector.load %arg7[%c0_11, %c0_12] : memref<16x512xf32, #tpu.memory_space<vmem>>, vector<16x512xf32>
      tpu.vector_store %arg7[%c0_11, %c0_12], %12 {strides = array<i32>} : memref<16x512xf32, #tpu.memory_space<vmem>>, vector<16x512xf32>,
    } else {
    }
    %c0 = arith.constant 0 : index
    %c0_1 = arith.constant 0 : index
    %3 = vector.load %arg7[%c0, %c0_1] : memref<16x512xf32, #tpu.memory_space<vmem>>, vector<16x512xf32>
    %c0_2 = arith.constant 0 : index
    %c0_3 = arith.constant 0 : index
    %4 = vector.load %arg3[%c0_2, %c0_3] : memref<16x128xbf16, #tpu.memory_space<vmem>>, vector<16x128xbf16>
    %c0_4 = arith.constant 0 : index
    %c0_5 = arith.constant 0 : index
    %5 = vector.load %arg4[%c0_4, %c0_5] : memref<128x512xbf16, #tpu.memory_space<vmem>>, vector<128x512xbf16>
    %cst = arith.constant dense<0.000000e+00> : vector<16x512xf32>
    %6 = tpu.matmul %4, %5, %cst {dimension_numbers = #tpu.dot_dimension_numbers<[1], [0], [0], [1], [0, 0, 1, 1], [], []>} : vector<16x128xbf16>, vector<128x512xbf16>, vector<16x512xf32> -> vector<16x512xf32>
    %7 = arith.addf %3, %6 : vector<16x512xf32>
    %c0_6 = arith.constant 0 : index
    %c0_7 = arith.constant 0 : index
    %8 = vector.load %arg7[%c0_6, %c0_7] : memref<16x512xf32, #tpu.memory_space<vmem>>, vector<16x512xf32>
    tpu.vector_store %arg7[%c0_6, %c0_7], %7 {strides = array<i32>} : memref<16x512xf32, #tpu.memory_space<vmem>>, vector<16x512xf32>,
    %c0_i32_8 = arith.constant 0 : i32
    %9 = arith.cmpi eq, %arg2, %c0_i32_8 : i32
    %10 = arith.extui %9 : i1 to i32
    %c0_i32_9 = arith.constant 0 : i32
    %11 = arith.cmpi ne, %10, %c0_i32_9 : i32
    scf.if %11 {
      %c0_10 = arith.constant 0 : index
      %c0_11 = arith.constant 0 : index
      %12 = vector.load %arg7[%c0_10, %c0_11] : memref<16x512xf32, #tpu.memory_space<vmem>>, vector<16x512xf32>
      %c0_12 = arith.constant 0 : index
      %c0_13 = arith.constant 0 : index
      %13 = vector.load %arg5[%c0_12, %c0_13] : memref<1x512xf32, #tpu.memory_space<vmem>>, vector<1x512xf32>
      %14 = vector.broadcast %13 : vector<1x512xf32> to vector<16x512xf32>
      %15 = arith.addf %12, %14 : vector<16x512xf32>
      %cst_14 = arith.constant 5.000000e-01 : f32
      %16 = vector.broadcast %cst_14 : f32 to vector<16x512xf32>
      %17 = arith.mulf %16, %15 : vector<16x512xf32>
      %cst_15 = arith.constant 4.471500e-02 : f32
      %18 = vector.broadcast %cst_15 : f32 to vector<16x512xf32>
      %19 = arith.mulf %18, %15 : vector<16x512xf32>
      %20 = arith.mulf %19, %15 : vector<16x512xf32>
      %21 = arith.mulf %20, %15 : vector<16x512xf32>
      %22 = arith.addf %15, %21 : vector<16x512xf32>
      %cst_16 = arith.constant 0.797884583 : f32
      %23 = vector.broadcast %cst_16 : f32 to vector<16x512xf32>
      %24 = arith.mulf %23, %22 : vector<16x512xf32>
      %25 = math.tanh %24 : vector<16x512xf32>
      %cst_17 = arith.constant 1.000000e+00 : f32
      %26 = vector.broadcast %cst_17 : f32 to vector<16x512xf32>
      %27 = arith.addf %26, %25 : vector<16x512xf32>
      %28 = arith.mulf %17, %27 : vector<16x512xf32>
      %29 = arith.truncf %28 : vector<16x512xf32> to vector<16x512xbf16>
      %c0_18 = arith.constant 0 : index
      %c0_19 = arith.constant 0 : index
      %30 = vector.load %arg6[%c0_18, %c0_19] : memref<16x512xbf16, #tpu.memory_space<vmem>>, vector<16x512xbf16>
      tpu.vector_store %arg6[%c0_18, %c0_19], %29 {strides = array<i32>} : memref<16x512xbf16, #tpu.memory_space<vmem>>, vector<16x512xbf16>,
    } else {
    }
    return
  }
  func.func @transform_0(%arg0: i32, %arg1: i32, %arg2: i32) -> (i32, i32) {
    %c0_i32 = arith.constant 0 : i32
    return %arg0, %arg2 : i32, i32
  }
  func.func @transform_1(%arg0: i32, %arg1: i32, %arg2: i32) -> (i32, i32) {
    %c0_i32 = arith.constant 0 : i32
    return %arg2, %arg1 : i32, i32
  }
  func.func @transform_2(%arg0: i32, %arg1: i32, %arg2: i32) -> (i32, i32) {
    %c0_i32 = arith.constant 0 : i32
    %c0_i32_0 = arith.constant 0 : i32
    return %c0_i32, %arg1 : i32, i32
  }
  func.func @transform_3(%arg0: i32, %arg1: i32, %arg2: i32) -> (i32, i32) {
    %c0_i32 = arith.constant 0 : i32
    return %arg0, %arg1 : i32, i32
  }
}

module attributes {stable_mosaic.version = 11 : i64} {
  func.func @_matmul_res_ln_kernel(%arg0: i32, %arg1: i32, %arg2: memref<16x512xbf16, #tpu.memory_space<vmem>>, %arg3: memref<512x128xbf16, #tpu.memory_space<vmem>>, %arg4: memref<1x128xf32, #tpu.memory_space<vmem>>, %arg5: memref<16x128xbf16, #tpu.memory_space<vmem>>, %arg6: memref<1x128xf32, #tpu.memory_space<vmem>>, %arg7: memref<1x128xf32, #tpu.memory_space<vmem>>, %arg8: memref<16x128xf32, #tpu.memory_space<vmem>>, %arg9: memref<16x128xf32, #tpu.memory_space<vmem>>) attributes {dimension_semantics = [#tpu.dimension_semantics<parallel>, #tpu.dimension_semantics<arbitrary>], iteration_bounds = array<i64: 1, 1>, scalar_prefetch = 0 : i64, scratch_operands = 1 : i64, tpu.core_type = #tpu.core_type<tc>, window_params = [{transform_indices = @transform_0, window_bounds = array<i64: 16, 512>}, {transform_indices = @transform_1, window_bounds = array<i64: 512, 128>}, {pipeline_mode = #tpu.pipeline_mode<synchronous>, transform_indices = @transform_2, window_bounds = array<i64: 1, 128>}, {transform_indices = @transform_3, window_bounds = array<i64: 16, 128>}, {pipeline_mode = #tpu.pipeline_mode<synchronous>, transform_indices = @transform_4, window_bounds = array<i64: 1, 128>}, {pipeline_mode = #tpu.pipeline_mode<synchronous>, transform_indices = @transform_5, window_bounds = array<i64: 1, 128>}, {transform_indices = @transform_6, window_bounds = array<i64: 16, 128>}]} {
    %c0_i32 = arith.constant 0 : i32
    %0 = arith.cmpi eq, %arg1, %c0_i32 : i32
    %1 = arith.extui %0 : i1 to i32
    %c0_i32_0 = arith.constant 0 : i32
    %2 = arith.cmpi ne, %1, %c0_i32_0 : i32
    scf.if %2 {
      %cst_10 = arith.constant 0.000000e+00 : f32
      %12 = vector.broadcast %cst_10 : f32 to vector<16x128xf32>
      %c0_11 = arith.constant 0 : index
      %c0_12 = arith.constant 0 : index
      %13 = vector.load %arg9[%c0_11, %c0_12] : memref<16x128xf32, #tpu.memory_space<vmem>>, vector<16x128xf32>
      tpu.vector_store %arg9[%c0_11, %c0_12], %12 {strides = array<i32>} : memref<16x128xf32, #tpu.memory_space<vmem>>, vector<16x128xf32>,
    } else {
    }
    %c0 = arith.constant 0 : index
    %c0_1 = arith.constant 0 : index
    %3 = vector.load %arg9[%c0, %c0_1] : memref<16x128xf32, #tpu.memory_space<vmem>>, vector<16x128xf32>
    %c0_2 = arith.constant 0 : index
    %c0_3 = arith.constant 0 : index
    %4 = vector.load %arg2[%c0_2, %c0_3] : memref<16x512xbf16, #tpu.memory_space<vmem>>, vector<16x512xbf16>
    %c0_4 = arith.constant 0 : index
    %c0_5 = arith.constant 0 : index
    %5 = vector.load %arg3[%c0_4, %c0_5] : memref<512x128xbf16, #tpu.memory_space<vmem>>, vector<512x128xbf16>
    %cst = arith.constant dense<0.000000e+00> : vector<16x128xf32>
    %6 = tpu.matmul %4, %5, %cst {dimension_numbers = #tpu.dot_dimension_numbers<[1], [0], [0], [1], [0, 0, 1, 1], [], []>} : vector<16x512xbf16>, vector<512x128xbf16>, vector<16x128xf32> -> vector<16x128xf32>
    %7 = arith.addf %3, %6 : vector<16x128xf32>
    %c0_6 = arith.constant 0 : index
    %c0_7 = arith.constant 0 : index
    %8 = vector.load %arg9[%c0_6, %c0_7] : memref<16x128xf32, #tpu.memory_space<vmem>>, vector<16x128xf32>
    tpu.vector_store %arg9[%c0_6, %c0_7], %7 {strides = array<i32>} : memref<16x128xf32, #tpu.memory_space<vmem>>, vector<16x128xf32>,
    %c0_i32_8 = arith.constant 0 : i32
    %9 = arith.cmpi eq, %arg1, %c0_i32_8 : i32
    %10 = arith.extui %9 : i1 to i32
    %c0_i32_9 = arith.constant 0 : i32
    %11 = arith.cmpi ne, %10, %c0_i32_9 : i32
    scf.if %11 {
      %c0_10 = arith.constant 0 : index
      %c0_11 = arith.constant 0 : index
      %12 = vector.load %arg9[%c0_10, %c0_11] : memref<16x128xf32, #tpu.memory_space<vmem>>, vector<16x128xf32>
      %c0_12 = arith.constant 0 : index
      %c0_13 = arith.constant 0 : index
      %13 = vector.load %arg4[%c0_12, %c0_13] : memref<1x128xf32, #tpu.memory_space<vmem>>, vector<1x128xf32>
      %14 = vector.broadcast %13 : vector<1x128xf32> to vector<16x128xf32>
      %15 = arith.addf %12, %14 : vector<16x128xf32>
      %c0_14 = arith.constant 0 : index
      %c0_15 = arith.constant 0 : index
      %16 = vector.load %arg5[%c0_14, %c0_15] : memref<16x128xbf16, #tpu.memory_space<vmem>>, vector<16x128xbf16>
      %17 = arith.extf %16 : vector<16x128xbf16> to vector<16x128xf32>
      %18 = arith.addf %15, %17 : vector<16x128xf32>
      %cst_16 = arith.constant dense<0.000000e+00> : vector<16xf32>
      %19 = vector.multi_reduction <add>, %18, %cst_16 [1] : vector<16x128xf32> to vector<16xf32>
      %20 = vector.shape_cast %19 : vector<16xf32> to vector<16x1xf32>
      %cst_17 = arith.constant 1.280000e+02 : f32
      %21 = vector.broadcast %cst_17 : f32 to vector<16x1xf32>
      %22 = arith.divf %20, %21 : vector<16x1xf32>
      %23 = vector.broadcast %22 : vector<16x1xf32> to vector<16x128xf32>
      %24 = arith.subf %18, %23 : vector<16x128xf32>
      %25 = arith.mulf %24, %24 : vector<16x128xf32>
      %cst_18 = arith.constant dense<0.000000e+00> : vector<16xf32>
      %26 = vector.multi_reduction <add>, %25, %cst_18 [1] : vector<16x128xf32> to vector<16xf32>
      %27 = vector.shape_cast %26 : vector<16xf32> to vector<16x1xf32>
      %cst_19 = arith.constant 1.280000e+02 : f32
      %28 = vector.broadcast %cst_19 : f32 to vector<16x1xf32>
      %29 = arith.divf %27, %28 : vector<16x1xf32>
      %30 = vector.broadcast %22 : vector<16x1xf32> to vector<16x128xf32>
      %31 = arith.subf %18, %30 : vector<16x128xf32>
      %cst_20 = arith.constant 9.99999996E-13 : f32
      %32 = vector.broadcast %cst_20 : f32 to vector<16x1xf32>
      %33 = arith.addf %29, %32 : vector<16x1xf32>
      %34 = math.rsqrt %33 : vector<16x1xf32>
      %35 = vector.broadcast %34 : vector<16x1xf32> to vector<16x128xf32>
      %36 = arith.mulf %31, %35 : vector<16x128xf32>
      %c0_21 = arith.constant 0 : index
      %c0_22 = arith.constant 0 : index
      %37 = vector.load %arg6[%c0_21, %c0_22] : memref<1x128xf32, #tpu.memory_space<vmem>>, vector<1x128xf32>
      %38 = vector.broadcast %37 : vector<1x128xf32> to vector<16x128xf32>
      %39 = arith.mulf %36, %38 : vector<16x128xf32>
      %c0_23 = arith.constant 0 : index
      %c0_24 = arith.constant 0 : index
      %40 = vector.load %arg7[%c0_23, %c0_24] : memref<1x128xf32, #tpu.memory_space<vmem>>, vector<1x128xf32>
      %41 = vector.broadcast %40 : vector<1x128xf32> to vector<16x128xf32>
      %42 = arith.addf %39, %41 : vector<16x128xf32>
      %c0_25 = arith.constant 0 : index
      %c0_26 = arith.constant 0 : index
      %43 = vector.load %arg8[%c0_25, %c0_26] : memref<16x128xf32, #tpu.memory_space<vmem>>, vector<16x128xf32>
      tpu.vector_store %arg8[%c0_25, %c0_26], %42 {strides = array<i32>} : memref<16x128xf32, #tpu.memory_space<vmem>>, vector<16x128xf32>,
    } else {
    }
    return
  }
  func.func @transform_0(%arg0: i32, %arg1: i32) -> (i32, i32) {
    %c0_i32 = arith.constant 0 : i32
    return %arg0, %arg1 : i32, i32
  }
  func.func @transform_1(%arg0: i32, %arg1: i32) -> (i32, i32) {
    %c0_i32 = arith.constant 0 : i32
    %c0_i32_0 = arith.constant 0 : i32
    return %arg1, %c0_i32 : i32, i32
  }
  func.func @transform_2(%arg0: i32, %arg1: i32) -> (i32, i32) {
    %c0_i32 = arith.constant 0 : i32
    %c0_i32_0 = arith.constant 0 : i32
    %c0_i32_1 = arith.constant 0 : i32
    return %c0_i32, %c0_i32_0 : i32, i32
  }
  func.func @transform_3(%arg0: i32, %arg1: i32) -> (i32, i32) {
    %c0_i32 = arith.constant 0 : i32
    %c0_i32_0 = arith.constant 0 : i32
    return %arg0, %c0_i32 : i32, i32
  }
  func.func @transform_4(%arg0: i32, %arg1: i32) -> (i32, i32) {
    %c0_i32 = arith.constant 0 : i32
    %c0_i32_0 = arith.constant 0 : i32
    %c0_i32_1 = arith.constant 0 : i32
    return %c0_i32, %c0_i32_0 : i32, i32
  }
  func.func @transform_5(%arg0: i32, %arg1: i32) -> (i32, i32) {
    %c0_i32 = arith.constant 0 : i32
    %c0_i32_0 = arith.constant 0 : i32
    %c0_i32_1 = arith.constant 0 : i32
    return %c0_i32, %c0_i32_0 : i32, i32
  }
  func.func @transform_6(%arg0: i32, %arg1: i32) -> (i32, i32) {
    %c0_i32 = arith.constant 0 : i32
    %c0_i32_0 = arith.constant 0 : i32
    return %arg0, %c0_i32 : i32, i32
  }
}

</mosaic_0001>

<bundles_post_ra>
// kernel: bert_cross_layer.9
= control target key start
LH: loop header
LB: loop body
LE: loop exit
PB: predicated region body
PF: predicated region fallthrough
CT: control target
= control target key end

     0   :  { %8 = vsyncpa [#allocation4], 0  ;;  %s458_s15 = smov [#allocation3]   ;;  %s459_s17 = smov 192   ;;  %s502_s0 = inlined_call_operand.vmem [shape: bf16[16,128], index: 0, kind: input, shape index: {}]   ;;  %s503_s1 = inlined_call_operand.hbm [shape: bf16[128,384], index: 1, kind: input, shape index: {}]   ;;  %s504_s2 = inlined_call_operand.vmem [shape: f32[1,384], index: 2, kind: input, shape index: {}]   ;;  %s505_s3 = inlined_call_operand.vmem [shape: bf16[16,384], index: 3, kind: output, shape index: {}]  }
   0x1   :  { %s15_s14 = sshll.u32 %s503_s1, 4  ;;  %s17_s16 = sshll.u32 %s458_s15, 4  ;;  %s16_s14 = int_to_ptr.hbm [resolvable:$true] %s15_s14  ;;  %s18_s16 = int_to_ptr.vmem [resolvable:$true] %s17_s16 }
   0x2   :  { %s460_s18 = smov 12  }
   0x3   :  { %23 = dma.hbm_to_vmem [thread:$0]  %s16_s14, 3072, %s18_s16, [#allocation4], %s459_s17, %s459_s17, %s460_s18  }
   0x4   :  { %456 = dma.done.wait [#allocation4], 3072  }
   0x5   :  { %457 = vsyncadd [#allocation4], 4294964224  ;;  %v394_v0 = vld [vmem:[#allocation3 + $0xa8] sm:$0xf]  ;;  %v427_v1 = vld [vmem:[#allocation3 + $0xb0] sm:$0xf0] }
   0x6   :  { %v426_v2 = vld [vmem:[#allocation3 + $0xac] sm:$0xf]  ;;  %v395_v3 = vor.u32 %v427_v1, %v394_v0  ;;  %v396_v4 = vld [vmem:[#allocation3 + $0xb4] sm:$0xf0]  ;;  %v402_v5 = vld [vmem:[#allocation3 + $0xb0] sm:$0xf] }
   0x7   :  { %v428_v6 = vld [vmem:[#allocation3 + $0xb8] sm:$0xf0]  ;;  %v399_v7 = vor.u32 %v426_v2, %v396_v4  ;;  %v382_v9 = vld [vmem:[#allocation3 + $0x90] sm:$0xf]  ;;  %v423_v11 = vld [vmem:[#allocation3 + $0x94] sm:$0xf] }
   0x8   :  { %v403_v8 = vor.u32 %v428_v6, %v402_v5  ;;  %v424_v10 = vld [vmem:[#allocation3 + $0x98] sm:$0xf0]  ;;  %214 = vmatpush.bf16.msra.mxu0 %v395_v3  ;;  %v384_v13 = vld [vmem:[#allocation3 + $0x9c] sm:$0xf0]  ;;  %v390_v14 = vld [vmem:[#allocation3 + $0x98] sm:$0xf] }
   0x9   :  { %v383_v12 = vor.u32 %v424_v10, %v382_v9  ;;  %v425_v15 = vld [vmem:[#allocation3 + $0xa0] sm:$0xf0]  ;;  %228 = vmatpush.bf16.msra.mxu1 %v399_v7  ;;  %v387_v16 = vor.u32 %v423_v11, %v384_v13  ;;  %v370_v18 = vld [vmem:[#allocation3 + $0x78] sm:$0xf]  ;;  %v420_v20 = vld [vmem:[#allocation3 + $0x7c] sm:$0xf] }
   0xa   :  { %242 = vmatpush.bf16.msra.mxu2 %v403_v8  ;;  %v391_v17 = vor.u32 %v425_v15, %v390_v14  ;;  %v421_v19 = vld [vmem:[#allocation3 + $0x80] sm:$0xf0]  ;;  %v372_v21 = vld [vmem:[#allocation3 + $0x84] sm:$0xf0]  ;;  %v378_v22 = vld [vmem:[#allocation3 + $0x80] sm:$0xf] }
   0xb   :  { %v422_v23 = vld [vmem:[#allocation3 + $0x88] sm:$0xf0]  ;;  %v371_v24 = vor.u32 %v421_v19, %v370_v18  ;;  %v375_v25 = vor.u32 %v420_v20, %v372_v21  ;;  %v358_v27 = vld [vmem:[#allocation3 + $0x60] sm:$0xf]  ;;  %v417_v29 = vld [vmem:[#allocation3 + $0x64] sm:$0xf] }
   0xc   :  { %215 = vmatpush.bf16.msra.mxu0 %v383_v12  ;;  %v379_v26 = vor.u32 %v422_v23, %v378_v22  ;;  %v418_v28 = vld [vmem:[#allocation3 + $0x68] sm:$0xf0]  ;;  %v360_v30 = vld [vmem:[#allocation3 + $0x6c] sm:$0xf0]  ;;  %v366_v31 = vld [vmem:[#allocation3 + $0x68] sm:$0xf] }
   0xd   :  { %229 = vmatpush.bf16.msra.mxu1 %v387_v16  ;;  %v419_v32 = vld [vmem:[#allocation3 + $0x70] sm:$0xf0]  ;;  %v359_v33 = vor.u32 %v418_v28, %v358_v27  ;;  %v363_v34 = vor.u32 %v417_v29, %v360_v30  ;;  %v346_v36 = vld [vmem:[#allocation3 + $0x48] sm:$0xf]  ;;  %v414_v38 = vld [vmem:[#allocation3 + $0x4c] sm:$0xf] }
   0xe   :  { %243 = vmatpush.bf16.msra.mxu2 %v391_v17  ;;  %v367_v35 = vor.u32 %v419_v32, %v366_v31  ;;  %v415_v37 = vld [vmem:[#allocation3 + $0x50] sm:$0xf0]  ;;  %v348_v39 = vld [vmem:[#allocation3 + $0x54] sm:$0xf0]  ;;  %v354_v40 = vld [vmem:[#allocation3 + $0x50] sm:$0xf] }
   0xf   :  { %v416_v41 = vld [vmem:[#allocation3 + $0x58] sm:$0xf0]  ;;  %v347_v42 = vor.u32 %v415_v37, %v346_v36  ;;  %v351_v43 = vor.u32 %v414_v38, %v348_v39  ;;  %v334_v45 = vld [vmem:[#allocation3 + $0x30] sm:$0xf]  ;;  %v411_v47 = vld [vmem:[#allocation3 + $0x34] sm:$0xf] }
  0x10   :  { %216 = vmatpush.bf16.msra.mxu0 %v371_v24  ;;  %v355_v44 = vor.u32 %v416_v41, %v354_v40  ;;  %v412_v46 = vld [vmem:[#allocation3 + $0x38] sm:$0xf0]  ;;  %v336_v48 = vld [vmem:[#allocation3 + $0x3c] sm:$0xf0]  ;;  %v342_v49 = vld [vmem:[#allocation3 + $0x38] sm:$0xf] }
  0x11   :  { %230 = vmatpush.bf16.msra.mxu1 %v375_v25  ;;  %v413_v50 = vld [vmem:[#allocation3 + $0x40] sm:$0xf0]  ;;  %v335_v51 = vor.u32 %v412_v46, %v334_v45  ;;  %v339_v52 = vor.u32 %v411_v47, %v336_v48  ;;  %v322_v54 = vld [vmem:[#allocation3 + $0x18] sm:$0xf]  ;;  %v408_v56 = vld [vmem:[#allocation3 + $0x1c] sm:$0xf] }
  0x12   :  { %244 = vmatpush.bf16.msra.mxu2 %v379_v26  ;;  %v343_v53 = vor.u32 %v413_v50, %v342_v49  ;;  %v409_v55 = vld [vmem:[#allocation3 + $0x20] sm:$0xf0]  ;;  %v324_v57 = vld [vmem:[#allocation3 + $0x24] sm:$0xf0]  ;;  %v330_v58 = vld [vmem:[#allocation3 + $0x20] sm:$0xf] }
  0x13   :  { %v410_v59 = vld [vmem:[#allocation3 + $0x28] sm:$0xf0]  ;;  %v323_v60 = vor.u32 %v409_v55, %v322_v54  ;;  %v327_v61 = vor.u32 %v408_v56, %v324_v57  ;;  %v310_v63 = vld [vmem:[#allocation3] sm:$0xf]  ;;  %v405_v1 = vld [vmem:[#allocation3 + $0x4] sm:$0xf] }
  0x14   :  { %217 = vmatpush.bf16.msra.mxu0 %v359_v33  ;;  %v331_v62 = vor.u32 %v410_v59, %v330_v58  ;;  %v406_v0 = vld [vmem:[#allocation3 + $0x8] sm:$0xf0]  ;;  %v312_v2 = vld [vmem:[#allocation3 + $0xc] sm:$0xf0]  ;;  %v318_v3 = vld [vmem:[#allocation3 + $0x8] sm:$0xf] }
  0x15   :  { %231 = vmatpush.bf16.msra.mxu1 %v363_v34  ;;  %v407_v4 = vld [vmem:[#allocation3 + $0x10] sm:$0xf0]  ;;  %v311_v5 = vor.u32 %v406_v0, %v310_v63  ;;  %v315_v6 = vor.u32 %v405_v1, %v312_v2  ;;  %v404_v8 = vld [vmem:[%s502_s0] sm:$0xff] }
  0x16   :  { %245 = vmatpush.bf16.msra.mxu2 %v367_v35  ;;  %v319_v7 = vor.u32 %v407_v4, %v318_v3  ;;  %v277_v9 = vld [vmem:[%s504_s2] sm:$0x7] }
  0x17   :  { %v279_v10 = vperm.slane %v277_v9, 0  ;;  %v280_v11 = vperm.slane %v277_v9, 1  ;;  %v281_v17 = vperm.slane %v277_v9, 2 }
  0x18   :  { %218 = vmatpush.bf16.msra.mxu0 %v347_v42 }
  0x19   :  { %232 = vmatpush.bf16.msra.mxu1 %v351_v43 }
  0x1a   :  { %246 = vmatpush.bf16.msra.mxu2 %v355_v44 }
  0x1c   :  { %219 = vmatpush.bf16.msra.mxu0 %v335_v51 }
  0x1d   :  { %233 = vmatpush.bf16.msra.mxu1 %v339_v52 }
  0x1e   :  { %247 = vmatpush.bf16.msra.mxu2 %v343_v53 }
  0x20   :  { %220 = vmatpush.bf16.msra.mxu0 %v323_v60 }
  0x21   :  { %234 = vmatpush.bf16.msra.mxu1 %v327_v61 }
  0x22   :  { %248 = vmatpush.bf16.msra.mxu2 %v331_v62 }
  0x24   :  { %221 = vmatpush.bf16.msra.mxu0 %v311_v5 }
  0x25   :  { %235 = vmatpush.bf16.msra.mxu1 %v315_v6 }
  0x26   :  { %249 = vmatpush.bf16.msra.mxu2 %v319_v7 }
  0x27   :  { %222 = vmatmul.bf16.vlgmr.msra.gmra.mxu0 %v404_v8 }
  0x28   :  { %236 = vmatmul.bf16.vlgmr.msra.gmra.mxu1 %v404_v8 }
  0x29   :  { %250 = vmatmul.bf16.vlgmr.msra.gmra.mxu2 %v404_v8 }
  0xa4   :  { %v223_v12 = vpop.f32.mrf.mxu0 }
  0xa5   :  { %v285_v13 = vadd.f32 %v279_v10, %v223_v12  ;;  %v237_v14 = vpop.f32.mrf.mxu1 }
  0xa6   :  { %v286_v15 = vadd.f32 %v280_v11, %v237_v14 }
  0xa8   :  { %v291_v16 = vpack.c.bf16 %v286_v15, %v285_v13 }
  0xaa   :  { %295 = vst [vmem:[%s505_s3] sm:$0xff] %v291_v16 }
  0xac   :  { %v251_v18 = vpop.f32.mrf.mxu2  ;;  %v225_v20 = vpop.f32.mrf.mxu0 }
  0xad   :  { %v287_v19 = vadd.f32 %v281_v17, %v251_v18  ;;  %v288_v21 = vadd.f32 %v279_v10, %v225_v20  ;;  %v239_v22 = vpop.f32.mrf.mxu1 }
  0xae   :  { %v289_v24 = vadd.f32 %v280_v11, %v239_v22 }
  0xaf   :  { %v292_v23 = vpack.c.bf16 %v287_v19, %v287_v19 }
  0xb0   :  { %v293_v25 = vpack.c.bf16 %v289_v24, %v288_v21 }
  0xb1   :  { %296 = vst [vmem:[%s505_s3 + $0x8] sm:$0xf] %v292_v23 }
  0xb2   :  { %297 = vst [vmem:[%s505_s3 + $0xc] sm:$0xff] %v293_v25 }
  0xb4   :  { %v253_v26 = vpop.f32.mrf.mxu2 }
  0xb5   :  { %v290_v27 = vadd.f32 %v281_v17, %v253_v26 }
  0xb7   :  { %v294_v28 = vpack.c.bf16 %v290_v27, %v290_v27 }
  0xb9   :  { %298 = vst [vmem:[%s505_s3 + $0x14] sm:$0xf] %v294_v28 }
  0xba   :  { %303 = vsyncpa [#allocation4], 1 }

// kernel: bert_cross_layer.11
= control target key start
LH: loop header
LB: loop body
LE: loop exit
PB: predicated region body
PF: predicated region fallthrough
CT: control target
= control target key end

     0   :  { %11 = vsyncpa [#allocation4], 0  ;;  %s500_s0 = inlined_call_operand.vmem [shape: bf16[16,128], index: 0, kind: input, shape index: {}]   ;;  %s501_s1 = inlined_call_operand.hbm [shape: bf16[128,128], index: 1, kind: input, shape index: {}]   ;;  %s502_s2 = inlined_call_operand.hbm [shape: f32[1,128], index: 2, kind: input, shape index: {}]   ;;  %s503_s3 = inlined_call_operand.vmem [shape: bf16[16,128], index: 3, kind: input, shape index: {}]   ;;  %s504_s4 = inlined_call_operand.hbm [shape: f32[1,128], index: 4, kind: input, shape index: {}]   ;;  %s505_s5 = inlined_call_operand.hbm [shape: f32[1,128], index: 5, kind: input, shape index: {}]   ;;  %s506_s6 = inlined_call_operand.vmem [shape: bf16[16,128], index: 6, kind: output, shape index: {}]  }
   0x1   :  { %12 = vsyncpa [#allocation6], 0  ;;  %s34_s23 = sshll.u32 %s502_s2, 4  ;;  %s35_s23 = int_to_ptr.hbm [resolvable:$true] %s34_s23 }
   0x2   :  { %13 = vsyncpa [#allocation9], 0  ;;  %s437_s24 = smov [#allocation5]   ;;  %s20_s28 = sshll.u32 %s501_s1, 4  ;;  %s21_s28 = int_to_ptr.hbm [resolvable:$true] %s20_s28 }
   0x3   :  { %s36_s25 = sshll.u32 %s437_s24, 4  ;;  %s438_s29 = smov [#allocation3]   ;;  %s37_s25 = int_to_ptr.vmem [resolvable:$true] %s36_s25 }
   0x4   :  { %39 = dma.hbm_to_vmem [thread:$0]  %s35_s23, 16, %s37_s25, [#allocation6]  }
   0x5   :  { %s22_s30 = sshll.u32 %s438_s29, 4  ;;  %s439_s7 = smov 64   ;;  %s23_s30 = int_to_ptr.vmem [resolvable:$true] %s22_s30 }
   0x6   :  { %s440_s8 = smov 4   ;;  %s47_s2 = sshll.u32 %s504_s4, 4  ;;  %s48_s2 = int_to_ptr.hbm [resolvable:$true] %s47_s2 }
   0x7   :  { %28 = dma.hbm_to_vmem [thread:$0]  %s21_s28, 1024, %s23_s30, [#allocation4], %s439_s7, %s439_s7, %s440_s8  }
   0x8   :  { %s441_s11 = smov [#allocation7]   ;;  %s58_s1 = sshll.u32 %s505_s5, 4  ;;  %s59_s1 = int_to_ptr.hbm [resolvable:$true] %s58_s1 }
   0x9   :  { %s49_s12 = sshll.u32 %s441_s11, 4  ;;  %s442_s15 = smov [#allocation8]   ;;  %s50_s12 = int_to_ptr.vmem [resolvable:$true] %s49_s12 }
   0xa   :  { %52 = dma.hbm_to_vmem [thread:$0]  %s48_s2, 16, %s50_s12, [#allocation6]  }
   0xb   :  { %s60_s16 = sshll.u32 %s442_s15, 4  ;;  %s61_s16 = int_to_ptr.vmem [resolvable:$true] %s60_s16 }
   0xc   :  { %63 = dma.hbm_to_vmem [thread:$0]  %s59_s1, 16, %s61_s16, [#allocation9]  }
   0xd   :  { %431 = dma.done.wait [#allocation4], 1024  }
   0xe   :  { %432 = vsyncadd [#allocation4], 4294966272 }
   0xf   :  { %433 = dma.done.wait [#allocation6], 32  }
  0x10   :  { %434 = vsyncadd [#allocation6], 4294967264 }
  0x11   :  { %435 = dma.done.wait [#allocation9], 16  }
  0x12   :  { %436 = vsyncadd [#allocation9], 4294967280  ;;  %v309_v0 = vld [vmem:[#allocation3 + $0x38] sm:$0xff]  ;;  %v308_v1 = vld [vmem:[#allocation3 + $0x30] sm:$0xff]  ;;  %v443_v19 = vmov 128.0  }
  0x13   :  { %160 = vmatpush.bf16.msra.mxu0 %v309_v0  ;;  %v307_v2 = vld [vmem:[#allocation3 + $0x28] sm:$0xff]  ;;  %v306_v3 = vld [vmem:[#allocation3 + $0x20] sm:$0xff]  ;;  %v305_v4 = vld [vmem:[#allocation3 + $0x18] sm:$0xff]  ;;  %329 = vrcp.f32 %v443_v19 }
  0x14   :  { %v304_v5 = vld [vmem:[#allocation3 + $0x10] sm:$0xff]  ;;  %v303_v6 = vld [vmem:[#allocation3 + $0x8] sm:$0xff]  ;;  %v302_v7 = vld [vmem:[#allocation3] sm:$0xff] }
  0x15   :  { %v301_v8 = vld [vmem:[%s500_s0] sm:$0xff] }
  0x16   :  { %v311_v9 = vld [vmem:[%s503_s3] sm:$0xff]  }
  0x17   :  { %161 = vmatpush.bf16.msra.mxu0 %v308_v1  ;;  %v326_v10 = vld [vmem:[#allocation5] ss:$0 sm:$0xff]  ;;  %v312_v11 = vunpack.c.l.bf16 %v311_v9  ;;  %v313_v15 = vunpack.c.h.bf16 %v311_v9  ;;  %v327_v52 = vld [vmem:[#allocation7] ss:$0 sm:$0xff]  ;;  %v328_v56 = vld [vmem:[#allocation8] ss:$0 sm:$0xff] }
  0x19   :  { %v330_v20 = vpop.eup %329 }
  0x1a   :  { %v200_v21 = vmul.f32 128.0, %v330_v20  ;;  %vm204_vm0 = vweird.f32 %v330_v20 }
  0x1b   :  { %162 = vmatpush.bf16.msra.mxu0 %v307_v2 }
  0x1c   :  { %v201_v22 = vsub.f32 1.0, %v200_v21 }
  0x1e   :  { %v202_v23 = vmul.f32 %v330_v20, %v201_v22 }
  0x1f   :  { %163 = vmatpush.bf16.msra.mxu0 %v306_v3 }
  0x20   :  { %v203_v24 = vadd.f32 %v330_v20, %v202_v23 }
  0x22   :  { %v205_v25 = vsel %vm204_vm0, %v330_v20, %v203_v24 }
  0x23   :  { %164 = vmatpush.bf16.msra.mxu0 %v305_v4 }
  0x27   :  { %165 = vmatpush.bf16.msra.mxu0 %v304_v5 }
  0x2b   :  { %166 = vmatpush.bf16.msra.mxu0 %v303_v6 }
  0x2f   :  { %167 = vmatpush.bf16.msra.mxu0 %v302_v7 }
  0x32   :  { %168 = vmatmul.bf16.vlgmr.msra.gmra.mxu0 %v301_v8 }
  0xaf   :  { %v169_v12 = vpop.f32.mrf.mxu0 }
  0xb0   :  { %v187_v13 = vadd.f32 %v326_v10, %v169_v12 }
  0xb2   :  { %v193_v14 = vadd.f32 %v312_v11, %v187_v13 }
  0xb4   :  { %195 = vadd.xlane.f32.xlu0 %v193_v14 }
  0xb7   :  { %v171_v16 = vpop.f32.mrf.mxu0 }
  0xb8   :  { %v188_v17 = vadd.f32 %v326_v10, %v171_v16 }
  0xba   :  { %v194_v18 = vadd.f32 %v313_v15, %v188_v17 }
  0xbc   :  { %197 = vadd.xlane.f32.xlu0 %v194_v18 }
 0x127   :  { %v196_v26 = vpop.xlane.xlu0 %195 }
 0x128   :  { %v206_v27 = vmul.f32 %v205_v25, %v196_v26 }
 0x12a   :  { %v208_v28 = vsub.f32 %v193_v14, %v206_v27 }
 0x12c   :  { %v210_v29 = vmul.f32 %v208_v28, %v208_v28 }
 0x12e   :  { %212 = vadd.xlane.f32.xlu1 %v210_v29 }
 0x12f   :  { %v198_v30 = vpop.xlane.xlu0 %197 }
 0x130   :  { %v207_v31 = vmul.f32 %v205_v25, %v198_v30 }
 0x132   :  { %v209_v32 = vsub.f32 %v194_v18, %v207_v31 }
 0x134   :  { %v211_v33 = vmul.f32 %v209_v32, %v209_v32 }
 0x136   :  { %214 = vadd.xlane.f32.xlu1 %v211_v33 }
 0x1a1   :  { %v213_v34 = vpop.xlane.xlu1 %212 }
 0x1a2   :  { %v216_v35 = vmul.f32 %v213_v34, %v205_v25 }
 0x1a4   :  { %v218_v36 = vadd.f32 1e-12, %v216_v35 }
 0x1a6   :  { %331 = vrsqrt.f32 %v218_v36  ;;  %vm226_vm2 = vweird.f32 %v218_v36 }
 0x1a9   :  { %v215_v37 = vpop.xlane.xlu1 %214 }
 0x1aa   :  { %v217_v38 = vmul.f32 %v215_v37, %v205_v25 }
 0x1ac   :  { %v332_v39 = vpop.eup %331  ;;  %v219_v40 = vadd.f32 1e-12, %v217_v38 }
 0x1ad   :  { %v221_v41 = vmul.f32 %v332_v39, %v218_v36  ;;  %vm227_vm1 = vweird.f32 %v332_v39 }
 0x1ae   :  { %333 = vrsqrt.f32 %v219_v40  ;;  %vm228_vm3 = vmor %vm226_vm2, %vm227_vm1  ;;  %vm236_vm5 = vweird.f32 %v219_v40 }
 0x1af   :  { %v222_v42 = vmul.f32 %v332_v39, %v221_v41 }
 0x1b1   :  { %v223_v43 = vmul.f32 0.5, %v222_v42 }
 0x1b3   :  { %v224_v44 = vsub.f32 1.5, %v223_v43 }
 0x1b4   :  { %v334_v45 = vpop.eup %333 }
 0x1b5   :  { %v225_v46 = vmul.f32 %v332_v39, %v224_v44  ;;  %v231_v47 = vmul.f32 %v334_v45, %v219_v40  ;;  %vm237_vm4 = vweird.f32 %v334_v45 }
 0x1b6   :  { %vm238_vm6 = vmor %vm236_vm5, %vm237_vm4 }
 0x1b7   :  { %v232_v48 = vmul.f32 %v334_v45, %v231_v47  ;;  %v229_v49 = vsel %vm228_vm3, %v332_v39, %v225_v46 }
 0x1b8   :  { %v240_v53 = vmul.f32 %v229_v49, %v208_v28 }
 0x1b9   :  { %v233_v50 = vmul.f32 0.5, %v232_v48 }
 0x1ba   :  { %v246_v57 = vmul.f32 %v327_v52, %v240_v53 }
 0x1bb   :  { %v234_v51 = vsub.f32 1.5, %v233_v50 }
 0x1bc   :  { %v252_v60 = vadd.f32 %v328_v56, %v246_v57 }
 0x1bd   :  { %v235_v54 = vmul.f32 %v334_v45, %v234_v51 }
 0x1bf   :  { %v239_v55 = vsel %vm238_vm6, %v334_v45, %v235_v54 }
 0x1c0   :  { %v241_v58 = vmul.f32 %v239_v55, %v209_v32 }
 0x1c2   :  { %v247_v59 = vmul.f32 %v327_v52, %v241_v58 }
 0x1c4   :  { %v253_v61 = vadd.f32 %v328_v56, %v247_v59 }
 0x1c6   :  { %v317_v62 = vpack.c.bf16 %v253_v61, %v252_v60 }
 0x1c8   :  { %318 = vst [vmem:[%s506_s6] sm:$0xff] %v317_v62  }
 0x1c9   :  { %262 = vsyncpa [#allocation4], 1 }
 0x1ca   :  { %263 = vsyncpa [#allocation6], 1 }
 0x1cb   :  { %264 = vsyncpa [#allocation9], 1 }

// kernel: bert_cross_layer.12
= control target key start
LH: loop header
LB: loop body
LE: loop exit
PB: predicated region body
PF: predicated region fallthrough
CT: control target
= control target key end

     0   :  { %8 = vsyncpa [#allocation4], 0  ;;  %s306_s0 = inlined_call_operand.vmem [shape: bf16[16,128], index: 0, kind: input, shape index: {}]   ;;  %s307_s1 = inlined_call_operand.hbm [shape: bf16[128,128], index: 1, kind: input, shape index: {}]   ;;  %s308_s2 = inlined_call_operand.hbm [shape: f32[1,128], index: 2, kind: input, shape index: {}]   ;;  %s309_s3 = inlined_call_operand.vmem [shape: bf16[16,128], index: 3, kind: output, shape index: {}]  }
   0x1   :  { %s16_s14 = sshll.u32 %s307_s1, 4  ;;  %s17_s14 = int_to_ptr.hbm [resolvable:$true] %s16_s14 }
   0x2   :  { %9 = vsyncpa [#allocation6], 0  ;;  %s270_s15 = smov [#allocation3]   ;;  %s30_s19 = sshll.u32 %s308_s2, 4  ;;  %s31_s19 = int_to_ptr.hbm [resolvable:$true] %s30_s19 }
   0x3   :  { %s18_s16 = sshll.u32 %s270_s15, 4  ;;  %s271_s20 = smov 64   ;;  %s19_s16 = int_to_ptr.vmem [resolvable:$true] %s18_s16 }
   0x4   :  { %s272_s21 = smov 4   ;;  %s273_s22 = smov [#allocation5]  }
   0x5   :  { %24 = dma.hbm_to_vmem [thread:$0]  %s17_s14, 1024, %s19_s16, [#allocation4], %s271_s20, %s271_s20, %s272_s21  }
   0x6   :  { %s32_s23 = sshll.u32 %s273_s22, 4  ;;  %s33_s23 = int_to_ptr.vmem [resolvable:$true] %s32_s23 }
   0x7   :  { %35 = dma.hbm_to_vmem [thread:$0]  %s31_s19, 16, %s33_s23, [#allocation6]  }
   0x8   :  { %266 = dma.done.wait [#allocation4], 1024  }
   0x9   :  { %267 = vsyncadd [#allocation4], 4294966272 }
   0xa   :  { %268 = dma.done.wait [#allocation6], 16  }
   0xb   :  { %269 = vsyncadd [#allocation6], 4294967280  ;;  %v207_v0 = vld [vmem:[#allocation3 + $0x38] sm:$0xff]  ;;  %v206_v1 = vld [vmem:[#allocation3 + $0x30] sm:$0xff] }
   0xc   :  { %124 = vmatpush.bf16.msra.mxu0 %v207_v0  ;;  %v205_v2 = vld [vmem:[#allocation3 + $0x28] sm:$0xff]  ;;  %v204_v3 = vld [vmem:[#allocation3 + $0x20] sm:$0xff]  ;;  %v203_v4 = vld [vmem:[#allocation3 + $0x18] sm:$0xff] }
   0xd   :  { %v202_v5 = vld [vmem:[#allocation3 + $0x10] sm:$0xff]  ;;  %v201_v6 = vld [vmem:[#allocation3 + $0x8] sm:$0xff]  ;;  %v200_v7 = vld [vmem:[#allocation3] sm:$0xff] }
   0xe   :  { %v199_v8 = vld [vmem:[%s306_s0] sm:$0xff] }
   0xf   :  { %v217_v10 = vld [vmem:[#allocation5] ss:$0 sm:$0xff] }
  0x10   :  { %125 = vmatpush.bf16.msra.mxu0 %v206_v1 }
  0x14   :  { %126 = vmatpush.bf16.msra.mxu0 %v205_v2 }
  0x18   :  { %127 = vmatpush.bf16.msra.mxu0 %v204_v3 }
  0x1c   :  { %128 = vmatpush.bf16.msra.mxu0 %v203_v4 }
  0x20   :  { %129 = vmatpush.bf16.msra.mxu0 %v202_v5 }
  0x24   :  { %130 = vmatpush.bf16.msra.mxu0 %v201_v6 }
  0x28   :  { %131 = vmatpush.bf16.msra.mxu0 %v200_v7 }
  0x2b   :  { %132 = vmatmul.bf16.vlgmr.msra.gmra.mxu0 %v199_v8 }
  0xa8   :  { %v133_v9 = vpop.f32.mrf.mxu0 }
  0xa9   :  { %v151_v12 = vadd.f32 %v217_v10, %v133_v9 }
  0xb0   :  { %v135_v11 = vpop.f32.mrf.mxu0 }
  0xb1   :  { %v152_v13 = vadd.f32 %v217_v10, %v135_v11 }
  0xb3   :  { %v211_v14 = vpack.c.bf16 %v152_v13, %v151_v12 }
  0xb5   :  { %212 = vst [vmem:[%s309_s3] sm:$0xff] %v211_v14  }
  0xb6   :  { %161 = vsyncpa [#allocation4], 1 }
  0xb7   :  { %162 = vsyncpa [#allocation6], 1 }

// kernel: bert_cross_layer.10
= control target key start
LH: loop header
LB: loop body
LE: loop exit
PB: predicated region body
PF: predicated region fallthrough
CT: control target
= control target key end

     0   :  { %s1029_s15 = smov 0   ;;  %s1031_s16 = smov 0   ;;  %s1171_s0 = inlined_call_operand.vmem [shape: bf16[2,8,384], index: 0, kind: input, shape index: {}, may-alias: {0,1,2}]   ;;  %s1172_s1 = inlined_call_operand.vmem [shape: bf16[2,8,384], index: 1, kind: input, shape index: {}, may-alias: {0,1,2}]   ;;  %s1173_s2 = inlined_call_operand.vmem [shape: bf16[2,8,384], index: 2, kind: input, shape index: {}, may-alias: {0,1,2}]   ;;  %s1174_s3 = inlined_call_operand.vmem [shape: f32[2,1,8], index: 3, kind: input, shape index: {}]   ;;  %s1175_s4 = inlined_call_operand.vmem [shape: bf16[2,8,128], index: 4, kind: output, shape index: {}]  }
   0x1   :  { %s1033_s17 = smov 0  }
   0x2 LB: > { %s33_s18 = sadd.s32 1, %s992_s16  ;;  %p898_p0 = scmp.ge.s32.totalorder %s996_s17, 1  ;;  %s996_s17 = sphi %s1033_s17, %s14_s17   ;;  %s992_s16 = sphi %s1031_s16, %s1177_s16   ;;  %s988_s15 = sphi %s1029_s15, %s1176_s15  }
   0x3   : > { %p35_p1 = scmp.ge.s32.totalorder %s33_s18, 2  ;;  %p236_p2 = scmp.lt.s32.totalorder %s996_s17, 3 }
   0x5   : > { %s1179_s18 = smov (%p35_p1, %s33_s18), 0  ;;  %p237_p3 = pnand %p898_p0, %p236_p2 }
   0x6   : > { %p294_p4 = scmp.lt.s32.totalorder (!%p237_p3), %s988_s15, 1  ;;  %s999_s29 = smov (!%p237_p3), 64  }
   0x7   : > { %240 = sbr.rel (%p237_p3) target bundleno = 1136 (0x470), region = 36  ;;  %s1000_s30 = smov (!%p237_p3), 32  }
   0x8   : > { %s1001_s5 = smov (!%p237_p3), 96  }
   0xc   : > { %s1181_s15 = smov (!%p294_p4, %s988_s15), 1  ;;  %vm341_vm0 = vcmask 261120   ;;  %vm346_vm1 = vcmask 7168   ;;  %v998_v6 = vmov -1e+30   ;;  %vm386_vm2 = vcmask 64512  }
   0xd   : > { %s1050_s19 = smul.u32 12, %s1181_s15  ;;  %s328_s22 = scalar_lea.vmem %s1174_s3, %s1181_s15  ;;  %347 = vst.msk [vmem:[#allocation3] sm:$0xff] %vm346_vm1, %v998_v6  ;;  %v1002_v14 = vmov 0   ;;  %v1003_v15 = vmov 0.0   ;;  %vm421_vm3 = vcmask 1043456   ;;  %vm745_vm4 = vcmask 523264  }
   0xe   : > { %348 = vst.msk [vmem:[#allocation3 + $0x8] sm:$0xff] %vm346_vm1, %v998_v6  ;;  %v1070_v8 = vld [vmem:[%s328_s22] ss:$0 sm:$0xff]  ;;  %946 = vset.pattern.permute.xlu1 %v1002_v14  ;;  %947 = vset.pattern.permute.xlu2 %v1002_v14  ;;  %s902_s9 = sshll.u32 %s1181_s15, 2  ;;  %vm747_vm5 = vcmask 785408  }
   0xf   : > { %s826_s25 = scalar_lea.vmem %s1172_s1, %s1050_s19  ;;  %s302_s28 = scalar_lea.vmem %s1171_s0, %s1050_s19  ;;  %349 = vst.msk [vmem:[#allocation3 + $0x10] sm:$0xff] %vm346_vm1, %v998_v6  ;;  %948 = vset.pattern.permute.xlu0 %v1002_v14 }
  0x10   : > { %v903_v0 = vld [vmem:[%s826_s25 + $0x4] sm:$0xf]  ;;  %v355_v1 = vld [vmem:[%s302_s28] sm:$0xf]  ;;  %350 = vst.msk [vmem:[#allocation3 + $0x18] sm:$0xff] %vm346_vm1, %v998_v6  ;;  %s832_s8 = scalar_lea.vmem %s1173_s2, %s1050_s19  ;;  %s335_s12 = scalar_lea.vmem %s1175_s4, %s902_s9 }
  0x11   : > { %v370_v2 = vsel %vm341_vm0, %v903_v0, 0  ;;  %v356_v3 = vunpack.c.l.bf16 %v355_v1  ;;  %v447_v7 = vunpack.c.l.b16 %v903_v0  ;;  %351 = vst.msk [vmem:[#allocation4] sm:$0xff] %vm346_vm1, %v1003_v15  ;;  %v904_v25 = vld [vmem:[%s832_s8 + $0x8] sm:$0xf] }
  0x12   : > { %379 = vmatpush.bf16.xpose.msra.mxu0 %v370_v2  ;;  %342 = vst.msk [vmem:[#allocation2] sm:$0xff] %vm341_vm0, %v1003_v15  ;;  %v423_v26 = vsel %vm421_vm3, %v904_v25, 0  ;;  %v505_v51 = vunpack.c.l.b16 %v904_v25 }
  0x13   : > { %v357_v4 = vmul.f32 0.17677669, %v356_v3  ;;  %v448_v10 = vpack.c.b16 %v447_v7, %v447_v7  ;;  %343 = vst.msk [vmem:[#allocation2 + $0x8] sm:$0xff] %vm341_vm0, %v1003_v15  ;;  %432 = vmatpush.bf16.msra.mxu1 %v423_v26 }
  0x14   : > { %344 = vst.msk [vmem:[#allocation2 + $0x10] sm:$0xff] %vm341_vm0, %v1003_v15  ;;  %v1086_v18 = vld [vmem:[#allocation3] sm:$0xff]  ;;  %v506_v53 = vpack.c.b16 %v505_v51, %v505_v51 }
  0x15   : > { %v358_v5 = vpack.c.bf16 %v357_v4, %v357_v4  ;;  %533 = vrot.lane.b32.xlu2 %v448_v10, %s999_s29  ;;  %345 = vst.msk [vmem:[#allocation2 + $0x18] sm:$0xff] %vm341_vm0, %v1003_v15  ;;  %v471_v59 = vld [vmem:[#allocation3 + $0x8] sm:$0xff] }
  0x16   : > { %352 = vst.msk [vmem:[#allocation4 + $0x8] sm:$0xff] %vm346_vm1, %v1003_v15  ;;  %v555_v62 = vld [vmem:[#allocation3 + $0x10] sm:$0xff] }
  0x17   : > { %v442_v16 = vunpack.c.l.b16 %v358_v5  ;;  %353 = vst.msk [vmem:[#allocation4 + $0x10] sm:$0xff] %vm346_vm1, %v1003_v15  ;;  %v636_v55 = vld [vmem:[#allocation3 + $0x18] sm:$0xff] }
  0x18   : > { %354 = vst.msk [vmem:[#allocation4 + $0x18] sm:$0xff] %vm346_vm1, %v1003_v15 }
  0x19   : > { %905 = vmatmul.msk.bf16.vlgmr.msra.gmra.mxu0 %vm341_vm0, %v358_v5  ;;  %v443_v17 = vpack.c.b16 %v442_v16, %v442_v16 }
  0x1d   : > { %614 = vrot.lane.b32.xlu2 %v448_v10, %s1000_s30 }
  0x25   : > { %612 = vrot.lane.b32.xlu2 %v443_v17, %s1000_s30 }
  0x6f   : > { %v534_v24 = vpop.permute.xlu2 %533 }
  0x70   : > { %v539_v27 = vsel %vm341_vm0, %v534_v24, 0 }
  0x71   : > { %548 = vmatpush.bf16.xpose.msrb.mxu1 %v539_v27 }
  0x77   : > { %v615_v28 = vpop.permute.xlu2 %614 }
  0x78   : > { %v620_v29 = vsel %vm341_vm0, %v615_v28, 0 }
  0x79   : > { %629 = vmatpush.bf16.xpose.msrb.mxu0 %v620_v29 }
  0x7f   : > { %v613_v30 = vpop.permute.xlu2 %612 }
  0x80   : > { %911 = vmatmul.msk.bf16.vlgmr.msrb.gmra.mxu0 %vm341_vm0, %v613_v30  ;;  %v410_v30 = vld [vmem:[#allocation2] sm:$0xff] }
  0x96   : > { %v381_v9 = vpop.f32.mrf.mxu0 }
  0x97   : > { %v382_v11 = vadd.f32 %v1070_v8, %v381_v9  ;;  %v402_v9 = vld [vmem:[#allocation4] sm:$0xff] }
  0x99   : > { %v387_v12 = vsel %vm386_vm2, %v382_v11, -inf }
  0x9a   : > { %388 = vmax.xlane.f32.xlu0 %v387_v12 }
  0x9e   : > { %v383_v13 = vpop.f32.mrf.mxu0 }
  0xae   : > { %449 = vrot.lane.b32.xlu0 %v448_v10, %s1001_s5 }
  0xfd   : > { %v631_v38 = vpop.f32.mrf.mxu0 }
  0xfe   : > { %v1111_v39 = vadd.f32 %v1070_v8, %v631_v38 }
 0x100   : > { %v637_v40 = vsel %vm386_vm2, %v1111_v39, -inf }
 0x101   : > { %638 = vmax.xlane.f32.xlu0 %v637_v40 }
 0x105   : > { %v633_v41 = vpop.f32.mrf.mxu0 }
 0x10d   : > { %v389_v19 = vpop.xlane.xlu0 %388 }
 0x10e   : > { %v1089_v20 = vmax.f32 %v1086_v18, %v389_v19 }
 0x110   : > { %v391_v21 = vsub.f32 %v1086_v18, %v1089_v20  ;;  %440 = vst.msk [vmem:[#allocation3] sm:$0xff] %vm346_vm1, %v1089_v20  ;;  %396 = vperm.xlu1 %946, %v1089_v20  }
 0x112   : > { %v392_v0 = vmul.f32 1.442695, %v391_v21 }
 0x118   : > { %444 = vrot.lane.b32.xlu1 %v443_v17, %s1001_s5 }
 0x120   : > { %531 = vrot.lane.b32.xlu1 %v443_v17, %s999_s29  ;;  %v450_v22 = vpop.permute.xlu0 %449 }
 0x121   : > { %v455_v23 = vsel %vm341_vm0, %v450_v22, 0 }
 0x122   : > { %464 = vmatpush.bf16.xpose.msra.mxu2 %v455_v23 }
 0x174   : > { %v639_v56 = vpop.xlane.xlu0 %638 }
 0x175   : > { %v640_v57 = vmax.f32 %v636_v55, %v639_v56 }
 0x177   : > { %v641_v58 = vsub.f32 %v636_v55, %v640_v57  ;;  %692 = vst.msk [vmem:[#allocation3 + $0x18] sm:$0xff] %vm346_vm1, %v640_v57 }
 0x179   : > { %v642_v29 = vmul.f32 1.442695, %v641_v58 }
 0x182   : > { %v397_v31 = vpop.permute.xlu1 %396 }
 0x183   : > { %v399_v32 = vsub.f32 %v382_v11, %v397_v31 }
 0x185   : > { %v400_v33 = vmul.f32 1.442695, %v399_v32 }
 0x187   : > { %950 = vpow2.f32 %v400_v33 }
 0x188   : > { %952 = vpow2.f32 %v392_v0 }
 0x18a   : > { %v445_v34 = vpop.permute.xlu1 %444 }
 0x18b   : > { %907 = vmatmul.msk.bf16.vlgmr.msra.gmra.mxu2 %vm341_vm0, %v445_v34 }
 0x18d   : > { %v951_v35 = vpop.eup %950 }
 0x18e   : > { %v417_v36 = vpack.c.bf16 %v951_v35, %v951_v35  ;;  %v404_v54 = vsel %vm386_vm2, %v951_v35, 0.0  ;;  %v953_v5 = vpop.eup %952 }
 0x18f   : > { %v403_v11 = vmul.f32 %v953_v5, %v402_v9 }
 0x190   : > { %906 = vmatmul.msk.bf16.vlgmr.msra.gmra.mxu1 %vm386_vm2, %v417_v36 }
 0x192   : > { %v532_v37 = vpop.permute.xlu1 %531 }
 0x1a0   : > { %909 = vmatmul.msk.bf16.vlgmr.msrb.gmra.mxu1 %vm341_vm0, %v532_v37 }
 0x20d   : > { %v1115_v42 = vpop.f32.mrf.mxu1 }
 0x20e   : > { %v466_v43 = vpop.f32.mrf.mxu2 }
 0x20f   : > { %v467_v44 = vadd.f32 %v1070_v8, %v466_v43 }
 0x211   : > { %v472_v45 = vsel %vm386_vm2, %v467_v44, -inf }
 0x212   : > { %473 = vmax.xlane.f32.xlu1 %v472_v45  ;;  %v488_v45 = vld [vmem:[#allocation4 + $0x8] sm:$0xff] }
 0x215   : > { %v436_v46 = vpop.f32.mrf.mxu1 }
 0x216   : > { %v468_v47 = vpop.f32.mrf.mxu2 }
 0x21d   : > { %v550_v48 = vpop.f32.mrf.mxu1 }
 0x21e   : > { %v1120_v49 = vadd.f32 %v1070_v8, %v550_v48 }
 0x220   : > { %v556_v50 = vsel %vm386_vm2, %v1120_v49, -inf }
 0x221   : > { %557 = vmax.xlane.f32.xlu2 %v556_v50 }
 0x225   : > { %v552_v52 = vpop.f32.mrf.mxu1 }
 0x22b   : > { %507 = vrot.lane.b32.xlu1 %v506_v53, %s1001_s5 }
 0x233   : > { %588 = vrot.lane.b32.xlu1 %v506_v53, %s999_s29 }
 0x25d   : > { %405 = vadd.xlane.f32.xlu1 %v404_v54  ;;  %v496_v54 = vld [vmem:[#allocation2 + $0x8] sm:$0xff] }
 0x285   : > { %v474_v60 = vpop.xlane.xlu1 %473 }
 0x286   : > { %v475_v61 = vmax.f32 %v471_v59, %v474_v60 }
 0x288   : > { %530 = vst.msk [vmem:[#allocation3 + $0x8] sm:$0xff] %vm346_vm1, %v475_v61  ;;  %481 = vperm.xlu2 %947, %v475_v61   ;;  %v476_v3 = vsub.f32 %v471_v59, %v475_v61  ;;  %v661_v61 = vld [vmem:[#allocation2 + $0x18] sm:$0xff] }
 0x28a   : > { %v477_v4 = vmul.f32 1.442695, %v476_v3 }
 0x28c   : > { %954 = vpow2.f32 %v477_v4 }
 0x290   : > { %646 = vperm.xlu2 %947, %v640_v57  }
 0x292   : > { %v955_v6 = vpop.eup %954 }
 0x293   : > { %v489_v46 = vmul.f32 %v955_v6, %v488_v45 }
 0x294   : > { %v558_v63 = vpop.xlane.xlu2 %557 }
 0x295   : > { %v559_v1 = vmax.f32 %v555_v62, %v558_v63 }
 0x297   : > { %v560_v2 = vsub.f32 %v555_v62, %v559_v1  ;;  %611 = vst.msk [vmem:[#allocation3 + $0x10] sm:$0xff] %vm346_vm1, %v559_v1  ;;  %565 = vperm.xlu0 %948, %v559_v1  }
 0x298   : > { %669 = vrot.lane.b32.xlu2 %v506_v53, %s1000_s30 }
 0x299   : > { %v561_v35 = vmul.f32 1.442695, %v560_v2 }
 0x29d   : > { %v508_v7 = vpop.permute.xlu1 %507 }
 0x29e   : > { %v513_v10 = vsel %vm421_vm3, %v508_v7, 0 }
 0x29f   : > { %522 = vmatpush.bf16.msra.mxu3 %v513_v10  ;;  %v580_v10 = vld [vmem:[#allocation2 + $0x10] sm:$0xff] }
 0x2a0   : > { %413 = vperm.xlu2 %947, %v953_v5   ;;  %v572_v5 = vld [vmem:[#allocation4 + $0x10] sm:$0xff] }
 0x2a5   : > { %v589_v8 = vpop.permute.xlu1 %588 }
 0x2a6   : > { %v594_v23 = vsel %vm421_vm3, %v589_v8, 0 }
 0x2a7   : > { %603 = vmatpush.bf16.msrb.mxu3 %v594_v23 }
 0x2a8   : > { %499 = vperm.xlu2 %947, %v955_v6  }
 0x2d0   : > { %v406_v12 = vpop.xlane.xlu1 %405 }
 0x2d1   : > { %v407_v13 = vadd.f32 %v406_v12, %v403_v11 }
 0x2d3   : > { %409 = vst.msk [vmem:[#allocation4] sm:$0xff] %vm346_vm1, %v407_v13 }
 0x2e2   : > { %v482_v14 = vpop.permute.xlu2 %481 }
 0x2e3   : > { %v484_v15 = vsub.f32 %v467_v44, %v482_v14 }
 0x2e5   : > { %v485_v16 = vmul.f32 1.442695, %v484_v15 }
 0x2e7   : > { %956 = vpow2.f32 %v485_v16 }
 0x2ea   : > { %v647_v17 = vpop.permute.xlu2 %646 }
 0x2eb   : > { %v649_v18 = vsub.f32 %v1111_v39, %v647_v17 }
 0x2ed   : > { %v957_v19 = vpop.eup %956  ;;  %v650_v20 = vmul.f32 1.442695, %v649_v18 }
 0x2ee   : > { %v490_v21 = vsel %vm386_vm2, %v957_v19, 0.0  ;;  %v503_v22 = vpack.c.bf16 %v957_v19, %v957_v19 }
 0x2ef   : > { %958 = vpow2.f32 %v650_v20  ;;  %491 = vadd.xlane.f32.xlu0 %v490_v21 }
 0x2f0   : > { %908 = vmatmul.msk.bf16.vlgmr.msra.gmra.mxu3 %vm386_vm2, %v503_v22  ;;  %960 = vpow2.f32 %v642_v29 }
 0x2f1   : > { %962 = vpow2.f32 %v561_v35 }
 0x2f2   : > { %v670_v24 = vpop.permute.xlu2 %669 }
 0x2f3   : > { %v675_v25 = vsel %vm421_vm3, %v670_v24, 0 }
 0x2f4   : > { %684 = vmatpush.bf16.msrb.mxu2 %v675_v25 }
 0x2f5   : > { %v959_v26 = vpop.eup %958 }
 0x2f6   : > { %v655_v27 = vsel %vm386_vm2, %v959_v26, 0.0  ;;  %v668_v28 = vpack.c.bf16 %v959_v26, %v959_v26  ;;  %v961_v34 = vpop.eup %960 }
 0x2f7   : > { %656 = vadd.xlane.f32.xlu1 %v655_v27  ;;  %v963_v39 = vpop.eup %962 }
 0x2f8   : > { %912 = vmatmul.msk.bf16.vlgmr.msrb.gmra.mxu2 %vm386_vm2, %v668_v28  ;;  %v573_v6 = vmul.f32 %v963_v39, %v572_v5 }
 0x2fa   : > { %v414_v31 = vpop.permute.xlu2 %413 }
 0x2fb   : > { %v416_v32 = vmul.f32 %v414_v31, %v410_v30 }
 0x2fd   : > { %v438_v33 = vadd.f32 %v1115_v42, %v416_v32  ;;  %v696_v42 = vld [vmem:[#allocation4] sm:$0xff] }
 0x2ff   : > { %439 = vst.msk [vmem:[#allocation2] sm:$0xff] %vm341_vm0, %v438_v33 }
 0x302   : > { %v500_v55 = vpop.permute.xlu2 %499 }
 0x303   : > { %664 = vperm.xlu0 %948, %v961_v34   ;;  %v502_v56 = vmul.f32 %v500_v55, %v496_v54 }
 0x306   : > { %v698_v27 = vld [vmem:[#allocation2] sm:$0xff] }
 0x309   : > { %v566_v36 = vpop.permute.xlu0 %565 }
 0x30a   : > { %v568_v37 = vsub.f32 %v1120_v49, %v566_v36  ;;  %v653_v49 = vld [vmem:[#allocation4 + $0x18] sm:$0xff] }
 0x30b   : > { %v654_v50 = vmul.f32 %v961_v34, %v653_v49 }
 0x30c   : > { %v569_v38 = vmul.f32 1.442695, %v568_v37 }
 0x30e   : > { %964 = vpow2.f32 %v569_v38 }
 0x30f   : > { %966 = vrcp.f32 %v696_v42 }
 0x310   : > { %583 = vperm.xlu1 %946, %v963_v39  }
 0x314   : > { %v965_v40 = vpop.eup %964 }
 0x315   : > { %v574_v41 = vsel %vm386_vm2, %v965_v40, 0.0  ;;  %v587_v43 = vpack.c.bf16 %v965_v40, %v965_v40  ;;  %v967_v44 = vpop.eup %966 }
 0x316   : > { %575 = vadd.xlane.f32.xlu2 %v574_v41 }
 0x317   : > { %910 = vmatmul.msk.bf16.vlgmr.msrb.gmra.mxu3 %vm386_vm2, %v587_v43 }
 0x32e   : > { %701 = vperm.xlu2 %947, %v967_v44  }
 0x362   : > { %v492_v47 = vpop.xlane.xlu0 %491 }
 0x363   : > { %v493_v48 = vadd.f32 %v492_v47, %v489_v46 }
 0x365   : > { %494 = vst.msk [vmem:[#allocation4 + $0x8] sm:$0xff] %vm346_vm1, %v493_v48 }
 0x36a   : > { %v657_v51 = vpop.xlane.xlu1 %656 }
 0x36b   : > { %v658_v52 = vadd.f32 %v657_v51, %v654_v50 }
 0x36c   : > { %v705_v53 = vld [vmem:[#allocation4 + $0x8] sm:$0xff] }
 0x36d   : > { %659 = vst.msk [vmem:[#allocation4 + $0x18] sm:$0xff] %vm346_vm1, %v658_v52  ;;  %968 = vrcp.f32 %v705_v53 }
 0x373   : > { %v969_v57 = vpop.eup %968  ;;  %v524_v58 = vpop.f32.mrf.mxu3 }
 0x374   : > { %v528_v59 = vadd.f32 %v524_v58, %v502_v56  ;;  %710 = vperm.xlu0 %948, %v969_v57   ;;  %v723_v60 = vld [vmem:[#allocation4 + $0x18] sm:$0xff] }
 0x375   : > { %970 = vrcp.f32 %v723_v60  ;;  %v665_v62 = vpop.permute.xlu0 %664 }
 0x376   : > { %529 = vst.msk [vmem:[#allocation2 + $0x8] sm:$0xff] %vm341_vm0, %v528_v59  ;;  %v667_v63 = vmul.f32 %v665_v62, %v661_v61 }
 0x37b   : > { %v971_v0 = vpop.eup %970  ;;  %v526_v1 = vpop.f32.mrf.mxu3 }
 0x37c   : > { %v686_v2 = vpop.f32.mrf.mxu2  ;;  %728 = vperm.xlu0 %948, %v971_v0  }
 0x37d   : > { %v690_v3 = vadd.f32 %v686_v2, %v667_v63  ;;  %v707_v17 = vld [vmem:[#allocation2 + $0x8] sm:$0xff] }
 0x37f   : > { %691 = vst.msk [vmem:[#allocation2 + $0x18] sm:$0xff] %vm341_vm0, %v690_v3 }
 0x382   : > { %v584_v11 = vpop.permute.xlu1 %583 }
 0x383   : > { %v586_v12 = vmul.f32 %v584_v11, %v580_v10 }
 0x384   : > { %v688_v4 = vpop.f32.mrf.mxu2 }
 0x386   : > { %v725_v20 = vld [vmem:[#allocation2 + $0x18] sm:$0xff] }
 0x389   : > { %v576_v7 = vpop.xlane.xlu2 %575 }
 0x38a   : > { %v577_v8 = vadd.f32 %v576_v7, %v573_v6 }
 0x38c   : > { %578 = vst.msk [vmem:[#allocation4 + $0x10] sm:$0xff] %vm346_vm1, %v577_v8 }
 0x391   : > { %v702_v26 = vpop.permute.xlu2 %701 }
 0x392   : > { %v704_v29 = vmul.f32 %v702_v26, %v698_v27 }
 0x393   : > { %v714_v9 = vld [vmem:[#allocation4 + $0x10] sm:$0xff] }
 0x394   : > { %972 = vrcp.f32 %v714_v9 }
 0x39a   : > { %v973_v13 = vpop.eup %972  ;;  %v605_v14 = vpop.f32.mrf.mxu3 }
 0x39b   : > { %v609_v15 = vadd.f32 %v605_v14, %v586_v12  ;;  %719 = vperm.xlu1 %946, %v973_v13  }
 0x39d   : > { %610 = vst.msk [vmem:[#allocation2 + $0x10] sm:$0xff] %vm341_vm0, %v609_v15 }
 0x3a2   : > { %v607_v16 = vpop.f32.mrf.mxu3 }
 0x3a4   : > { %v716_v23 = vld [vmem:[#allocation2 + $0x10] sm:$0xff] }
 0x3e6   : > { %v711_v18 = vpop.permute.xlu0 %710 }
 0x3e7   : > { %v713_v19 = vmul.f32 %v711_v18, %v707_v17 }
 0x3e9   : > { %733 = vrot.lane.b32.xlu1 %v713_v19, %s1000_s30 }
 0x3ee   : > { %v729_v21 = vpop.permute.xlu0 %728 }
 0x3ef   : > { %v731_v22 = vmul.f32 %v729_v21, %v725_v20 }
 0x3f1   : > { %741 = vrot.lane.b32.xlu0 %v731_v22, %s1001_s5 }
 0x40d   : > { %v720_v24 = vpop.permute.xlu1 %719 }
 0x40e   : > { %v722_v25 = vmul.f32 %v720_v24, %v716_v23 }
 0x410   : > { %737 = vrot.lane.b32.xlu2 %v722_v25, %s999_s29 }
 0x45b   : > { %v734_v28 = vpop.permute.xlu1 %733 }
 0x45c   : > { %v744_v30 = vsel %vm341_vm0, %v704_v29, %v734_v28 }
 0x463   : > { %v742_v32 = vpop.permute.xlu0 %741 }
 0x46a   : > { %v738_v31 = vpop.permute.xlu2 %737 }
 0x46b   : > { %v746_v33 = vsel %vm745_vm4, %v744_v30, %v738_v31 }
 0x46c   : > { %v748_v34 = vsel %vm747_vm5, %v746_v33, %v742_v32 }
 0x46d   : > { %v749_v35 = vpack.c.bf16 %v748_v34, %v748_v34 }
 0x46f   : > { %750 = vst [vmem:[%s335_s12] sm:$0xf] %v749_v35 }
 0x470 PF: > { %s14_s17 = sadd.s32 1, %s996_s17   ;;  %s1176_s15 = smov %s992_s16 }
 0x471   : > { %p11_p5 = scmp.ge.s32.totalorder %s14_s17, 4   ;;  %s1177_s16 = smov %s1179_s18 }
 0x473   :  { %13 = sbr.rel (!%p11_p5) target bundleno = 2 (0x2), region = 92 }

// kernel: bert_cross_layer.15
= control target key start
LH: loop header
LB: loop body
LE: loop exit
PB: predicated region body
PF: predicated region fallthrough
CT: control target
= control target key end

     0   :  { %v269_v19 = vmov 128.0   ;;  %s347_s1 = inlined_call_operand.vmem [shape: bf16[128,128], index: 1, kind: input, shape index: {}]   ;;  %s348_s2 = inlined_call_operand.vmem [shape: f32[1,128], index: 2, kind: input, shape index: {}]   ;;  %s349_s0 = inlined_call_operand.vmem [shape: bf16[16,128], index: 0, kind: input, shape index: {}]   ;;  %s350_s3 = inlined_call_operand.vmem [shape: bf16[16,128], index: 3, kind: input, shape index: {}]   ;;  %s351_s4 = inlined_call_operand.vmem [shape: f32[1,128], index: 4, kind: input, shape index: {}]   ;;  %s352_s5 = inlined_call_operand.vmem [shape: f32[1,128], index: 5, kind: input, shape index: {}]   ;;  %s353_s6 = inlined_call_operand.vmem [shape: bf16[16,128], index: 6, kind: output, shape index: {}]  }
   0x1   :  { %v249_v0 = vld [vmem:[%s347_s1 + $0x38] sm:$0xff]  ;;  %v248_v1 = vld [vmem:[%s347_s1 + $0x30] sm:$0xff]  ;;  %v247_v2 = vld [vmem:[%s347_s1 + $0x28] sm:$0xff]  ;;  %263 = vrcp.f32 %v269_v19 }
   0x2   :  { %103 = vmatpush.bf16.msra.mxu0 %v249_v0  ;;  %v246_v3 = vld [vmem:[%s347_s1 + $0x20] sm:$0xff]  ;;  %v245_v4 = vld [vmem:[%s347_s1 + $0x18] sm:$0xff]  ;;  %v244_v5 = vld [vmem:[%s347_s1 + $0x10] sm:$0xff] }
   0x3   :  { %v243_v6 = vld [vmem:[%s347_s1 + $0x8] sm:$0xff]  ;;  %v242_v7 = vld [vmem:[%s347_s1] sm:$0xff] }
   0x4   :  { %v241_v8 = vld [vmem:[%s349_s0] sm:$0xff] }
   0x5   :  { %v251_v9 = vld [vmem:[%s350_s3] sm:$0xff]  }
   0x6   :  { %104 = vmatpush.bf16.msra.mxu0 %v248_v1  ;;  %v260_v10 = vld [vmem:[%s348_s2] ss:$0 sm:$0xff]  ;;  %v252_v11 = vunpack.c.l.bf16 %v251_v9  ;;  %v253_v15 = vunpack.c.h.bf16 %v251_v9 }
   0x7   :  { %v264_v20 = vpop.eup %263  ;;  %v261_v52 = vld [vmem:[%s351_s4] ss:$0 sm:$0xff] }
   0x8   :  { %v143_v21 = vmul.f32 128.0, %v264_v20  ;;  %vm147_vm0 = vweird.f32 %v264_v20  ;;  %v262_v56 = vld [vmem:[%s352_s5] ss:$0 sm:$0xff] }
   0xa   :  { %105 = vmatpush.bf16.msra.mxu0 %v247_v2  ;;  %v144_v22 = vsub.f32 1.0, %v143_v21 }
   0xc   :  { %v145_v23 = vmul.f32 %v264_v20, %v144_v22 }
   0xe   :  { %106 = vmatpush.bf16.msra.mxu0 %v246_v3  ;;  %v146_v24 = vadd.f32 %v264_v20, %v145_v23 }
  0x10   :  { %v148_v25 = vsel %vm147_vm0, %v264_v20, %v146_v24 }
  0x12   :  { %107 = vmatpush.bf16.msra.mxu0 %v245_v4 }
  0x16   :  { %108 = vmatpush.bf16.msra.mxu0 %v244_v5 }
  0x1a   :  { %109 = vmatpush.bf16.msra.mxu0 %v243_v6 }
  0x1e   :  { %110 = vmatpush.bf16.msra.mxu0 %v242_v7 }
  0x21   :  { %111 = vmatmul.bf16.vlgmr.msra.gmra.mxu0 %v241_v8 }
  0x9e   :  { %v112_v12 = vpop.f32.mrf.mxu0 }
  0x9f   :  { %v130_v13 = vadd.f32 %v260_v10, %v112_v12 }
  0xa1   :  { %v136_v14 = vadd.f32 %v252_v11, %v130_v13 }
  0xa3   :  { %138 = vadd.xlane.f32.xlu0 %v136_v14 }
  0xa6   :  { %v114_v16 = vpop.f32.mrf.mxu0 }
  0xa7   :  { %v131_v17 = vadd.f32 %v260_v10, %v114_v16 }
  0xa9   :  { %v137_v18 = vadd.f32 %v253_v15, %v131_v17 }
  0xab   :  { %140 = vadd.xlane.f32.xlu0 %v137_v18 }
 0x116   :  { %v139_v26 = vpop.xlane.xlu0 %138 }
 0x117   :  { %v149_v27 = vmul.f32 %v148_v25, %v139_v26 }
 0x119   :  { %v151_v28 = vsub.f32 %v136_v14, %v149_v27 }
 0x11b   :  { %v153_v29 = vmul.f32 %v151_v28, %v151_v28 }
 0x11d   :  { %155 = vadd.xlane.f32.xlu1 %v153_v29 }
 0x11e   :  { %v141_v30 = vpop.xlane.xlu0 %140 }
 0x11f   :  { %v150_v31 = vmul.f32 %v148_v25, %v141_v30 }
 0x121   :  { %v152_v32 = vsub.f32 %v137_v18, %v150_v31 }
 0x123   :  { %v154_v33 = vmul.f32 %v152_v32, %v152_v32 }
 0x125   :  { %157 = vadd.xlane.f32.xlu1 %v154_v33 }
 0x190   :  { %v156_v34 = vpop.xlane.xlu1 %155 }
 0x191   :  { %v159_v35 = vmul.f32 %v156_v34, %v148_v25 }
 0x193   :  { %v161_v36 = vadd.f32 1e-12, %v159_v35 }
 0x195   :  { %265 = vrsqrt.f32 %v161_v36  ;;  %vm169_vm2 = vweird.f32 %v161_v36 }
 0x198   :  { %v158_v37 = vpop.xlane.xlu1 %157 }
 0x199   :  { %v160_v38 = vmul.f32 %v158_v37, %v148_v25 }
 0x19b   :  { %v266_v39 = vpop.eup %265  ;;  %v162_v40 = vadd.f32 1e-12, %v160_v38 }
 0x19c   :  { %v164_v41 = vmul.f32 %v266_v39, %v161_v36  ;;  %vm170_vm1 = vweird.f32 %v266_v39 }
 0x19d   :  { %267 = vrsqrt.f32 %v162_v40  ;;  %vm171_vm3 = vmor %vm169_vm2, %vm170_vm1  ;;  %vm179_vm5 = vweird.f32 %v162_v40 }
 0x19e   :  { %v165_v42 = vmul.f32 %v266_v39, %v164_v41 }
 0x1a0   :  { %v166_v43 = vmul.f32 0.5, %v165_v42 }
 0x1a2   :  { %v167_v44 = vsub.f32 1.5, %v166_v43 }
 0x1a3   :  { %v268_v45 = vpop.eup %267 }
 0x1a4   :  { %v168_v46 = vmul.f32 %v266_v39, %v167_v44  ;;  %v174_v47 = vmul.f32 %v268_v45, %v162_v40  ;;  %vm180_vm4 = vweird.f32 %v268_v45 }
 0x1a5   :  { %vm181_vm6 = vmor %vm179_vm5, %vm180_vm4 }
 0x1a6   :  { %v175_v48 = vmul.f32 %v268_v45, %v174_v47  ;;  %v172_v49 = vsel %vm171_vm3, %v266_v39, %v168_v46 }
 0x1a7   :  { %v183_v53 = vmul.f32 %v172_v49, %v151_v28 }
 0x1a8   :  { %v176_v50 = vmul.f32 0.5, %v175_v48 }
 0x1a9   :  { %v189_v57 = vmul.f32 %v261_v52, %v183_v53 }
 0x1aa   :  { %v177_v51 = vsub.f32 1.5, %v176_v50 }
 0x1ab   :  { %v195_v60 = vadd.f32 %v262_v56, %v189_v57 }
 0x1ac   :  { %v178_v54 = vmul.f32 %v268_v45, %v177_v51 }
 0x1ae   :  { %v182_v55 = vsel %vm181_vm6, %v268_v45, %v178_v54 }
 0x1af   :  { %v184_v58 = vmul.f32 %v182_v55, %v152_v32 }
 0x1b1   :  { %v190_v59 = vmul.f32 %v261_v52, %v184_v58 }
 0x1b3   :  { %v196_v61 = vadd.f32 %v262_v56, %v190_v59 }
 0x1b5   :  { %v257_v62 = vpack.c.bf16 %v196_v61, %v195_v60 }
 0x1b7   :  { %258 = vst [vmem:[%s353_s6] sm:$0xff] %v257_v62  }

// kernel: bert_cross_layer.13
= control target key start
LH: loop header
LB: loop body
LE: loop exit
PB: predicated region body
PF: predicated region fallthrough
CT: control target
= control target key end

     0   :  { %8 = vsyncpa [#allocation4], 0  ;;  %s479_s0 = inlined_call_operand.vmem [shape: bf16[32,128], index: 0, kind: input, shape index: {}]   ;;  %s480_s1 = inlined_call_operand.hbm [shape: bf16[128,256], index: 1, kind: input, shape index: {}]   ;;  %s481_s2 = inlined_call_operand.hbm [shape: f32[1,256], index: 2, kind: input, shape index: {}]   ;;  %s482_s3 = inlined_call_operand.vmem [shape: bf16[32,256], index: 3, kind: output, shape index: {}]  }
   0x1   :  { %s16_s14 = sshll.u32 %s480_s1, 4  ;;  %s17_s14 = int_to_ptr.hbm [resolvable:$true] %s16_s14 }
   0x2   :  { %9 = vsyncpa [#allocation6], 0  ;;  %s431_s15 = smov [#allocation3]   ;;  %s30_s19 = sshll.u32 %s481_s2, 4  ;;  %s31_s19 = int_to_ptr.hbm [resolvable:$true] %s30_s19 }
   0x3   :  { %s18_s16 = sshll.u32 %s431_s15, 4  ;;  %s432_s20 = smov 128   ;;  %s19_s16 = int_to_ptr.vmem [resolvable:$true] %s18_s16 }
   0x4   :  { %s433_s21 = smov 8   ;;  %s434_s22 = smov [#allocation5]  }
   0x5   :  { %24 = dma.hbm_to_vmem [thread:$0]  %s17_s14, 2048, %s19_s16, [#allocation4], %s432_s20, %s432_s20, %s433_s21  }
   0x6   :  { %s32_s23 = sshll.u32 %s434_s22, 4  ;;  %s33_s23 = int_to_ptr.vmem [resolvable:$true] %s32_s23 }
   0x7   :  { %35 = dma.hbm_to_vmem [thread:$0]  %s31_s19, 32, %s33_s23, [#allocation6]  }
   0x8   :  { %427 = dma.done.wait [#allocation4], 2048  }
   0x9   :  { %428 = vsyncadd [#allocation4], 4294965248 }
   0xa   :  { %429 = dma.done.wait [#allocation6], 32  }
   0xb   :  { %430 = vsyncadd [#allocation6], 4294967264  ;;  %v335_v0 = vld [vmem:[#allocation3 + $0x70] sm:$0xf]  ;;  %v358_v1 = vld [vmem:[#allocation3 + $0x74] sm:$0xf0] }
   0xc   :  { %v357_v2 = vld [vmem:[#allocation3 + $0x74] sm:$0xf]  ;;  %v336_v3 = vor.u32 %v358_v1, %v335_v0  ;;  %v337_v4 = vld [vmem:[#allocation3 + $0x78] sm:$0xf0]  ;;  %v327_v5 = vld [vmem:[#allocation3 + $0x60] sm:$0xf] }
   0xd   :  { %v356_v6 = vld [vmem:[#allocation3 + $0x64] sm:$0xf0]  ;;  %v340_v7 = vor.u32 %v357_v2, %v337_v4  ;;  %v355_v8 = vld [vmem:[#allocation3 + $0x64] sm:$0xf]  ;;  %v329_v9 = vld [vmem:[#allocation3 + $0x68] sm:$0xf0] }
   0xe   :  { %176 = vmatpush.bf16.msra.mxu0 %v336_v3  ;;  %359 = vmatpush.bf16.msra.mxu2 %v336_v3  ;;  %v328_v10 = vor.u32 %v356_v6, %v327_v5  ;;  %v332_v11 = vor.u32 %v355_v8, %v329_v9  ;;  %v319_v12 = vld [vmem:[#allocation3 + $0x50] sm:$0xf]  ;;  %v354_v13 = vld [vmem:[#allocation3 + $0x54] sm:$0xf0]  ;;  %v353_v14 = vld [vmem:[#allocation3 + $0x54] sm:$0xf] }
   0xf   :  { %195 = vmatpush.bf16.msra.mxu1 %v340_v7  ;;  %367 = vmatpush.bf16.msra.mxu3 %v340_v7  ;;  %v321_v15 = vld [vmem:[#allocation3 + $0x58] sm:$0xf0]  ;;  %v320_v16 = vor.u32 %v354_v13, %v319_v12  ;;  %v311_v18 = vld [vmem:[#allocation3 + $0x40] sm:$0xf]  ;;  %v352_v19 = vld [vmem:[#allocation3 + $0x44] sm:$0xf0] }
  0x10   :  { %v324_v17 = vor.u32 %v353_v14, %v321_v15  ;;  %v351_v20 = vld [vmem:[#allocation3 + $0x44] sm:$0xf]  ;;  %v313_v21 = vld [vmem:[#allocation3 + $0x48] sm:$0xf0]  ;;  %v312_v22 = vor.u32 %v352_v19, %v311_v18  ;;  %v303_v24 = vld [vmem:[#allocation3 + $0x30] sm:$0xf] }
  0x11   :  { %v316_v23 = vor.u32 %v351_v20, %v313_v21  ;;  %v350_v25 = vld [vmem:[#allocation3 + $0x34] sm:$0xf0]  ;;  %v349_v26 = vld [vmem:[#allocation3 + $0x34] sm:$0xf]  ;;  %v305_v27 = vld [vmem:[#allocation3 + $0x38] sm:$0xf0] }
  0x12   :  { %177 = vmatpush.bf16.msra.mxu0 %v328_v10  ;;  %360 = vmatpush.bf16.msra.mxu2 %v328_v10  ;;  %v304_v28 = vor.u32 %v350_v25, %v303_v24  ;;  %v308_v29 = vor.u32 %v349_v26, %v305_v27  ;;  %v295_v30 = vld [vmem:[#allocation3 + $0x20] sm:$0xf]  ;;  %v348_v31 = vld [vmem:[#allocation3 + $0x24] sm:$0xf0]  ;;  %v347_v32 = vld [vmem:[#allocation3 + $0x24] sm:$0xf] }
  0x13   :  { %196 = vmatpush.bf16.msra.mxu1 %v332_v11  ;;  %368 = vmatpush.bf16.msra.mxu3 %v332_v11  ;;  %v297_v33 = vld [vmem:[#allocation3 + $0x28] sm:$0xf0]  ;;  %v296_v34 = vor.u32 %v348_v31, %v295_v30  ;;  %v287_v36 = vld [vmem:[#allocation3 + $0x10] sm:$0xf]  ;;  %v346_v37 = vld [vmem:[#allocation3 + $0x14] sm:$0xf0] }
  0x14   :  { %v300_v35 = vor.u32 %v347_v32, %v297_v33  ;;  %v345_v38 = vld [vmem:[#allocation3 + $0x14] sm:$0xf]  ;;  %v289_v39 = vld [vmem:[#allocation3 + $0x18] sm:$0xf0]  ;;  %v288_v40 = vor.u32 %v346_v37, %v287_v36  ;;  %v279_v42 = vld [vmem:[#allocation3] sm:$0xf] }
  0x15   :  { %v292_v41 = vor.u32 %v345_v38, %v289_v39  ;;  %v344_v43 = vld [vmem:[#allocation3 + $0x4] sm:$0xf0]  ;;  %v343_v44 = vld [vmem:[#allocation3 + $0x4] sm:$0xf]  ;;  %v281_v45 = vld [vmem:[#allocation3 + $0x8] sm:$0xf0] }
  0x16   :  { %178 = vmatpush.bf16.msra.mxu0 %v320_v16  ;;  %361 = vmatpush.bf16.msra.mxu2 %v320_v16  ;;  %v280_v46 = vor.u32 %v344_v43, %v279_v42  ;;  %v284_v47 = vor.u32 %v343_v44, %v281_v45  ;;  %v341_v48 = vld [vmem:[%s479_s0] sm:$0xff]  ;;  %v342_v49 = vld [vmem:[%s479_s0 + $0x8] sm:$0xff] }
  0x17   :  { %197 = vmatpush.bf16.msra.mxu1 %v324_v17  ;;  %369 = vmatpush.bf16.msra.mxu3 %v324_v17  ;;  %v241_v50 = vld [vmem:[#allocation5] sm:$0x3] }
  0x18   :  { %v243_v51 = vperm.slane %v241_v50, 0  ;;  %v244_v52 = vperm.slane %v241_v50, 1 }
  0x1a   :  { %179 = vmatpush.bf16.msra.mxu0 %v312_v22  ;;  %362 = vmatpush.bf16.msra.mxu2 %v312_v22 }
  0x1b   :  { %198 = vmatpush.bf16.msra.mxu1 %v316_v23  ;;  %370 = vmatpush.bf16.msra.mxu3 %v316_v23 }
  0x1e   :  { %180 = vmatpush.bf16.msra.mxu0 %v304_v28  ;;  %363 = vmatpush.bf16.msra.mxu2 %v304_v28 }
  0x1f   :  { %199 = vmatpush.bf16.msra.mxu1 %v308_v29  ;;  %371 = vmatpush.bf16.msra.mxu3 %v308_v29 }
  0x22   :  { %181 = vmatpush.bf16.msra.mxu0 %v296_v34  ;;  %364 = vmatpush.bf16.msra.mxu2 %v296_v34 }
  0x23   :  { %200 = vmatpush.bf16.msra.mxu1 %v300_v35  ;;  %372 = vmatpush.bf16.msra.mxu3 %v300_v35 }
  0x26   :  { %182 = vmatpush.bf16.msra.mxu0 %v288_v40  ;;  %365 = vmatpush.bf16.msra.mxu2 %v288_v40 }
  0x27   :  { %201 = vmatpush.bf16.msra.mxu1 %v292_v41  ;;  %373 = vmatpush.bf16.msra.mxu3 %v292_v41 }
  0x2a   :  { %183 = vmatpush.bf16.msra.mxu0 %v280_v46  ;;  %366 = vmatpush.bf16.msra.mxu2 %v280_v46 }
  0x2b   :  { %202 = vmatpush.bf16.msra.mxu1 %v284_v47  ;;  %374 = vmatpush.bf16.msra.mxu3 %v284_v47 }
  0x2d   :  { %184 = vmatmul.bf16.vlgmr.msra.gmra.mxu0 %v341_v48  ;;  %189 = vmatmul.bf16.vlgmr.msra.gmra.mxu2 %v342_v49 }
  0x2e   :  { %203 = vmatmul.bf16.vlgmr.msra.gmra.mxu1 %v341_v48  ;;  %208 = vmatmul.bf16.vlgmr.msra.gmra.mxu3 %v342_v49 }
  0xaa   :  { %v185_v53 = vpop.f32.mrf.mxu0 }
  0xab   :  { %v247_v54 = vadd.f32 %v243_v51, %v185_v53  ;;  %v204_v55 = vpop.f32.mrf.mxu1 }
  0xac   :  { %v248_v56 = vadd.f32 %v244_v52, %v204_v55 }
  0xae   :  { %v255_v57 = vpack.c.bf16 %v248_v56, %v247_v54 }
  0xb0   :  { %259 = vst [vmem:[%s482_s3] sm:$0xff] %v255_v57  ;;  %v190_v58 = vpop.f32.mrf.mxu2 }
  0xb1   :  { %v251_v59 = vadd.f32 %v243_v51, %v190_v58  ;;  %v209_v60 = vpop.f32.mrf.mxu3 }
  0xb2   :  { %v252_v61 = vadd.f32 %v244_v52, %v209_v60  ;;  %v187_v62 = vpop.f32.mrf.mxu0 }
  0xb3   :  { %v249_v63 = vadd.f32 %v243_v51, %v187_v62  ;;  %v206_v0 = vpop.f32.mrf.mxu1 }
  0xb4   :  { %v257_v1 = vpack.c.bf16 %v252_v61, %v251_v59  ;;  %v250_v2 = vadd.f32 %v244_v52, %v206_v0 }
  0xb6   :  { %261 = vst [vmem:[%s482_s3 + $0x10] sm:$0xff] %v257_v1  ;;  %v256_v3 = vpack.c.bf16 %v250_v2, %v249_v63 }
  0xb8   :  { %260 = vst [vmem:[%s482_s3 + $0x8] sm:$0xff] %v256_v3  ;;  %v192_v4 = vpop.f32.mrf.mxu2 }
  0xb9   :  { %v253_v5 = vadd.f32 %v243_v51, %v192_v4  ;;  %v211_v6 = vpop.f32.mrf.mxu3 }
  0xba   :  { %v254_v7 = vadd.f32 %v244_v52, %v211_v6 }
  0xbc   :  { %v258_v8 = vpack.c.bf16 %v254_v7, %v253_v5 }
  0xbe   :  { %262 = vst [vmem:[%s482_s3 + $0x18] sm:$0xff] %v258_v8 }
  0xbf   :  { %267 = vsyncpa [#allocation4], 1 }
  0xc0   :  { %268 = vsyncpa [#allocation6], 1 }

// kernel: bert_cross_layer.14
= control target key start
LH: loop header
LB: loop body
LE: loop exit
PB: predicated region body
PF: predicated region fallthrough
CT: control target
= control target key end

     0   :  { %s1133_s15 = smov 0   ;;  %s1135_s16 = smov 0   ;;  %s1316_s0 = inlined_call_operand.vmem [shape: bf16[2,8,128], index: 0, kind: input, shape index: {}]   ;;  %s1317_s1 = inlined_call_operand.vmem [shape: bf16[2,16,256], index: 1, kind: input, shape index: {}, may-alias: {1,2}]   ;;  %s1318_s2 = inlined_call_operand.vmem [shape: bf16[2,16,256], index: 2, kind: input, shape index: {}, may-alias: {1,2}]   ;;  %s1319_s3 = inlined_call_operand.vmem [shape: f32[2,1,16], index: 3, kind: input, shape index: {}]   ;;  %s1320_s4 = inlined_call_operand.vmem [shape: bf16[2,8,128], index: 4, kind: output, shape index: {}]  }
   0x1   :  { %s1137_s17 = smov 0   ;;  %s1139_s18 = smov 0  }
   0x2   :  { %s1141_s19 = smov 0  }
   0x3 LB: > { %s33_s20 = sadd.s32 1, %s1096_s18  ;;  %p77_p1 = scmp.ne.s32.totalorder %s1088_s16, %s1084_s15  ;;  %s1100_s19 = sphi %s1141_s19, %s14_s19   ;;  %s1096_s18 = sphi %s1139_s18, %s1325_s18   ;;  %s1092_s17 = sphi %s1137_s17, %s1324_s17   ;;  %s1088_s16 = sphi %s1135_s16, %s1323_s16   ;;  %s1084_s15 = sphi %s1133_s15, %s1322_s15  }
   0x4   : > { %p35_p0 = scmp.ge.s32.totalorder %s33_s20, 2  ;;  %p78_p2 = scmp.eq.s32.totalorder %s1100_s19, 0 }
   0x5   : > { %s70_s23 = sadd.s32 1, %s1088_s16  ;;  %p952_p5 = scmp.ge.s32.totalorder %s1100_s19, 2 }
   0x6   : > { %s1327_s20 = smov (%p35_p0, %s33_s20), 0  ;;  %p1164_p3 = por %p78_p2, %p77_p1 }
   0x7   : > { %s65_s22 = ssub.s32 %s1096_s18, %s1327_s20  ;;  %187 = sbr.rel (%p952_p5) target bundleno = 24 (0x18), region = 16 }
   0x8   : > { %p68_p4 = scmp.eq.s32.totalorder %s65_s22, 0 }
   0xa   : > { %s1172_s24 = scalar_select %p68_p4, %s1088_s16, %s70_s23  }
   0xc   : > { %200 = sbr.rel (!%p1164_p3) target bundleno = 18 (0x12), region = 24  ;;  %s202_s25 = sand.u32 (%p1164_p3), 1, %s1088_s16  }
   0xd   : > { %s984_s26 = sshll.u32 (%p1164_p3), %s1096_s18, 4  ;;  %s953_s27 = sshll.u32 (%p1164_p3), %s202_s25, 3 }
   0xe   : > { %s210_s30 = scalar_lea.vmem (%p1164_p3), %s1317_s1, %s984_s26  ;;  %s204_s5 = scalar_lea.vmem (%p1164_p3), [#allocation5], %s953_s27 }
   0xf   : > { %v227_v0 = vld [vmem:[%s210_s30] sm:$0xf] (%p1164_p3)  ;;  %v229_v1 = vld [vmem:[%s210_s30 + $0x8] sm:$0xf] (%p1164_p3) }
  0x10   : > { %228 = vst [vmem:[%s204_s5] sm:$0xf] (%p1164_p3), %v227_v0 }
  0x11   : > { %230 = vst [vmem:[%s204_s5 + $0x4] sm:$0xf] %v229_v1 }
  0x12 PF: > { %258 = sbr.rel (!%p1164_p3) target bundleno = 24 (0x18), region = 65  ;;  %s260_s6 = sand.u32 (%p1164_p3), 1, %s1088_s16  }
  0x13   : > { %s985_s7 = sshll.u32 (%p1164_p3), %s1096_s18, 4  ;;  %s956_s8 = sshll.u32 (%p1164_p3), %s260_s6, 3 }
  0x14   : > { %s858_s11 = scalar_lea.vmem (%p1164_p3), %s1318_s2, %s985_s7  ;;  %s262_s12 = scalar_lea.vmem (%p1164_p3), [#allocation6], %s956_s8 }
  0x15   : > { %v959_v2 = vld [vmem:[%s858_s11 + $0x4] sm:$0xf] (%p1164_p3)  ;;  %v960_v3 = vld [vmem:[%s858_s11 + $0xc] sm:$0xf] (%p1164_p3) }
  0x16   : > { %287 = vst [vmem:[%s262_s12] sm:$0xf] (%p1164_p3), %v959_v2 }
  0x17   : > { %289 = vst [vmem:[%s262_s12 + $0x4] sm:$0xf] %v960_v3 }
  0x18 PF: > { %p961_p6 = scmp.ge.s32.totalorder %s1100_s19, 1  ;;  %p325_p7 = scmp.lt.s32.totalorder %s1100_s19, 3 }
  0x1a   : > { %p326_p8 = pnand %p961_p6, %p325_p7 }
  0x1b   : > { %s332_s13 = sand.u32 (!%p326_p8), 1, %s1084_s15   ;;  %p383_p9 = scmp.lt.s32.totalorder (!%p326_p8), %s1092_s17, 1 }
  0x1c   : > { %329 = sbr.rel (%p326_p8) target bundleno = 1154 (0x482), region = 110  ;;  %s1193_s14 = sshll.u32 (!%p326_p8), %s332_s13, 3 }
  0x1d   : > { %s334_s21 = scalar_lea.vmem (!%p326_p8), [#allocation5], %s1193_s14  ;;  %s1103_s29 = smov (!%p326_p8), 64  }
  0x1e   : > { %s1104_s30 = smov (!%p326_p8), 32   ;;  %s1105_s5 = smov (!%p326_p8), 96  }
  0x1f   : > { %s341_s6 = scalar_lea.vmem (!%p326_p8), [#allocation6], %s1193_s14 }
  0x21   : > { %vm410_vm0 = vcmask 261120   ;;  %v986_v4 = vld [vmem:[%s334_s21] sm:$0xff]  ;;  %s1329_s17 = smov (!%p383_p9, %s1092_s17), 1  ;;  %vm415_vm1 = vcmask 7168   ;;  %v1102_v10 = vmov -1e+30  }
  0x22   : > { %v446_v5 = vsel %vm410_vm0, %v986_v4, 0  ;;  %s964_s22 = sshll.u32 %s1329_s17, 2  ;;  %s397_s26 = scalar_lea.vmem %s1319_s3, %s1329_s17  ;;  %416 = vst.msk [vmem:[#allocation3] sm:$0xff] %vm415_vm1, %v1102_v10  ;;  %vm462_vm2 = vcmask 130048   ;;  %603 = vrot.lane.b32.xlu2 %v986_v4, %s1103_s29  ;;  %v1106_v16 = vmov 0   ;;  %v1107_v17 = vmov 0.0  }
  0x23   : > { %455 = vmatpush.bf16.xpose.msra.mxu0 %v446_v5  ;;  %s389_s28 = scalar_lea.vmem %s1316_s0, %s964_s22  ;;  %417 = vst.msk [vmem:[#allocation3 + $0x8] sm:$0xff] %vm415_vm1, %v1102_v10  ;;  %v1215_v11 = vld [vmem:[%s397_s26] ss:$0 sm:$0xff]  ;;  %1034 = vset.pattern.permute.xlu1 %v1106_v16  ;;  %v987_v27 = vld [vmem:[%s341_s6] sm:$0xff]  ;;  %vm811_vm3 = vcmask 523264   ;;  %vm813_vm4 = vcmask 785408   ;;  %s404_s9 = scalar_lea.vmem %s1320_s4, %s964_s22 }
  0x24   : > { %v424_v6 = vld [vmem:[%s389_s28] sm:$0xf]  ;;  %418 = vst.msk [vmem:[#allocation3 + $0x10] sm:$0xff] %vm415_vm1, %v1102_v10  ;;  %1035 = vset.pattern.permute.xlu2 %v1106_v16  ;;  %1036 = vset.pattern.permute.xlu0 %v1106_v16 }
  0x25   : > { %v425_v7 = vunpack.c.l.bf16 %v424_v6  ;;  %419 = vst.msk [vmem:[#allocation3 + $0x18] sm:$0xff] %vm415_vm1, %v1102_v10  ;;  %510 = vmatpush.bf16.msra.mxu1 %v987_v27 }
  0x26   : > { %420 = vst.msk [vmem:[#allocation4] sm:$0xff] %vm415_vm1, %v1107_v17 }
  0x27   : > { %v426_v8 = vmul.f32 0.17677669, %v425_v7  ;;  %411 = vst.msk [vmem:[#allocation2] sm:$0xff] %vm410_vm0, %v1107_v17 }
  0x28   : > { %412 = vst.msk [vmem:[#allocation2 + $0x8] sm:$0xff] %vm410_vm0, %v1107_v17 }
  0x29   : > { %v427_v9 = vpack.c.bf16 %v426_v8, %v426_v8  ;;  %413 = vst.msk [vmem:[#allocation2 + $0x10] sm:$0xff] %vm410_vm0, %v1107_v17  ;;  %v1231_v20 = vld [vmem:[#allocation3] sm:$0xff] }
  0x2a   : > { %682 = vrot.lane.b32.xlu2 %v986_v4, %s1104_s30  ;;  %414 = vst.msk [vmem:[#allocation2 + $0x18] sm:$0xff] %vm410_vm0, %v1107_v17  ;;  %v546_v58 = vld [vmem:[#allocation3 + $0x8] sm:$0xff] }
  0x2b   : > { %970 = vmatmul.msk.bf16.vlgmr.msra.gmra.mxu0 %vm410_vm0, %v427_v9  ;;  %v520_v18 = vunpack.c.l.b16 %v427_v9  ;;  %421 = vst.msk [vmem:[#allocation4 + $0x8] sm:$0xff] %vm415_vm1, %v1107_v17  ;;  %v625_v61 = vld [vmem:[#allocation3 + $0x10] sm:$0xff] }
  0x2c   : > { %422 = vst.msk [vmem:[#allocation4 + $0x10] sm:$0xff] %vm415_vm1, %v1107_v17  ;;  %v704_v54 = vld [vmem:[#allocation3 + $0x18] sm:$0xff] }
  0x2d   : > { %v521_v19 = vpack.c.b16 %v520_v18, %v520_v18  ;;  %423 = vst.msk [vmem:[#allocation4 + $0x18] sm:$0xff] %vm415_vm1, %v1107_v17  ;;  %v478_v8 = vld [vmem:[#allocation4] sm:$0xff] }
  0x32   : > { %680 = vrot.lane.b32.xlu2 %v521_v19, %s1104_s30 }
  0x7c   : > { %v604_v26 = vpop.permute.xlu2 %603 }
  0x7d   : > { %v609_v28 = vsel %vm410_vm0, %v604_v26, 0  ;;  %v486_v26 = vld [vmem:[#allocation2] sm:$0xff] }
  0x7e   : > { %618 = vmatpush.bf16.xpose.msrb.mxu1 %v609_v28 }
  0x84   : > { %v683_v29 = vpop.permute.xlu2 %682 }
  0x85   : > { %v688_v30 = vsel %vm410_vm0, %v683_v29, 0 }
  0x86   : > { %697 = vmatpush.bf16.xpose.msrb.mxu0 %v688_v30 }
  0x8c   : > { %v681_v31 = vpop.permute.xlu2 %680 }
  0x8d   : > { %980 = vmatmul.msk.bf16.vlgmr.msrb.gmra.mxu0 %vm410_vm0, %v681_v31 }
  0xa8   : > { %v457_v12 = vpop.f32.mrf.mxu0 }
  0xa9   : > { %v458_v13 = vadd.f32 %v1215_v11, %v457_v12 }
  0xab   : > { %v463_v14 = vsel %vm462_vm2, %v458_v13, -inf }
  0xac   : > { %464 = vmax.xlane.f32.xlu0 %v463_v14 }
  0xb0   : > { %v459_v15 = vpop.f32.mrf.mxu0 }
  0xc0   : > { %524 = vrot.lane.b32.xlu0 %v986_v4, %s1105_s5 }
 0x10a   : > { %v699_v39 = vpop.f32.mrf.mxu0 }
 0x10b   : > { %v1252_v40 = vadd.f32 %v1215_v11, %v699_v39 }
 0x10d   : > { %v705_v41 = vsel %vm462_vm2, %v1252_v40, -inf }
 0x10e   : > { %706 = vmax.xlane.f32.xlu0 %v705_v41  ;;  %v563_v41 = vld [vmem:[#allocation4 + $0x8] sm:$0xff] }
 0x112   : > { %v701_v42 = vpop.f32.mrf.mxu0 }
 0x11f   : > { %v465_v21 = vpop.xlane.xlu0 %464 }
 0x120   : > { %v1234_v22 = vmax.f32 %v1231_v20, %v465_v21 }
 0x122   : > { %v467_v23 = vsub.f32 %v1231_v20, %v1234_v22  ;;  %518 = vst.msk [vmem:[#allocation3] sm:$0xff] %vm415_vm1, %v1234_v22  ;;  %472 = vperm.xlu1 %1034, %v1234_v22  }
 0x124   : > { %v468_v63 = vmul.f32 1.442695, %v467_v23 }
 0x12a   : > { %522 = vrot.lane.b32.xlu1 %v521_v19, %s1105_s5 }
 0x132   : > { %601 = vrot.lane.b32.xlu1 %v521_v19, %s1103_s29  ;;  %v525_v24 = vpop.permute.xlu0 %524 }
 0x133   : > { %v530_v25 = vsel %vm410_vm0, %v525_v24, 0 }
 0x134   : > { %539 = vmatpush.bf16.xpose.msra.mxu2 %v530_v25 }
 0x181   : > { %v707_v55 = vpop.xlane.xlu0 %706 }
 0x182   : > { %v708_v56 = vmax.f32 %v704_v54, %v707_v55 }
 0x184   : > { %v709_v57 = vsub.f32 %v704_v54, %v708_v56  ;;  %758 = vst.msk [vmem:[#allocation3 + $0x18] sm:$0xff] %vm415_vm1, %v708_v56 }
 0x186   : > { %v710_v25 = vmul.f32 1.442695, %v709_v57  ;;  %v729_v57 = vld [vmem:[#allocation2 + $0x18] sm:$0xff] }
 0x194   : > { %v473_v32 = vpop.permute.xlu1 %472 }
 0x195   : > { %v475_v33 = vsub.f32 %v458_v13, %v473_v32 }
 0x197   : > { %v476_v34 = vmul.f32 1.442695, %v475_v33 }
 0x199   : > { %1038 = vpow2.f32 %v476_v34 }
 0x19a   : > { %1040 = vpow2.f32 %v468_v63 }
 0x19c   : > { %v523_v35 = vpop.permute.xlu1 %522 }
 0x19d   : > { %976 = vmatmul.msk.bf16.vlgmr.msra.gmra.mxu2 %vm410_vm0, %v523_v35 }
 0x19f   : > { %v1039_v36 = vpop.eup %1038 }
 0x1a0   : > { %v493_v37 = vpack.c.bf16 %v1039_v36, %v1039_v36  ;;  %v480_v53 = vsel %vm462_vm2, %v1039_v36, 0.0  ;;  %v1041_v5 = vpop.eup %1040 }
 0x1a1   : > { %v479_v9 = vmul.f32 %v1041_v5, %v478_v8 }
 0x1a2   : > { %975 = vmatmul.msk.bf16.vlgmr.msra.gmra.mxu1 %vm462_vm2, %v493_v37 }
 0x1a4   : > { %v602_v38 = vpop.permute.xlu1 %601 }
 0x1b2   : > { %978 = vmatmul.msk.bf16.vlgmr.msrb.gmra.mxu1 %vm410_vm0, %v602_v38 }
 0x21f   : > { %v1256_v43 = vpop.f32.mrf.mxu1 }
 0x220   : > { %v541_v44 = vpop.f32.mrf.mxu2 }
 0x221   : > { %v542_v45 = vadd.f32 %v1215_v11, %v541_v44 }
 0x223   : > { %v547_v46 = vsel %vm462_vm2, %v542_v45, -inf }
 0x224   : > { %548 = vmax.xlane.f32.xlu1 %v547_v46 }
 0x227   : > { %v514_v47 = vpop.f32.mrf.mxu1 }
 0x228   : > { %v543_v48 = vpop.f32.mrf.mxu2 }
 0x22f   : > { %v620_v49 = vpop.f32.mrf.mxu1 }
 0x230   : > { %v1261_v50 = vadd.f32 %v1215_v11, %v620_v49 }
 0x232   : > { %v626_v51 = vsel %vm462_vm2, %v1261_v50, -inf }
 0x233   : > { %627 = vmax.xlane.f32.xlu2 %v626_v51 }
 0x237   : > { %v622_v52 = vpop.f32.mrf.mxu1 }
 0x23d   : > { %579 = vrot.lane.b32.xlu1 %v987_v27, %s1105_s5 }
 0x245   : > { %658 = vrot.lane.b32.xlu1 %v987_v27, %s1103_s29 }
 0x26f   : > { %481 = vadd.xlane.f32.xlu1 %v480_v53 }
 0x297   : > { %v549_v59 = vpop.xlane.xlu1 %548 }
 0x298   : > { %v550_v60 = vmax.f32 %v546_v58, %v549_v59 }
 0x29a   : > { %600 = vst.msk [vmem:[#allocation3 + $0x8] sm:$0xff] %vm415_vm1, %v550_v60  ;;  %556 = vperm.xlu2 %1035, %v550_v60   ;;  %v551_v2 = vsub.f32 %v546_v58, %v550_v60 }
 0x29c   : > { %v552_v3 = vmul.f32 1.442695, %v551_v2 }
 0x29e   : > { %1042 = vpow2.f32 %v552_v3 }
 0x2a2   : > { %714 = vperm.xlu2 %1035, %v708_v56  }
 0x2a4   : > { %v1043_v7 = vpop.eup %1042 }
 0x2a5   : > { %v564_v42 = vmul.f32 %v1043_v7, %v563_v41 }
 0x2a6   : > { %v628_v62 = vpop.xlane.xlu2 %627 }
 0x2a7   : > { %v629_v0 = vmax.f32 %v625_v61, %v628_v62 }
 0x2a9   : > { %v630_v1 = vsub.f32 %v625_v61, %v629_v0  ;;  %679 = vst.msk [vmem:[#allocation3 + $0x10] sm:$0xff] %vm415_vm1, %v629_v0  ;;  %635 = vperm.xlu0 %1036, %v629_v0  }
 0x2aa   : > { %737 = vrot.lane.b32.xlu2 %v987_v27, %s1104_s30 }
 0x2ab   : > { %v631_v31 = vmul.f32 1.442695, %v630_v1  ;;  %v642_v1 = vld [vmem:[#allocation4 + $0x10] sm:$0xff] }
 0x2af   : > { %v580_v4 = vpop.permute.xlu1 %579 }
 0x2b0   : > { %592 = vmatpush.bf16.msra.mxu3 %v580_v4 }
 0x2b2   : > { %489 = vperm.xlu2 %1035, %v1041_v5  }
 0x2b7   : > { %v659_v6 = vpop.permute.xlu1 %658 }
 0x2b8   : > { %671 = vmatpush.bf16.msrb.mxu3 %v659_v6  ;;  %v650_v6 = vld [vmem:[#allocation2 + $0x10] sm:$0xff] }
 0x2ba   : > { %574 = vperm.xlu2 %1035, %v1043_v7  }
 0x2e2   : > { %v482_v10 = vpop.xlane.xlu1 %481 }
 0x2e3   : > { %v483_v11 = vadd.f32 %v482_v10, %v479_v9 }
 0x2e5   : > { %485 = vst.msk [vmem:[#allocation4] sm:$0xff] %vm415_vm1, %v483_v11 }
 0x2ec   : > { %v762_v39 = vld [vmem:[#allocation4] sm:$0xff] }
 0x2f4   : > { %v557_v12 = vpop.permute.xlu2 %556 }
 0x2f5   : > { %v559_v13 = vsub.f32 %v542_v45, %v557_v12  ;;  %v721_v45 = vld [vmem:[#allocation4 + $0x18] sm:$0xff] }
 0x2f7   : > { %v560_v14 = vmul.f32 1.442695, %v559_v13 }
 0x2f9   : > { %1044 = vpow2.f32 %v560_v14 }
 0x2fc   : > { %v715_v15 = vpop.permute.xlu2 %714 }
 0x2fd   : > { %v717_v16 = vsub.f32 %v1252_v40, %v715_v15 }
 0x2ff   : > { %v1045_v17 = vpop.eup %1044  ;;  %v718_v18 = vmul.f32 1.442695, %v717_v16 }
 0x300   : > { %v565_v19 = vsel %vm462_vm2, %v1045_v17, 0.0  ;;  %v578_v20 = vpack.c.bf16 %v1045_v17, %v1045_v17 }
 0x301   : > { %1046 = vpow2.f32 %v718_v18  ;;  %566 = vadd.xlane.f32.xlu0 %v565_v19 }
 0x302   : > { %977 = vmatmul.msk.bf16.vlgmr.msra.gmra.mxu3 %vm462_vm2, %v578_v20  ;;  %1048 = vpow2.f32 %v710_v25 }
 0x303   : > { %1050 = vpow2.f32 %v631_v31 }
 0x304   : > { %v738_v21 = vpop.permute.xlu2 %737 }
 0x305   : > { %750 = vmatpush.bf16.msrb.mxu2 %v738_v21 }
 0x307   : > { %v1047_v22 = vpop.eup %1046 }
 0x308   : > { %v723_v23 = vsel %vm462_vm2, %v1047_v22, 0.0  ;;  %v736_v24 = vpack.c.bf16 %v1047_v22, %v1047_v22  ;;  %v1049_v30 = vpop.eup %1048 }
 0x309   : > { %724 = vadd.xlane.f32.xlu1 %v723_v23  ;;  %v1051_v35 = vpop.eup %1050  ;;  %v722_v46 = vmul.f32 %v1049_v30, %v721_v45 }
 0x30a   : > { %981 = vmatmul.msk.bf16.vlgmr.msrb.gmra.mxu2 %vm462_vm2, %v736_v24  ;;  %v643_v2 = vmul.f32 %v1051_v35, %v642_v1 }
 0x30c   : > { %v490_v27 = vpop.permute.xlu2 %489 }
 0x30d   : > { %v492_v28 = vmul.f32 %v490_v27, %v486_v26 }
 0x30f   : > { %v516_v29 = vadd.f32 %v1256_v43, %v492_v28 }
 0x311   : > { %517 = vst.msk [vmem:[#allocation2] sm:$0xff] %vm410_vm0, %v516_v29 }
 0x314   : > { %v575_v51 = vpop.permute.xlu2 %574 }
 0x315   : > { %732 = vperm.xlu0 %1036, %v1049_v30  }
 0x318   : > { %v764_v23 = vld [vmem:[#allocation2] sm:$0xff] }
 0x31b   : > { %v636_v32 = vpop.permute.xlu0 %635 }
 0x31c   : > { %v638_v33 = vsub.f32 %v1261_v50, %v636_v32  ;;  %v571_v50 = vld [vmem:[#allocation2 + $0x8] sm:$0xff] }
 0x31d   : > { %v577_v52 = vmul.f32 %v575_v51, %v571_v50 }
 0x31e   : > { %v639_v34 = vmul.f32 1.442695, %v638_v33 }
 0x320   : > { %1052 = vpow2.f32 %v639_v34 }
 0x321   : > { %1054 = vrcp.f32 %v762_v39 }
 0x322   : > { %653 = vperm.xlu1 %1034, %v1051_v35  }
 0x326   : > { %v1053_v36 = vpop.eup %1052 }
 0x327   : > { %v644_v37 = vsel %vm462_vm2, %v1053_v36, 0.0  ;;  %v657_v38 = vpack.c.bf16 %v1053_v36, %v1053_v36  ;;  %v1055_v40 = vpop.eup %1054 }
 0x328   : > { %645 = vadd.xlane.f32.xlu2 %v644_v37 }
 0x329   : > { %979 = vmatmul.msk.bf16.vlgmr.msrb.gmra.mxu3 %vm462_vm2, %v657_v38 }
 0x340   : > { %767 = vperm.xlu2 %1035, %v1055_v40  }
 0x374   : > { %v567_v43 = vpop.xlane.xlu0 %566 }
 0x375   : > { %v568_v44 = vadd.f32 %v567_v43, %v564_v42 }
 0x377   : > { %569 = vst.msk [vmem:[#allocation4 + $0x8] sm:$0xff] %vm415_vm1, %v568_v44 }
 0x37c   : > { %v725_v47 = vpop.xlane.xlu1 %724 }
 0x37d   : > { %v726_v48 = vadd.f32 %v725_v47, %v722_v46 }
 0x37e   : > { %v771_v49 = vld [vmem:[#allocation4 + $0x8] sm:$0xff] }
 0x37f   : > { %727 = vst.msk [vmem:[#allocation4 + $0x18] sm:$0xff] %vm415_vm1, %v726_v48  ;;  %1056 = vrcp.f32 %v771_v49 }
 0x385   : > { %v1057_v53 = vpop.eup %1056  ;;  %v594_v54 = vpop.f32.mrf.mxu3 }
 0x386   : > { %v598_v55 = vadd.f32 %v594_v54, %v577_v52  ;;  %776 = vperm.xlu0 %1036, %v1057_v53   ;;  %v789_v56 = vld [vmem:[#allocation4 + $0x18] sm:$0xff] }
 0x387   : > { %1058 = vrcp.f32 %v789_v56  ;;  %v733_v58 = vpop.permute.xlu0 %732 }
 0x388   : > { %599 = vst.msk [vmem:[#allocation2 + $0x8] sm:$0xff] %vm410_vm0, %v598_v55  ;;  %v735_v59 = vmul.f32 %v733_v58, %v729_v57 }
 0x38d   : > { %v1059_v60 = vpop.eup %1058  ;;  %v596_v61 = vpop.f32.mrf.mxu3 }
 0x38e   : > { %v752_v62 = vpop.f32.mrf.mxu2  ;;  %794 = vperm.xlu0 %1036, %v1059_v60  }
 0x38f   : > { %v756_v63 = vadd.f32 %v752_v62, %v735_v59  ;;  %v773_v13 = vld [vmem:[#allocation2 + $0x8] sm:$0xff] }
 0x391   : > { %757 = vst.msk [vmem:[#allocation2 + $0x18] sm:$0xff] %vm410_vm0, %v756_v63 }
 0x394   : > { %v654_v7 = vpop.permute.xlu1 %653 }
 0x395   : > { %v656_v8 = vmul.f32 %v654_v7, %v650_v6 }
 0x396   : > { %v754_v0 = vpop.f32.mrf.mxu2 }
 0x398   : > { %v791_v16 = vld [vmem:[#allocation2 + $0x18] sm:$0xff] }
 0x39b   : > { %v646_v3 = vpop.xlane.xlu2 %645 }
 0x39c   : > { %v647_v4 = vadd.f32 %v646_v3, %v643_v2 }
 0x39e   : > { %648 = vst.msk [vmem:[#allocation4 + $0x10] sm:$0xff] %vm415_vm1, %v647_v4 }
 0x3a3   : > { %v768_v22 = vpop.permute.xlu2 %767 }
 0x3a4   : > { %v770_v25 = vmul.f32 %v768_v22, %v764_v23 }
 0x3a5   : > { %v780_v5 = vld [vmem:[#allocation4 + $0x10] sm:$0xff] }
 0x3a6   : > { %1060 = vrcp.f32 %v780_v5 }
 0x3ac   : > { %v1061_v9 = vpop.eup %1060  ;;  %v673_v10 = vpop.f32.mrf.mxu3 }
 0x3ad   : > { %v677_v11 = vadd.f32 %v673_v10, %v656_v8  ;;  %785 = vperm.xlu1 %1034, %v1061_v9  }
 0x3af   : > { %678 = vst.msk [vmem:[#allocation2 + $0x10] sm:$0xff] %vm410_vm0, %v677_v11 }
 0x3b4   : > { %v675_v12 = vpop.f32.mrf.mxu3 }
 0x3b6   : > { %v782_v19 = vld [vmem:[#allocation2 + $0x10] sm:$0xff] }
 0x3f8   : > { %v777_v14 = vpop.permute.xlu0 %776 }
 0x3f9   : > { %v779_v15 = vmul.f32 %v777_v14, %v773_v13 }
 0x3fb   : > { %799 = vrot.lane.b32.xlu1 %v779_v15, %s1104_s30 }
 0x400   : > { %v795_v17 = vpop.permute.xlu0 %794 }
 0x401   : > { %v797_v18 = vmul.f32 %v795_v17, %v791_v16 }
 0x403   : > { %807 = vrot.lane.b32.xlu0 %v797_v18, %s1105_s5 }
 0x41f   : > { %v786_v20 = vpop.permute.xlu1 %785 }
 0x420   : > { %v788_v21 = vmul.f32 %v786_v20, %v782_v19 }
 0x422   : > { %803 = vrot.lane.b32.xlu2 %v788_v21, %s1103_s29 }
 0x46d   : > { %v800_v24 = vpop.permute.xlu1 %799 }
 0x46e   : > { %v810_v26 = vsel %vm410_vm0, %v770_v25, %v800_v24 }
 0x475   : > { %v808_v28 = vpop.permute.xlu0 %807 }
 0x47c   : > { %v804_v27 = vpop.permute.xlu2 %803 }
 0x47d   : > { %v812_v29 = vsel %vm811_vm3, %v810_v26, %v804_v27 }
 0x47e   : > { %v814_v30 = vsel %vm813_vm4, %v812_v29, %v808_v28 }
 0x47f   : > { %v815_v31 = vpack.c.bf16 %v814_v30, %v814_v30 }
 0x481   : > { %816 = vst [vmem:[%s404_s9] sm:$0xf] %v815_v31 }
 0x482 PF: > { %s14_s19 = sadd.s32 1, %s1100_s19   ;;  %s1322_s15 = smov %s1088_s16 }
 0x483   : > { %p11_p10 = scmp.ge.s32.totalorder %s14_s19, 4   ;;  %s1323_s16 = smov %s1172_s24 }
 0x484   : > { %s1324_s17 = smov %s1096_s18  ;;  %s1325_s18 = smov %s1327_s20 }
 0x485   :  { %13 = sbr.rel (!%p11_p10) target bundleno = 3 (0x3), region = 184 }

// kernel: bert_cross_layer.16
= control target key start
LH: loop header
LB: loop body
LE: loop exit
PB: predicated region body
PF: predicated region fallthrough
CT: control target
= control target key end

     0   :  { %8 = vsyncpa [#allocation4], 0  ;;  %s646_s15 = smov [#allocation3]   ;;  %s647_s17 = smov 256   ;;  %s704_s0 = inlined_call_operand.vmem [shape: bf16[16,128], index: 0, kind: input, shape index: {}]   ;;  %s705_s1 = inlined_call_operand.hbm [shape: bf16[128,512], index: 1, kind: input, shape index: {}]   ;;  %s706_s2 = inlined_call_operand.vmem [shape: f32[1,512], index: 2, kind: input, shape index: {}]   ;;  %s707_s3 = inlined_call_operand.vmem [shape: bf16[16,512], index: 3, kind: output, shape index: {}]  }
   0x1   :  { %s15_s14 = sshll.u32 %s705_s1, 4  ;;  %s17_s16 = sshll.u32 %s646_s15, 4  ;;  %s16_s14 = int_to_ptr.hbm [resolvable:$true] %s15_s14  ;;  %s18_s16 = int_to_ptr.vmem [resolvable:$true] %s17_s16 }
   0x2   :  { %s648_s18 = smov 16  }
   0x3   :  { %23 = dma.hbm_to_vmem [thread:$0]  %s16_s14, 4096, %s18_s16, [#allocation4], %s647_s17, %s647_s17, %s648_s18  }
   0x4   :  { %644 = dma.done.wait [#allocation4], 4096  }
   0x5   :  { %645 = vsyncadd [#allocation4], 4294963200  ;;  %v554_v0 = vld [vmem:[#allocation3 + $0xe0] sm:$0xf]  ;;  %v599_v1 = vld [vmem:[#allocation3 + $0xec] sm:$0xf0] }
   0x6   :  { %v597_v2 = vld [vmem:[#allocation3 + $0xe4] sm:$0xf]  ;;  %v555_v3 = vor.u32 %v599_v1, %v554_v0  ;;  %v556_v4 = vld [vmem:[#allocation3 + $0xf0] sm:$0xf0]  ;;  %v562_v5 = vld [vmem:[#allocation3 + $0xe8] sm:$0xf] }
   0x7   :  { %v600_v6 = vld [vmem:[#allocation3 + $0xf4] sm:$0xf0]  ;;  %v559_v7 = vor.u32 %v597_v2, %v556_v4  ;;  %v598_v9 = vld [vmem:[#allocation3 + $0xec] sm:$0xf]  ;;  %v564_v10 = vld [vmem:[#allocation3 + $0xf8] sm:$0xf0] }
   0x8   :  { %v563_v8 = vor.u32 %v600_v6, %v562_v5  ;;  %v538_v11 = vld [vmem:[#allocation3 + $0xc0] sm:$0xf]  ;;  %250 = vmatpush.bf16.msra.mxu0 %v555_v3  ;;  %v567_v12 = vor.u32 %v598_v9, %v564_v10  ;;  %v595_v13 = vld [vmem:[#allocation3 + $0xcc] sm:$0xf0]  ;;  %v593_v14 = vld [vmem:[#allocation3 + $0xc4] sm:$0xf] }
   0x9   :  { %v540_v15 = vld [vmem:[#allocation3 + $0xd0] sm:$0xf0]  ;;  %264 = vmatpush.bf16.msra.mxu1 %v559_v7  ;;  %v539_v16 = vor.u32 %v595_v13, %v538_v11  ;;  %v546_v18 = vld [vmem:[#allocation3 + $0xc8] sm:$0xf]  ;;  %v596_v19 = vld [vmem:[#allocation3 + $0xd4] sm:$0xf0] }
   0xa   :  { %278 = vmatpush.bf16.msra.mxu2 %v563_v8  ;;  %v543_v17 = vor.u32 %v593_v14, %v540_v15  ;;  %v594_v20 = vld [vmem:[#allocation3 + $0xcc] sm:$0xf]  ;;  %292 = vmatpush.bf16.msra.mxu3 %v567_v12  ;;  %v547_v21 = vor.u32 %v596_v19, %v546_v18  ;;  %v548_v22 = vld [vmem:[#allocation3 + $0xd8] sm:$0xf0]  ;;  %v522_v23 = vld [vmem:[#allocation3 + $0xa0] sm:$0xf] }
   0xb   :  { %v591_v24 = vld [vmem:[#allocation3 + $0xac] sm:$0xf0]  ;;  %v551_v25 = vor.u32 %v594_v20, %v548_v22  ;;  %v589_v26 = vld [vmem:[#allocation3 + $0xa4] sm:$0xf]  ;;  %v524_v27 = vld [vmem:[#allocation3 + $0xb0] sm:$0xf0] }
   0xc   :  { %v530_v28 = vld [vmem:[#allocation3 + $0xa8] sm:$0xf]  ;;  %251 = vmatpush.bf16.msra.mxu0 %v539_v16  ;;  %v523_v29 = vor.u32 %v591_v24, %v522_v23  ;;  %v592_v30 = vld [vmem:[#allocation3 + $0xb4] sm:$0xf0]  ;;  %v590_v31 = vld [vmem:[#allocation3 + $0xac] sm:$0xf]  ;;  %v527_v33 = vor.u32 %v589_v26, %v524_v27 }
   0xd   :  { %v532_v32 = vld [vmem:[#allocation3 + $0xb8] sm:$0xf0]  ;;  %265 = vmatpush.bf16.msra.mxu1 %v543_v17  ;;  %v531_v34 = vor.u32 %v592_v30, %v530_v28  ;;  %v506_v35 = vld [vmem:[#allocation3 + $0x80] sm:$0xf]  ;;  %v587_v36 = vld [vmem:[#allocation3 + $0x8c] sm:$0xf0] }
   0xe   :  { %279 = vmatpush.bf16.msra.mxu2 %v547_v21  ;;  %v585_v37 = vld [vmem:[#allocation3 + $0x84] sm:$0xf]  ;;  %293 = vmatpush.bf16.msra.mxu3 %v551_v25  ;;  %v535_v38 = vor.u32 %v590_v31, %v532_v32  ;;  %v508_v39 = vld [vmem:[#allocation3 + $0x90] sm:$0xf0]  ;;  %v514_v40 = vld [vmem:[#allocation3 + $0x88] sm:$0xf]  ;;  %v507_v44 = vor.u32 %v587_v36, %v506_v35 }
   0xf   :  { %v588_v41 = vld [vmem:[#allocation3 + $0x94] sm:$0xf0]  ;;  %v586_v42 = vld [vmem:[#allocation3 + $0x8c] sm:$0xf]  ;;  %v516_v43 = vld [vmem:[#allocation3 + $0x98] sm:$0xf0]  ;;  %v511_v45 = vor.u32 %v585_v37, %v508_v39 }
  0x10   :  { %252 = vmatpush.bf16.msra.mxu0 %v523_v29  ;;  %v515_v46 = vor.u32 %v588_v41, %v514_v40  ;;  %v490_v47 = vld [vmem:[#allocation3 + $0x60] sm:$0xf]  ;;  %v583_v48 = vld [vmem:[#allocation3 + $0x6c] sm:$0xf0]  ;;  %v581_v49 = vld [vmem:[#allocation3 + $0x64] sm:$0xf]  ;;  %v519_v50 = vor.u32 %v586_v42, %v516_v43 }
  0x11   :  { %266 = vmatpush.bf16.msra.mxu1 %v527_v33  ;;  %v492_v51 = vld [vmem:[#allocation3 + $0x70] sm:$0xf0]  ;;  %v498_v52 = vld [vmem:[#allocation3 + $0x68] sm:$0xf]  ;;  %v584_v53 = vld [vmem:[#allocation3 + $0x74] sm:$0xf0]  ;;  %v491_v56 = vor.u32 %v583_v48, %v490_v47 }
  0x12   :  { %280 = vmatpush.bf16.msra.mxu2 %v531_v34  ;;  %294 = vmatpush.bf16.msra.mxu3 %v535_v38  ;;  %v582_v54 = vld [vmem:[#allocation3 + $0x6c] sm:$0xf]  ;;  %v500_v55 = vld [vmem:[#allocation3 + $0x78] sm:$0xf0]  ;;  %v495_v57 = vor.u32 %v581_v49, %v492_v51  ;;  %v499_v58 = vor.u32 %v584_v53, %v498_v52  ;;  %v474_v59 = vld [vmem:[#allocation3 + $0x40] sm:$0xf] }
  0x13   :  { %v579_v60 = vld [vmem:[#allocation3 + $0x4c] sm:$0xf0]  ;;  %v577_v61 = vld [vmem:[#allocation3 + $0x44] sm:$0xf]  ;;  %v503_v62 = vor.u32 %v582_v54, %v500_v55  ;;  %v476_v63 = vld [vmem:[#allocation3 + $0x50] sm:$0xf0] }
  0x14   :  { %253 = vmatpush.bf16.msra.mxu0 %v507_v44  ;;  %v482_v0 = vld [vmem:[#allocation3 + $0x48] sm:$0xf]  ;;  %v580_v1 = vld [vmem:[#allocation3 + $0x54] sm:$0xf0]  ;;  %v578_v2 = vld [vmem:[#allocation3 + $0x4c] sm:$0xf]  ;;  %v475_v4 = vor.u32 %v579_v60, %v474_v59  ;;  %v479_v5 = vor.u32 %v577_v61, %v476_v63 }
  0x15   :  { %267 = vmatpush.bf16.msra.mxu1 %v511_v45  ;;  %v484_v3 = vld [vmem:[#allocation3 + $0x58] sm:$0xf0]  ;;  %v483_v6 = vor.u32 %v580_v1, %v482_v0  ;;  %v458_v7 = vld [vmem:[#allocation3 + $0x20] sm:$0xf]  ;;  %v575_v8 = vld [vmem:[#allocation3 + $0x2c] sm:$0xf0] }
  0x16   :  { %281 = vmatpush.bf16.msra.mxu2 %v515_v46  ;;  %295 = vmatpush.bf16.msra.mxu3 %v519_v50  ;;  %v573_v9 = vld [vmem:[#allocation3 + $0x24] sm:$0xf]  ;;  %v487_v10 = vor.u32 %v578_v2, %v484_v3  ;;  %v460_v11 = vld [vmem:[#allocation3 + $0x30] sm:$0xf0]  ;;  %v466_v12 = vld [vmem:[#allocation3 + $0x28] sm:$0xf]  ;;  %v459_v16 = vor.u32 %v575_v8, %v458_v7 }
  0x17   :  { %v576_v13 = vld [vmem:[#allocation3 + $0x34] sm:$0xf0]  ;;  %v574_v14 = vld [vmem:[#allocation3 + $0x2c] sm:$0xf]  ;;  %v468_v15 = vld [vmem:[#allocation3 + $0x38] sm:$0xf0]  ;;  %v463_v17 = vor.u32 %v573_v9, %v460_v11 }
  0x18   :  { %254 = vmatpush.bf16.msra.mxu0 %v491_v56  ;;  %v467_v18 = vor.u32 %v576_v13, %v466_v12  ;;  %v442_v19 = vld [vmem:[#allocation3] sm:$0xf]  ;;  %v571_v20 = vld [vmem:[#allocation3 + $0xc] sm:$0xf0]  ;;  %v569_v21 = vld [vmem:[#allocation3 + $0x4] sm:$0xf]  ;;  %v471_v22 = vor.u32 %v574_v14, %v468_v15 }
  0x19   :  { %268 = vmatpush.bf16.msra.mxu1 %v495_v57  ;;  %v444_v23 = vld [vmem:[#allocation3 + $0x10] sm:$0xf0]  ;;  %v450_v24 = vld [vmem:[#allocation3 + $0x8] sm:$0xf]  ;;  %v572_v25 = vld [vmem:[#allocation3 + $0x14] sm:$0xf0]  ;;  %v443_v28 = vor.u32 %v571_v20, %v442_v19 }
  0x1a   :  { %282 = vmatpush.bf16.msra.mxu2 %v499_v58  ;;  %296 = vmatpush.bf16.msra.mxu3 %v503_v62  ;;  %v570_v26 = vld [vmem:[#allocation3 + $0xc] sm:$0xf]  ;;  %v452_v27 = vld [vmem:[#allocation3 + $0x18] sm:$0xf0]  ;;  %v447_v29 = vor.u32 %v569_v21, %v444_v23  ;;  %v451_v30 = vor.u32 %v572_v25, %v450_v24  ;;  %v568_v32 = vld [vmem:[%s704_s0] sm:$0xff] }
  0x1b   :  { %v455_v31 = vor.u32 %v570_v26, %v452_v27  ;;  %v333_v33 = vld [vmem:[%s706_s2] sm:$0xf] }
  0x1c   :  { %255 = vmatpush.bf16.msra.mxu0 %v475_v4  ;;  %v335_v34 = vperm.slane %v333_v33, 0  ;;  %v336_v35 = vperm.slane %v333_v33, 1  ;;  %v337_v42 = vperm.slane %v333_v33, 2  ;;  %v338_v44 = vperm.slane %v333_v33, 3 }
  0x1d   :  { %269 = vmatpush.bf16.msra.mxu1 %v479_v5 }
  0x1e   :  { %283 = vmatpush.bf16.msra.mxu2 %v483_v6  ;;  %297 = vmatpush.bf16.msra.mxu3 %v487_v10 }
  0x20   :  { %256 = vmatpush.bf16.msra.mxu0 %v459_v16 }
  0x21   :  { %270 = vmatpush.bf16.msra.mxu1 %v463_v17 }
  0x22   :  { %284 = vmatpush.bf16.msra.mxu2 %v467_v18  ;;  %298 = vmatpush.bf16.msra.mxu3 %v471_v22 }
  0x24   :  { %257 = vmatpush.bf16.msra.mxu0 %v443_v28 }
  0x25   :  { %271 = vmatpush.bf16.msra.mxu1 %v447_v29 }
  0x26   :  { %285 = vmatpush.bf16.msra.mxu2 %v451_v30  ;;  %299 = vmatpush.bf16.msra.mxu3 %v455_v31 }
  0x27   :  { %258 = vmatmul.bf16.vlgmr.msra.gmra.mxu0 %v568_v32 }
  0x28   :  { %272 = vmatmul.bf16.vlgmr.msra.gmra.mxu1 %v568_v32 }
  0x29   :  { %286 = vmatmul.bf16.vlgmr.msra.gmra.mxu2 %v568_v32  ;;  %300 = vmatmul.bf16.vlgmr.msra.gmra.mxu3 %v568_v32 }
  0xa4   :  { %v259_v36 = vpop.f32.mrf.mxu0 }
  0xa5   :  { %v343_v37 = vadd.f32 %v335_v34, %v259_v36  ;;  %v273_v38 = vpop.f32.mrf.mxu1 }
  0xa6   :  { %v344_v39 = vadd.f32 %v336_v35, %v273_v38 }
  0xa7   :  { %v359_v40 = vmul.f32 0.044715, %v343_v37  ;;  %v351_v14 = vmul.f32 0.5, %v343_v37 }
  0xa8   :  { %v360_v41 = vmul.f32 0.044715, %v344_v39  ;;  %v352_v19 = vmul.f32 0.5, %v344_v39 }
  0xa9   :  { %v367_v43 = vmul.f32 %v359_v40, %v343_v37 }
  0xaa   :  { %v368_v45 = vmul.f32 %v360_v41, %v344_v39 }
  0xab   :  { %v375_v46 = vmul.f32 %v367_v43, %v343_v37 }
  0xac   :  { %v287_v47 = vpop.f32.mrf.mxu2  ;;  %v376_v48 = vmul.f32 %v368_v45, %v344_v39  ;;  %v301_v50 = vpop.f32.mrf.mxu3 }
  0xad   :  { %v345_v49 = vadd.f32 %v337_v42, %v287_v47  ;;  %v261_v51 = vpop.f32.mrf.mxu0  ;;  %v383_v52 = vadd.f32 %v375_v46, %v343_v37  ;;  %v346_v53 = vadd.f32 %v338_v44, %v301_v50  ;;  %v275_v55 = vpop.f32.mrf.mxu1 }
  0xae   :  { %v678_v54 = vadd.f32 %v335_v34, %v261_v51  ;;  %v384_v56 = vadd.f32 %v376_v48, %v344_v39  ;;  %v680_v58 = vadd.f32 %v336_v35, %v275_v55 }
  0xaf   :  { %v361_v57 = vmul.f32 0.044715, %v345_v49  ;;  %v391_v59 = vmul.f32 0.7978846, %v383_v52  ;;  %v362_v60 = vmul.f32 0.044715, %v346_v53 }
  0xb0   :  { %v392_v61 = vmul.f32 0.7978846, %v384_v56  ;;  %v363_v63 = vmul.f32 0.044715, %v678_v54  ;;  %v364_v1 = vmul.f32 0.044715, %v680_v58 }
  0xb1   :  { %v369_v62 = vmul.f32 %v361_v57, %v345_v49  ;;  %604 = vtanh.f32 %v391_v59  ;;  %v370_v0 = vmul.f32 %v362_v60, %v346_v53  ;;  %v353_v40 = vmul.f32 0.5, %v345_v49 }
  0xb2   :  { %606 = vtanh.f32 %v392_v61  ;;  %v371_v3 = vmul.f32 %v363_v63, %v678_v54  ;;  %v372_v5 = vmul.f32 %v364_v1, %v680_v58  ;;  %v355_v48 = vmul.f32 0.5, %v678_v54 }
  0xb3   :  { %v377_v2 = vmul.f32 %v369_v62, %v345_v49  ;;  %v378_v4 = vmul.f32 %v370_v0, %v346_v53  ;;  %v356_v52 = vmul.f32 0.5, %v680_v58 }
  0xb4   :  { %v289_v6 = vpop.f32.mrf.mxu2  ;;  %v379_v8 = vmul.f32 %v371_v3, %v678_v54  ;;  %v303_v10 = vpop.f32.mrf.mxu3  ;;  %v380_v12 = vmul.f32 %v372_v5, %v680_v58 }
  0xb5   :  { %v385_v7 = vadd.f32 %v377_v2, %v345_v49  ;;  %v349_v9 = vadd.f32 %v337_v42, %v289_v6  ;;  %v386_v11 = vadd.f32 %v378_v4, %v346_v53  ;;  %v350_v13 = vadd.f32 %v338_v44, %v303_v10 }
  0xb6   :  { %v387_v16 = vadd.f32 %v379_v8, %v678_v54  ;;  %v388_v21 = vadd.f32 %v380_v12, %v680_v58  ;;  %v354_v44 = vmul.f32 0.5, %v346_v53 }
  0xb7   :  { %v393_v15 = vmul.f32 0.7978846, %v385_v7  ;;  %v365_v17 = vmul.f32 0.044715, %v349_v9  ;;  %v605_v18 = vpop.eup %604  ;;  %v394_v20 = vmul.f32 0.7978846, %v386_v11 }
  0xb8   :  { %v366_v22 = vmul.f32 0.044715, %v350_v13  ;;  %v607_v23 = vpop.eup %606  ;;  %v407_v24 = vadd.f32 1.0, %v605_v18  ;;  %v395_v25 = vmul.f32 0.7978846, %v387_v16  ;;  %v357_v61 = vmul.f32 0.5, %v349_v9 }
  0xb9   :  { %608 = vtanh.f32 %v393_v15  ;;  %v373_v26 = vmul.f32 %v365_v17, %v349_v9  ;;  %v408_v27 = vadd.f32 1.0, %v607_v23  ;;  %v396_v28 = vmul.f32 0.7978846, %v388_v21 }
  0xba   :  { %610 = vtanh.f32 %v394_v20  ;;  %v374_v29 = vmul.f32 %v366_v22, %v350_v13  ;;  %v415_v30 = vmul.f32 %v407_v24, %v351_v14  ;;  %v358_v54 = vmul.f32 0.5, %v350_v13 }
  0xbb   :  { %612 = vtanh.f32 %v395_v25  ;;  %v381_v31 = vmul.f32 %v373_v26, %v349_v9  ;;  %v416_v32 = vmul.f32 %v408_v27, %v352_v19 }
  0xbc   :  { %614 = vtanh.f32 %v396_v28  ;;  %v382_v33 = vmul.f32 %v374_v29, %v350_v13 }
  0xbd   :  { %v389_v34 = vadd.f32 %v381_v31, %v349_v9  ;;  %v423_v35 = vpack.c.bf16 %v416_v32, %v415_v30 }
  0xbe   :  { %v390_v36 = vadd.f32 %v382_v33, %v350_v13 }
  0xbf   :  { %v609_v37 = vpop.eup %608  ;;  %v397_v38 = vmul.f32 0.7978846, %v389_v34  ;;  %427 = vst [vmem:[%s707_s3] sm:$0xff] %v423_v35 }
  0xc0   :  { %v611_v39 = vpop.eup %610  ;;  %v409_v41 = vadd.f32 1.0, %v609_v37  ;;  %v398_v42 = vmul.f32 0.7978846, %v390_v36 }
  0xc1   :  { %v613_v43 = vpop.eup %612  ;;  %v410_v45 = vadd.f32 1.0, %v611_v39  ;;  %616 = vtanh.f32 %v397_v38 }
  0xc2   :  { %v615_v46 = vpop.eup %614  ;;  %v417_v47 = vmul.f32 %v409_v41, %v353_v40  ;;  %v411_v50 = vadd.f32 1.0, %v613_v43  ;;  %618 = vtanh.f32 %v398_v42 }
  0xc3   :  { %v418_v51 = vmul.f32 %v410_v45, %v354_v44  ;;  %v412_v55 = vadd.f32 1.0, %v615_v46 }
  0xc4   :  { %v419_v56 = vmul.f32 %v411_v50, %v355_v48 }
  0xc5   :  { %v424_v57 = vpack.c.bf16 %v418_v51, %v417_v47  ;;  %v420_v59 = vmul.f32 %v412_v55, %v356_v52 }
  0xc7   :  { %v617_v49 = vpop.eup %616  ;;  %428 = vst [vmem:[%s707_s3 + $0x8] sm:$0xff] %v424_v57  ;;  %v425_v53 = vpack.c.bf16 %v420_v59, %v419_v56 }
  0xc8   :  { %v619_v60 = vpop.eup %618  ;;  %v413_v62 = vadd.f32 1.0, %v617_v49 }
  0xc9   :  { %429 = vst [vmem:[%s707_s3 + $0x10] sm:$0xff] %v425_v53  ;;  %v414_v63 = vadd.f32 1.0, %v619_v60 }
  0xca   :  { %v421_v58 = vmul.f32 %v413_v62, %v357_v61 }
  0xcb   :  { %v422_v0 = vmul.f32 %v414_v63, %v358_v54 }
  0xcd   :  { %v426_v1 = vpack.c.bf16 %v422_v0, %v421_v58 }
  0xcf   :  { %430 = vst [vmem:[%s707_s3 + $0x18] sm:$0xff] %v426_v1 }
  0xd0   :  { %435 = vsyncpa [#allocation4], 1 }

// kernel: bert_cross_layer.17
= control target key start
LH: loop header
LB: loop body
LE: loop exit
PB: predicated region body
PF: predicated region fallthrough
CT: control target
= control target key end

     0   :  { %11 = vsyncpa [#allocation4], 0  ;;  %s821_s0 = inlined_call_operand.vmem [shape: bf16[16,512], index: 0, kind: input, shape index: {}]   ;;  %s822_s1 = inlined_call_operand.hbm [shape: bf16[512,128], index: 1, kind: input, shape index: {}]   ;;  %s823_s2 = inlined_call_operand.vmem [shape: f32[1,128], index: 2, kind: input, shape index: {}]   ;;  %s824_s3 = inlined_call_operand.vmem [shape: bf16[16,128], index: 3, kind: input, shape index: {}]   ;;  %s825_s4 = inlined_call_operand.vmem [shape: f32[1,128], index: 4, kind: input, shape index: {}]   ;;  %s826_s5 = inlined_call_operand.vmem [shape: f32[1,128], index: 5, kind: input, shape index: {}]   ;;  %s827_s6 = inlined_call_operand.hbm [shape: f32[16,128], index: 6, kind: output, shape index: {}]  }
   0x1   :  { %12 = vsyncpa [#allocation5], 0  ;;  %s19_s23 = sshll.u32 %s822_s1, 4  ;;  %s737_s24 = smov [#allocation3]   ;;  %s20_s23 = int_to_ptr.hbm [resolvable:$true] %s19_s23 }
   0x2   :  { %s21_s25 = sshll.u32 %s737_s24, 4  ;;  %s738_s26 = smov 64   ;;  %s22_s25 = int_to_ptr.vmem [resolvable:$true] %s21_s25 }
   0x3   :  { %s739_s27 = smov 4  }
   0x4   :  { %27 = dma.hbm_to_vmem [thread:$0]  %s20_s23, 4096, %s22_s25, [#allocation4], %s738_s26, %s738_s26, %s739_s27  }
   0x5   :  { %733 = dma.done.wait [#allocation4], 4096  }
   0x6   :  { %734 = vsyncadd [#allocation4], 4294963200  ;;  %v640_v0 = vld [vmem:[#allocation3 + $0x38] sm:$0xff]  ;;  %v639_v4 = vld [vmem:[#allocation3 + $0x30] sm:$0xff]  ;;  %s472_s27 = sshll.u32 %s827_s6, 4  ;;  %s743_s1 = smov 8   ;;  %s473_s27 = int_to_ptr.hbm [resolvable:$true] %s472_s27 }
   0x7   :  { %v648_v1 = vld [vmem:[#allocation3 + $0x78] sm:$0xff]  ;;  %328 = vmatpush.bf16.msra.mxu0 %v640_v0  ;;  %v647_v5 = vld [vmem:[#allocation3 + $0x70] sm:$0xff]  ;;  %v638_v8 = vld [vmem:[#allocation3 + $0x28] sm:$0xff] }
   0x8   :  { %v656_v2 = vld [vmem:[#allocation3 + $0xb8] sm:$0xff]  ;;  %342 = vmatpush.bf16.msra.mxu1 %v648_v1  ;;  %v655_v6 = vld [vmem:[#allocation3 + $0xb0] sm:$0xff]  ;;  %v646_v9 = vld [vmem:[#allocation3 + $0x68] sm:$0xff] }
   0x9   :  { %v664_v3 = vld [vmem:[#allocation3 + $0xf8] sm:$0xff]  ;;  %356 = vmatpush.bf16.msra.mxu2 %v656_v2  ;;  %v663_v7 = vld [vmem:[#allocation3 + $0xf0] sm:$0xff]  ;;  %v654_v10 = vld [vmem:[#allocation3 + $0xa8] sm:$0xff]  ;;  %v740_v2 = vmov 128.0  }
   0xa   :  { %370 = vmatpush.bf16.msra.mxu3 %v664_v3  ;;  %v662_v11 = vld [vmem:[#allocation3 + $0xe8] sm:$0xff]  ;;  %v637_v12 = vld [vmem:[#allocation3 + $0x20] sm:$0xff]  ;;  %v636_v16 = vld [vmem:[#allocation3 + $0x18] sm:$0xff]  ;;  %679 = vrcp.f32 %v740_v2 }
   0xb   :  { %329 = vmatpush.bf16.msra.mxu0 %v639_v4  ;;  %v645_v13 = vld [vmem:[#allocation3 + $0x60] sm:$0xff]  ;;  %v644_v17 = vld [vmem:[#allocation3 + $0x58] sm:$0xff]  ;;  %v635_v20 = vld [vmem:[#allocation3 + $0x10] sm:$0xff] }
   0xc   :  { %343 = vmatpush.bf16.msra.mxu1 %v647_v5  ;;  %v653_v14 = vld [vmem:[#allocation3 + $0xa0] sm:$0xff]  ;;  %v652_v18 = vld [vmem:[#allocation3 + $0x98] sm:$0xff]  ;;  %v643_v21 = vld [vmem:[#allocation3 + $0x50] sm:$0xff] }
   0xd   :  { %357 = vmatpush.bf16.msra.mxu2 %v655_v6  ;;  %v661_v15 = vld [vmem:[#allocation3 + $0xe0] sm:$0xff]  ;;  %v660_v19 = vld [vmem:[#allocation3 + $0xd8] sm:$0xff]  ;;  %v651_v22 = vld [vmem:[#allocation3 + $0x90] sm:$0xff] }
   0xe   :  { %371 = vmatpush.bf16.msra.mxu3 %v663_v7  ;;  %v659_v23 = vld [vmem:[#allocation3 + $0xd0] sm:$0xff]  ;;  %v634_v24 = vld [vmem:[#allocation3 + $0x8] sm:$0xff]  ;;  %v633_v28 = vld [vmem:[#allocation3] sm:$0xff] }
   0xf   :  { %330 = vmatpush.bf16.msra.mxu0 %v638_v8  ;;  %v642_v25 = vld [vmem:[#allocation3 + $0x48] sm:$0xff]  ;;  %v641_v29 = vld [vmem:[#allocation3 + $0x40] sm:$0xff]  ;;  %v631_v33 = vld [vmem:[%s821_s0 + $0xc] sm:$0xf0] }
  0x10   :  { %344 = vmatpush.bf16.msra.mxu1 %v646_v9  ;;  %v650_v26 = vld [vmem:[#allocation3 + $0x88] sm:$0xff]  ;;  %v649_v30 = vld [vmem:[#allocation3 + $0x80] sm:$0xff]  ;;  %v489_v35 = vld [vmem:[%s821_s0 + $0x10] sm:$0xf0]  ;;  %v680_v3 = vpop.eup %679 }
  0x11   :  { %358 = vmatpush.bf16.msra.mxu2 %v654_v10  ;;  %v658_v27 = vld [vmem:[#allocation3 + $0xc8] sm:$0xff]  ;;  %v657_v31 = vld [vmem:[#allocation3 + $0xc0] sm:$0xff]  ;;  %v632_v37 = vld [vmem:[%s821_s0 + $0x14] sm:$0xf0]  ;;  %v410_v4 = vmul.f32 128.0, %v680_v3  ;;  %vm414_vm0 = vweird.f32 %v680_v3 }
  0x12   :  { %372 = vmatpush.bf16.msra.mxu3 %v662_v11  ;;  %v487_v32 = vld [vmem:[%s821_s0] sm:$0xf]  ;;  %v629_v34 = vld [vmem:[%s821_s0 + $0x4] sm:$0xf]  ;;  %v495_v36 = vld [vmem:[%s821_s0 + $0x8] sm:$0xf] }
  0x13   :  { %331 = vmatpush.bf16.msra.mxu0 %v637_v12  ;;  %v630_v38 = vld [vmem:[%s821_s0 + $0xc] sm:$0xf]  ;;  %v497_v39 = vld [vmem:[%s821_s0 + $0x18] sm:$0xf0]  ;;  %v488_v40 = vor.u32 %v631_v33, %v487_v32  ;;  %v492_v41 = vor.u32 %v629_v34, %v489_v35  ;;  %v496_v42 = vor.u32 %v632_v37, %v495_v36  ;;  %v666_v49 = vld [vmem:[%s824_s3] sm:$0xff]   ;;  %v411_v5 = vsub.f32 1.0, %v410_v4 }
  0x14   :  { %345 = vmatpush.bf16.msra.mxu1 %v645_v13  ;;  %v500_v43 = vor.u32 %v630_v38, %v497_v39  ;;  %v676_v51 = vld [vmem:[%s823_s2] ss:$0 sm:$0xff]  ;;  %v667_v53 = vunpack.c.l.bf16 %v666_v49  ;;  %v668_v63 = vunpack.c.h.bf16 %v666_v49 }
  0x15   :  { %359 = vmatpush.bf16.msra.mxu2 %v653_v14  ;;  %v412_v6 = vmul.f32 %v680_v3, %v411_v5  ;;  %v678_v35 = vld [vmem:[%s826_s5] ss:$0 sm:$0xff]  ;;  %s742_s5 = smov 128  }
  0x16   :  { %373 = vmatpush.bf16.msra.mxu3 %v661_v15 }
  0x17   :  { %332 = vmatpush.bf16.msra.mxu0 %v636_v16  ;;  %v413_v7 = vadd.f32 %v680_v3, %v412_v6 }
  0x18   :  { %346 = vmatpush.bf16.msra.mxu1 %v644_v17 }
  0x19   :  { %360 = vmatpush.bf16.msra.mxu2 %v652_v18  ;;  %v415_v8 = vsel %vm414_vm0, %v680_v3, %v413_v7 }
  0x1a   :  { %374 = vmatpush.bf16.msra.mxu3 %v660_v19 }
  0x1b   :  { %333 = vmatpush.bf16.msra.mxu0 %v635_v20 }
  0x1c   :  { %347 = vmatpush.bf16.msra.mxu1 %v643_v21 }
  0x1d   :  { %361 = vmatpush.bf16.msra.mxu2 %v651_v22 }
  0x1e   :  { %375 = vmatpush.bf16.msra.mxu3 %v659_v23 }
  0x1f   :  { %334 = vmatpush.bf16.msra.mxu0 %v634_v24 }
  0x20   :  { %348 = vmatpush.bf16.msra.mxu1 %v642_v25 }
  0x21   :  { %362 = vmatpush.bf16.msra.mxu2 %v650_v26 }
  0x22   :  { %376 = vmatpush.bf16.msra.mxu3 %v658_v27 }
  0x23   :  { %335 = vmatpush.bf16.msra.mxu0 %v633_v28 }
  0x24   :  { %349 = vmatpush.bf16.msra.mxu1 %v641_v29 }
  0x25   :  { %363 = vmatpush.bf16.msra.mxu2 %v649_v30 }
  0x26   :  { %377 = vmatpush.bf16.msra.mxu3 %v657_v31  ;;  %336 = vmatmul.bf16.vlgmr.msra.gmra.mxu0 %v488_v40  ;;  %v677_v31 = vld [vmem:[%s825_s4] ss:$0 sm:$0xff]  ;;  %s741_s4 = smov [#allocation6]  }
  0x27   :  { %350 = vmatmul.bf16.vlgmr.msra.gmra.mxu1 %v492_v41  ;;  %s470_s24 = sshll.u32 %s741_s4, 4  ;;  %s471_s24 = int_to_ptr.vmem [resolvable:$true] %s470_s24 }
  0x28   :  { %364 = vmatmul.bf16.vlgmr.msra.gmra.mxu2 %v496_v42 }
  0x29   :  { %378 = vmatmul.bf16.vlgmr.msra.gmra.mxu3 %v500_v43 }
  0xa3   :  { %v337_v44 = vpop.f32.mrf.mxu0 }
  0xa4   :  { %v351_v45 = vpop.f32.mrf.mxu1 }
  0xa5   :  { %v352_v46 = vadd.f32 %v351_v45, %v337_v44 }
  0xab   :  { %v365_v47 = vpop.f32.mrf.mxu2  ;;  %v339_v54 = vpop.f32.mrf.mxu0 }
  0xac   :  { %v379_v48 = vpop.f32.mrf.mxu3  ;;  %v366_v50 = vadd.f32 %v365_v47, %v352_v46  ;;  %v353_v55 = vpop.f32.mrf.mxu1 }
  0xad   :  { %v354_v57 = vadd.f32 %v353_v55, %v339_v54 }
  0xae   :  { %v380_v52 = vadd.f32 %v379_v48, %v366_v50 }
  0xb0   :  { %v397_v56 = vadd.f32 %v676_v51, %v380_v52 }
  0xb2   :  { %v403_v58 = vadd.f32 %v667_v53, %v397_v56 }
  0xb3   :  { %v367_v59 = vpop.f32.mrf.mxu2 }
  0xb4   :  { %v368_v60 = vadd.f32 %v367_v59, %v354_v57  ;;  %405 = vadd.xlane.f32.xlu0 %v403_v58  ;;  %v381_v61 = vpop.f32.mrf.mxu3 }
  0xb6   :  { %v382_v62 = vadd.f32 %v381_v61, %v368_v60 }
  0xb8   :  { %v398_v0 = vadd.f32 %v676_v51, %v382_v62 }
  0xba   :  { %v404_v1 = vadd.f32 %v668_v63, %v398_v0 }
  0xbc   :  { %407 = vadd.xlane.f32.xlu0 %v404_v1 }
 0x127   :  { %v406_v9 = vpop.xlane.xlu0 %405 }
 0x128   :  { %v416_v10 = vmul.f32 %v415_v8, %v406_v9 }
 0x12a   :  { %v418_v11 = vsub.f32 %v403_v58, %v416_v10 }
 0x12c   :  { %v420_v12 = vmul.f32 %v418_v11, %v418_v11 }
 0x12e   :  { %422 = vadd.xlane.f32.xlu1 %v420_v12 }
 0x12f   :  { %v408_v13 = vpop.xlane.xlu0 %407 }
 0x130   :  { %v417_v14 = vmul.f32 %v415_v8, %v408_v13 }
 0x132   :  { %v419_v15 = vsub.f32 %v404_v1, %v417_v14 }
 0x134   :  { %v421_v16 = vmul.f32 %v419_v15, %v419_v15 }
 0x136   :  { %424 = vadd.xlane.f32.xlu1 %v421_v16 }
 0x1a1   :  { %v423_v17 = vpop.xlane.xlu1 %422 }
 0x1a2   :  { %v426_v18 = vmul.f32 %v423_v17, %v415_v8 }
 0x1a4   :  { %v428_v19 = vadd.f32 1e-12, %v426_v18 }
 0x1a6   :  { %681 = vrsqrt.f32 %v428_v19  ;;  %vm436_vm2 = vweird.f32 %v428_v19 }
 0x1a9   :  { %v425_v20 = vpop.xlane.xlu1 %424 }
 0x1aa   :  { %v427_v21 = vmul.f32 %v425_v20, %v415_v8 }
 0x1ac   :  { %v682_v22 = vpop.eup %681  ;;  %v429_v23 = vadd.f32 1e-12, %v427_v21 }
 0x1ad   :  { %v431_v24 = vmul.f32 %v682_v22, %v428_v19  ;;  %vm437_vm1 = vweird.f32 %v682_v22 }
 0x1ae   :  { %683 = vrsqrt.f32 %v429_v23  ;;  %vm438_vm3 = vmor %vm436_vm2, %vm437_vm1  ;;  %vm446_vm5 = vweird.f32 %v429_v23 }
 0x1af   :  { %v432_v25 = vmul.f32 %v682_v22, %v431_v24 }
 0x1b1   :  { %v433_v26 = vmul.f32 0.5, %v432_v25 }
 0x1b3   :  { %v434_v27 = vsub.f32 1.5, %v433_v26 }
 0x1b4   :  { %v684_v28 = vpop.eup %683 }
 0x1b5   :  { %v435_v29 = vmul.f32 %v682_v22, %v434_v27  ;;  %v441_v30 = vmul.f32 %v684_v28, %v429_v23  ;;  %vm447_vm4 = vweird.f32 %v684_v28 }
 0x1b6   :  { %vm448_vm6 = vmor %vm446_vm5, %vm447_vm4 }
 0x1b7   :  { %v439_v32 = vsel %vm438_vm3, %v682_v22, %v435_v29  ;;  %v442_v33 = vmul.f32 %v684_v28, %v441_v30 }
 0x1b8   :  { %v450_v34 = vmul.f32 %v439_v32, %v418_v11 }
 0x1b9   :  { %v443_v36 = vmul.f32 0.5, %v442_v33 }
 0x1ba   :  { %v456_v37 = vmul.f32 %v677_v31, %v450_v34 }
 0x1bb   :  { %v444_v38 = vsub.f32 1.5, %v443_v36 }
 0x1bc   :  { %v462_v39 = vadd.f32 %v678_v35, %v456_v37 }
 0x1bd   :  { %v445_v40 = vmul.f32 %v684_v28, %v444_v38 }
 0x1be   :  { %464 = vst [vmem:[#allocation6] sm:$0xff] %v462_v39 }
 0x1bf   :  { %v449_v41 = vsel %vm448_vm6, %v684_v28, %v445_v40 }
 0x1c0   :  { %v451_v42 = vmul.f32 %v449_v41, %v419_v15 }
 0x1c2   :  { %v457_v43 = vmul.f32 %v677_v31, %v451_v42 }
 0x1c4   :  { %v463_v44 = vadd.f32 %v678_v35, %v457_v43 }
 0x1c6   :  { %465 = vst [vmem:[#allocation6 + $0x8] sm:$0xff] %v463_v44 }
 0x1c7   :  { %478 = dma.vmem_to_hbm [thread:$0]  %s471_s24, 256, %s473_s27, [#allocation5], %s742_s5, %s742_s5, %s743_s1  }
 0x1c8   :  { %735 = dma.done.wait [#allocation5], 256  }
 0x1c9   :  { %736 = vsyncadd [#allocation5], 4294967040 }
 0x1ca   :  { %483 = vsyncpa [#allocation4], 1 }
 0x1cb   :  { %484 = vsyncpa [#allocation5], 1 }

</bundles_post_ra>
